<compile_context>
chip_gen: v5e
topology: v5e:2x2
jax: 0.10.0
libtpu: 0.0.40
codegen_flags: <defaults>
</compile_context>

<pallas_src>
import functools
import math

import jax
import jax.numpy as jnp
from jax import lax
from jax.experimental import pallas as pl
from jax.experimental.pallas import tpu as pltpu

# ----------------------------- model dimensions -----------------------------
FEATURE_DIM = 64
HIDDEN_DIM = 256
TAIL_DIM = 128                              # tail_spectro_dim == tail_phase_dim
NUM_FREQS = 10
POS_ENC_DIM = 6 * 2 * NUM_FREQS             # 120
FT_ENC_DIM = 1 * 2 * NUM_FREQS              # 20
INPUT_DIM = 2 * FEATURE_DIM + POS_ENC_DIM + 2 * FT_ENC_DIM   # 288
OUT_DIM = 2                                 # tail1, tail2


# --------------------------- generation detection ----------------------------
def _device_kind():
    try:
        return jax.devices()[0].device_kind.lower()
    except Exception:
        return ""

_KIND = _device_kind()
IS_V5 = "v5" in _KIND
IS_V7 = ("v7" in _KIND) or ("tpu7" in _KIND) or ("tpu 7" in _KIND)

MAX_TILE = 2048 if IS_V7 else 4096                       # rows per grid step
VMEM_LIMIT_BYTES = (48 if IS_V7 else 64) * 1024 * 1024   # v7x has 64 MiB VMEM


def _round_up(a, m):
    return ((a + m - 1) // m) * m


# ------------------------------- Pallas kernel ------------------------------
def _lrelu(v):
    return jnp.maximum(v, 0.1 * v)


def _mm(a, w_ref):
    """bf16-operand matmul with f32 accumulation (MXU native rate)."""
    return jnp.dot(a.astype(jnp.bfloat16), w_ref[...],
                   preferred_element_type=jnp.float32)


def _naf_kernel(x_ref, *refs, fuse_tails):
    o_ref = refs[-1]
    w = refs[:-1]
    b1w, b1b, b2w, b2b, b3w, b3b, b4w, b4b = w[:8]

    # block1: 288 -> 256 -> 256 -> 256 -> 256   (bf16 MXU, f32 acc, f32 lrelu)
    h = _lrelu(_mm(x_ref[...], b1w) + b1b[...])
    h = _lrelu(_mm(h, b2w) + b2b[...])
    h = _lrelu(_mm(h, b3w) + b3b[...])
    h = _lrelu(_mm(h, b4w) + b4b[...])

    if fuse_tails:
        # v6e/v7x: 256-wide fused tails (cols [0:128]=tail1, [128:256]=tail2)
        t1w, t1b, t2w, t2b, t3w, t3b, hw, hb = w[8:]
        t = _lrelu(_mm(h, t1w) + t1b[...])
        t = _lrelu(_mm(t, t2w) + t2b[...])        # block-diagonal fused
        t = _lrelu(_mm(t, t3w) + t3b[...])        # block-diagonal fused
        prod = t * hw[...]                        # VPU; final heads off the MXU
        t1 = jnp.sum(prod[:, :TAIL_DIM], axis=-1, keepdims=True)
        t2 = jnp.sum(prod[:, TAIL_DIM:], axis=-1, keepdims=True)
    else:
        # v5e (128x128 MXU): fuse only layer 1 (zero-free); keep layers 2-3
        # as two independent 128-wide matmuls per layer.
        (t1w, t1b, s2w, s2b, p2w, p2b,
         s3w, s3b, p3w, p3b, sh, ph, hb) = w[8:]
        t = _lrelu(_mm(h, t1w) + t1b[...])        # (tile, 256)
        ts = _lrelu(_mm(t[:, :TAIL_DIM], s2w) + s2b[...])
        tp = _lrelu(_mm(t[:, TAIL_DIM:], p2w) + p2b[...])
        ts = _lrelu(_mm(ts, s3w) + s3b[...])
        tp = _lrelu(_mm(tp, p3w) + p3b[...])
        t1 = jnp.sum(ts * sh[...], axis=-1, keepdims=True)
        t2 = jnp.sum(tp * ph[...], axis=-1, keepdims=True)

    # narrow (tile, 2) output: col 0 = tail1, col 1 = tail2 (2 == full last dim)
    col = lax.broadcasted_iota(jnp.int32, o_ref.shape, 1)
    o_ref[...] = jnp.where(col == 0, t1, t2) + hb[...]


def pack_params(fp, fuse_tails):
    """Pack/fuse the 24 torch-layout params into kernel inputs (exact).

    Matmul weights are cast to bf16 once here; biases / head rows stay f32.
    """
    (b1w, b1b, b2w, b2b, b3w, b3b, b4w, b4b,
     s1w, s1b, s2w, s2b, s3w, s3b, s4w, s4b,
     p1w, p1b, p2w, p2b, p3w, p3b, p4w, p4b) = fp
    bf = lambda a: a.astype(jnp.bfloat16)

    # tail layer 1: exact column concat (zero-free) -> fused everywhere
    t1w = jnp.concatenate([s1w, p1w], axis=1)            # (256, 256)
    t1b = jnp.concatenate([s1b, p1b], axis=1)            # (1, 256)
    hb = jnp.concatenate([s4b, p4b], axis=1)             # (1, 2) final biases

    base = [bf(b1w), b1b, bf(b2w), b2b, bf(b3w), b3b, bf(b4w), b4b,
            bf(t1w), t1b]

    if fuse_tails:
        z = jnp.zeros((TAIL_DIM, TAIL_DIM), jnp.float32)
        t2w = jnp.concatenate([jnp.concatenate([s2w, z], axis=1),
                               jnp.concatenate([z, p2w], axis=1)], axis=0)
        t2b = jnp.concatenate([s2b, p2b], axis=1)
        t3w = jnp.concatenate([jnp.concatenate([s3w, z], axis=1),
                               jnp.concatenate([z, p3w], axis=1)], axis=0)
        t3b = jnp.concatenate([s3b, p3b], axis=1)
        hw = jnp.concatenate([s4w, p4w], axis=1)          # (1, 256) f32 head row
        return tuple(base + [bf(t2w), t2b, bf(t3w), t3b, hw, hb])
    else:
        return tuple(base + [bf(s2w), s2b, bf(p2w), p2b,
                             bf(s3w), s3b, bf(p3w), p3b,
                             s4w, p4w, hb])


def _choose_tile(n):
    # biggest tile that fits the per-generation budget; right-size for small n
    tile = min(MAX_TILE, _round_up(max(n, 128), 128))
    if IS_V7:
        # keep >= 2 grid steps (when n allows) so both TensorCores are engaged
        tile = min(tile, max(128, _round_up(pl.cdiv(n, 2), 128)))
    return tile


def naf_mlp_pallas(x_flat, flat_params):
    """x_flat: (N, INPUT_DIM) float32; returns (N, 2) float32."""
    n = x_flat.shape[0]
    fuse_tails = not IS_V5

    tile = _choose_tile(n)
    n_pad = _round_up(n, tile)

    x = x_flat.astype(jnp.bfloat16)            # halves input DMA; matmuls are bf16
    if n_pad != n:
        x = jnp.pad(x, ((0, n_pad - n), (0, 0)))

    packed = pack_params(flat_params, fuse_tails)
    weight_specs = [pl.BlockSpec(w.shape, lambda i: (0, 0)) for w in packed]

    dims = (pltpu.CORE_PARALLEL,) if IS_V7 else ("parallel",)

    kernel = functools.partial(_naf_kernel, fuse_tails=fuse_tails)
    out = pl.pallas_call(
        kernel,
        out_shape=jax.ShapeDtypeStruct((n_pad, OUT_DIM), jnp.float32),
        grid=(n_pad // tile,),
        in_specs=[pl.BlockSpec((tile, INPUT_DIM), lambda i: (i, 0))]
                 + weight_specs,
        out_specs=pl.BlockSpec((tile, OUT_DIM), lambda i: (i, 0)),
        compiler_params=pltpu.CompilerParams(
            dimension_semantics=dims,
            vmem_limit_bytes=VMEM_LIMIT_BYTES),
    )(x, *packed)
    return out[:n]


# ------------------------------ JAX glue (encoders) --------------------------
def positional_encoding(x, axis, num_freqs=NUM_FREQS):
    freqs = [(2.0 ** i) * math.pi for i in range(num_freqs)]
    parts = [jnp.sin(x * f) for f in freqs] + [jnp.cos(x * f) for f in freqs]
    return jnp.concatenate(parts, axis=axis)


def interpolated_features(coords_xy, grid_xy, grid_0, samples):
    """Replicates NAF._interpolated: 4-NN, softmax over raw distances."""
    # TODO(synk): cKDTree query is replicated as a dense top_k in plain JAX.
    d = jnp.sqrt(jnp.sum((coords_xy[:, None, :] - grid_xy[None, :, :]) ** 2, -1))
    neg_d4, idx4 = lax.top_k(-d, 4)          # 4 nearest neighbours (ascending d)
    d4 = -neg_d4
    # softmax over raw (positive) distances, matching the torch code
    w = jax.nn.softmax(d4, axis=1)
    feats = grid_0[idx4]                     # (B, 4, F)
    features = jnp.sum(feats * w[:, :, None], axis=1)     # (B, F)
    return jnp.broadcast_to(features[:, None, :],
                            (coords_xy.shape[0], samples, grid_0.shape[1]))


def naf_build_input(srcs, mics, freqs, times, grid_xy, grid_0):
    samples = freqs.shape[1]
    pos = jnp.concatenate([srcs, mics], axis=1)                       # (B, 6)
    pos_enc = positional_encoding(pos, axis=1)                        # (B, 120)
    pos_enc = jnp.broadcast_to(pos_enc[:, None, :],
                               (pos.shape[0], samples, pos_enc.shape[1]))
    freqs_enc = positional_encoding(freqs[..., None], axis=2)         # (B, S, 20)
    times_enc = positional_encoding(times[..., None], axis=2)         # (B, S, 20)
    feat_src = interpolated_features(srcs[:, :2], grid_xy, grid_0, samples)
    feat_mic = interpolated_features(mics[:, :2], grid_xy, grid_0, samples)
    return jnp.concatenate([feat_src, feat_mic, pos_enc, freqs_enc, times_enc],
                           axis=2)                                    # (B, S, 288)


def naf_forward(srcs, mics, freqs, times, grid_xy, grid_0, flat_params):
    b, s = freqs.shape
    x = naf_build_input(srcs, mics, freqs, times, grid_xy, grid_0)
    out = naf_mlp_pallas(x.reshape(b * s, INPUT_DIM), flat_params)
    return out.reshape(b, s, 2)


# --------------------------- pure-JAX reference ------------------------------
def naf_mlp_reference(x, fp, matmul_dtype=jnp.float32):
    (b1w, b1b, b2w, b2b, b3w, b3b, b4w, b4b,
     s1w, s1b, s2w, s2b, s3w, s3b, s4w, s4b,
     p1w, p1b, p2w, p2b, p3w, p3b, p4w, p4b) = fp

    def mm(a, w):
        return jnp.dot(a.astype(matmul_dtype), w.astype(matmul_dtype),
                       preferred_element_type=jnp.float32)

    h = _lrelu(mm(x, b1w) + b1b)
    h = _lrelu(mm(h, b2w) + b2b)
    h = _lrelu(mm(h, b3w) + b3b)
    h = _lrelu(mm(h, b4w) + b4b)
    t = _lrelu(mm(h, s1w) + s1b)
    t = _lrelu(mm(t, s2w) + s2b)
    t = _lrelu(mm(t, s3w) + s3b)
    t1 = jnp.sum(t * s4w, axis=-1, keepdims=True) + s4b
    p = _lrelu(mm(h, p1w) + p1b)
    p = _lrelu(mm(p, p2w) + p2b)
    p = _lrelu(mm(p, p3w) + p3b)
    t2 = jnp.sum(p * p4w, axis=-1, keepdims=True) + p4b
    return jnp.concatenate([t1, t2], axis=-1)


# ------------------------------- param init ----------------------------------
def init_linear(key, in_dim, out_dim, final_row=False):
    kw, kb = jax.random.split(key)
    scale = 1.0 / math.sqrt(in_dim)
    if final_row:
        # final layers have out_dim == 1; store weight as a (1, in_dim) row
        w = jax.random.normal(kw, (1, in_dim), jnp.float32) * scale
        b = jax.random.normal(kb, (1, 1), jnp.float32) * scale
    else:
        w = jax.random.normal(kw, (in_dim, out_dim), jnp.float32) * scale
        b = jax.random.normal(kb, (1, out_dim), jnp.float32) * scale
    return w, b


def init_params(key):
    keys = jax.random.split(key, 12)
    params = []
    # block1: 288->256, 256->256 x3
    params += init_linear(keys[0], INPUT_DIM, HIDDEN_DIM)
    params += init_linear(keys[1], HIDDEN_DIM, HIDDEN_DIM)
    params += init_linear(keys[2], HIDDEN_DIM, HIDDEN_DIM)
    params += init_linear(keys[3], HIDDEN_DIM, HIDDEN_DIM)
    # tail1: 256->128, 128->128 x2, 128->1
    params += init_linear(keys[4], HIDDEN_DIM, TAIL_DIM)
    params += init_linear(keys[5], TAIL_DIM, TAIL_DIM)
    params += init_linear(keys[6], TAIL_DIM, TAIL_DIM)
    params += init_linear(keys[7], TAIL_DIM, 1, final_row=True)
    # tail2: 256->128, 128->128 x2, 128->1
    params += init_linear(keys[8], HIDDEN_DIM, TAIL_DIM)
    params += init_linear(keys[9], TAIL_DIM, TAIL_DIM)
    params += init_linear(keys[10], TAIL_DIM, TAIL_DIM)
    params += init_linear(keys[11], TAIL_DIM, 1, final_row=True)
    return params


def make_grid(min_xy=(-0.5, -0.5), max_xy=(0.5, 0.5), density=0.1):
    gx = jnp.arange(min_xy[0], max_xy[0], density)
    gy = jnp.arange(min_xy[1], max_xy[1], density)
    xx, yy = jnp.meshgrid(gx, gy)
    return jnp.stack([xx.flatten(), yy.flatten()], axis=1).astype(jnp.float32)


# ----------------------------------- main -------------------------------------
if __name__ == "__main__":
    key = jax.random.PRNGKey(0)
    k_params, k_grid, k_src, k_mic, k_f, k_t = jax.random.split(key, 6)

    flat_params = init_params(k_params)
    grid_xy = make_grid()                                        # (100, 2)
    grid_0 = (jax.random.normal(k_grid, (grid_xy.shape[0], FEATURE_DIM),
                                jnp.float32) / math.sqrt(FEATURE_DIM))

    B, SAMPLES = 2, 8
    srcs = jax.random.uniform(k_src, (B, 3), jnp.float32, -0.5, 0.5)
    mics = jax.random.uniform(k_mic, (B, 3), jnp.float32, -0.5, 0.5)
    freqs = jax.random.uniform(k_f, (B, SAMPLES), jnp.float32, -1.0, 1.0)
    times = jax.random.uniform(k_t, (B, SAMPLES), jnp.float32, -1.0, 1.0)

    out = naf_forward(srcs, mics, freqs, times, grid_xy, grid_0, flat_params)
    out = jax.block_until_ready(out)
    assert out.shape == (B, SAMPLES, 2)

    # sanity checks: tight vs a matching bf16-operand reference, loose vs f32
    x_flat = naf_build_input(srcs, mics, freqs, times, grid_xy, grid_0)
    x_flat = x_flat.reshape(B * SAMPLES, INPUT_DIM)
    ref_bf16 = naf_mlp_reference(x_flat, flat_params,
                                 matmul_dtype=jnp.bfloat16).reshape(B, SAMPLES, 2)
    ref_f32 = naf_mlp_reference(x_flat, flat_params).reshape(B, SAMPLES, 2)
    assert jnp.allclose(out, ref_bf16, atol=2e-3, rtol=2e-3)
    assert jnp.allclose(out, ref_f32, atol=1e-1, rtol=1e-1)

    print("KERNEL_OK")
</pallas_src>

<mosaic_0001>
module attributes {stable_mosaic.version = 11 : i64} {
  func.func @_naf_kernel(%arg0: i32, %arg1: memref<128x288xbf16, #tpu.memory_space<vmem>>, %arg2: memref<288x256xbf16, #tpu.memory_space<vmem>>, %arg3: memref<1x256xf32, #tpu.memory_space<vmem>>, %arg4: memref<256x256xbf16, #tpu.memory_space<vmem>>, %arg5: memref<1x256xf32, #tpu.memory_space<vmem>>, %arg6: memref<256x256xbf16, #tpu.memory_space<vmem>>, %arg7: memref<1x256xf32, #tpu.memory_space<vmem>>, %arg8: memref<256x256xbf16, #tpu.memory_space<vmem>>, %arg9: memref<1x256xf32, #tpu.memory_space<vmem>>, %arg10: memref<256x256xbf16, #tpu.memory_space<vmem>>, %arg11: memref<1x256xf32, #tpu.memory_space<vmem>>, %arg12: memref<256x256xbf16, #tpu.memory_space<vmem>>, %arg13: memref<1x256xf32, #tpu.memory_space<vmem>>, %arg14: memref<256x256xbf16, #tpu.memory_space<vmem>>, %arg15: memref<1x256xf32, #tpu.memory_space<vmem>>, %arg16: memref<1x256xf32, #tpu.memory_space<vmem>>, %arg17: memref<1x2xf32, #tpu.memory_space<vmem>>, %arg18: memref<128x2xf32, #tpu.memory_space<vmem>>) attributes {dimension_semantics = [#tpu.dimension_semantics<parallel>], iteration_bounds = array<i64: 1>, scalar_prefetch = 0 : i64, scratch_operands = 0 : i64, tpu.core_type = #tpu.core_type<tc>, window_params = [{transform_indices = @transform_0, window_bounds = array<i64: 128, 288>}, {pipeline_mode = #tpu.pipeline_mode<synchronous>, transform_indices = @transform_1, window_bounds = array<i64: 288, 256>}, {pipeline_mode = #tpu.pipeline_mode<synchronous>, transform_indices = @transform_2, window_bounds = array<i64: 1, 256>}, {pipeline_mode = #tpu.pipeline_mode<synchronous>, transform_indices = @transform_3, window_bounds = array<i64: 256, 256>}, {pipeline_mode = #tpu.pipeline_mode<synchronous>, transform_indices = @transform_4, window_bounds = array<i64: 1, 256>}, {pipeline_mode = #tpu.pipeline_mode<synchronous>, transform_indices = @transform_5, window_bounds = array<i64: 256, 256>}, {pipeline_mode = #tpu.pipeline_mode<synchronous>, transform_indices = @transform_6, window_bounds = array<i64: 1, 256>}, {pipeline_mode = #tpu.pipeline_mode<synchronous>, transform_indices = @transform_7, window_bounds = array<i64: 256, 256>}, {pipeline_mode = #tpu.pipeline_mode<synchronous>, transform_indices = @transform_8, window_bounds = array<i64: 1, 256>}, {pipeline_mode = #tpu.pipeline_mode<synchronous>, transform_indices = @transform_9, window_bounds = array<i64: 256, 256>}, {pipeline_mode = #tpu.pipeline_mode<synchronous>, transform_indices = @transform_10, window_bounds = array<i64: 1, 256>}, {pipeline_mode = #tpu.pipeline_mode<synchronous>, transform_indices = @transform_11, window_bounds = array<i64: 256, 256>}, {pipeline_mode = #tpu.pipeline_mode<synchronous>, transform_indices = @transform_12, window_bounds = array<i64: 1, 256>}, {pipeline_mode = #tpu.pipeline_mode<synchronous>, transform_indices = @transform_13, window_bounds = array<i64: 256, 256>}, {pipeline_mode = #tpu.pipeline_mode<synchronous>, transform_indices = @transform_14, window_bounds = array<i64: 1, 256>}, {pipeline_mode = #tpu.pipeline_mode<synchronous>, transform_indices = @transform_15, window_bounds = array<i64: 1, 256>}, {pipeline_mode = #tpu.pipeline_mode<synchronous>, transform_indices = @transform_16, window_bounds = array<i64: 1, 2>}, {transform_indices = @transform_17, window_bounds = array<i64: 128, 2>}]} {
    %c0 = arith.constant 0 : index
    %c0_0 = arith.constant 0 : index
    %0 = vector.load %arg1[%c0, %c0_0] : memref<128x288xbf16, #tpu.memory_space<vmem>>, vector<128x288xbf16>
    %c0_1 = arith.constant 0 : index
    %c0_2 = arith.constant 0 : index
    %1 = vector.load %arg2[%c0_1, %c0_2] : memref<288x256xbf16, #tpu.memory_space<vmem>>, vector<288x256xbf16>
    %cst = arith.constant dense<0.000000e+00> : vector<128x256xf32>
    %2 = tpu.matmul %0, %1, %cst {dimension_numbers = #tpu.dot_dimension_numbers<[1], [0], [0], [1], [0, 0, 1, 1], [], []>} : vector<128x288xbf16>, vector<288x256xbf16>, vector<128x256xf32> -> vector<128x256xf32>
    %c0_3 = arith.constant 0 : index
    %c0_4 = arith.constant 0 : index
    %3 = vector.load %arg3[%c0_3, %c0_4] : memref<1x256xf32, #tpu.memory_space<vmem>>, vector<1x256xf32>
    %4 = vector.broadcast %3 : vector<1x256xf32> to vector<128x256xf32>
    %5 = arith.addf %2, %4 : vector<128x256xf32>
    %cst_5 = arith.constant 1.000000e-01 : f32
    %6 = vector.broadcast %cst_5 : f32 to vector<128x256xf32>
    %7 = arith.mulf %6, %5 : vector<128x256xf32>
    %8 = arith.maximumf %5, %7 : vector<128x256xf32>
    %9 = arith.truncf %8 : vector<128x256xf32> to vector<128x256xbf16>
    %c0_6 = arith.constant 0 : index
    %c0_7 = arith.constant 0 : index
    %10 = vector.load %arg4[%c0_6, %c0_7] : memref<256x256xbf16, #tpu.memory_space<vmem>>, vector<256x256xbf16>
    %cst_8 = arith.constant dense<0.000000e+00> : vector<128x256xf32>
    %11 = tpu.matmul %9, %10, %cst_8 {dimension_numbers = #tpu.dot_dimension_numbers<[1], [0], [0], [1], [0, 0, 1, 1], [], []>} : vector<128x256xbf16>, vector<256x256xbf16>, vector<128x256xf32> -> vector<128x256xf32>
    %c0_9 = arith.constant 0 : index
    %c0_10 = arith.constant 0 : index
    %12 = vector.load %arg5[%c0_9, %c0_10] : memref<1x256xf32, #tpu.memory_space<vmem>>, vector<1x256xf32>
    %13 = vector.broadcast %12 : vector<1x256xf32> to vector<128x256xf32>
    %14 = arith.addf %11, %13 : vector<128x256xf32>
    %cst_11 = arith.constant 1.000000e-01 : f32
    %15 = vector.broadcast %cst_11 : f32 to vector<128x256xf32>
    %16 = arith.mulf %15, %14 : vector<128x256xf32>
    %17 = arith.maximumf %14, %16 : vector<128x256xf32>
    %18 = arith.truncf %17 : vector<128x256xf32> to vector<128x256xbf16>
    %c0_12 = arith.constant 0 : index
    %c0_13 = arith.constant 0 : index
    %19 = vector.load %arg6[%c0_12, %c0_13] : memref<256x256xbf16, #tpu.memory_space<vmem>>, vector<256x256xbf16>
    %cst_14 = arith.constant dense<0.000000e+00> : vector<128x256xf32>
    %20 = tpu.matmul %18, %19, %cst_14 {dimension_numbers = #tpu.dot_dimension_numbers<[1], [0], [0], [1], [0, 0, 1, 1], [], []>} : vector<128x256xbf16>, vector<256x256xbf16>, vector<128x256xf32> -> vector<128x256xf32>
    %c0_15 = arith.constant 0 : index
    %c0_16 = arith.constant 0 : index
    %21 = vector.load %arg7[%c0_15, %c0_16] : memref<1x256xf32, #tpu.memory_space<vmem>>, vector<1x256xf32>
    %22 = vector.broadcast %21 : vector<1x256xf32> to vector<128x256xf32>
    %23 = arith.addf %20, %22 : vector<128x256xf32>
    %cst_17 = arith.constant 1.000000e-01 : f32
    %24 = vector.broadcast %cst_17 : f32 to vector<128x256xf32>
    %25 = arith.mulf %24, %23 : vector<128x256xf32>
    %26 = arith.maximumf %23, %25 : vector<128x256xf32>
    %27 = arith.truncf %26 : vector<128x256xf32> to vector<128x256xbf16>
    %c0_18 = arith.constant 0 : index
    %c0_19 = arith.constant 0 : index
    %28 = vector.load %arg8[%c0_18, %c0_19] : memref<256x256xbf16, #tpu.memory_space<vmem>>, vector<256x256xbf16>
    %cst_20 = arith.constant dense<0.000000e+00> : vector<128x256xf32>
    %29 = tpu.matmul %27, %28, %cst_20 {dimension_numbers = #tpu.dot_dimension_numbers<[1], [0], [0], [1], [0, 0, 1, 1], [], []>} : vector<128x256xbf16>, vector<256x256xbf16>, vector<128x256xf32> -> vector<128x256xf32>
    %c0_21 = arith.constant 0 : index
    %c0_22 = arith.constant 0 : index
    %30 = vector.load %arg9[%c0_21, %c0_22] : memref<1x256xf32, #tpu.memory_space<vmem>>, vector<1x256xf32>
    %31 = vector.broadcast %30 : vector<1x256xf32> to vector<128x256xf32>
    %32 = arith.addf %29, %31 : vector<128x256xf32>
    %cst_23 = arith.constant 1.000000e-01 : f32
    %33 = vector.broadcast %cst_23 : f32 to vector<128x256xf32>
    %34 = arith.mulf %33, %32 : vector<128x256xf32>
    %35 = arith.maximumf %32, %34 : vector<128x256xf32>
    %36 = arith.truncf %35 : vector<128x256xf32> to vector<128x256xbf16>
    %c0_24 = arith.constant 0 : index
    %c0_25 = arith.constant 0 : index
    %37 = vector.load %arg10[%c0_24, %c0_25] : memref<256x256xbf16, #tpu.memory_space<vmem>>, vector<256x256xbf16>
    %cst_26 = arith.constant dense<0.000000e+00> : vector<128x256xf32>
    %38 = tpu.matmul %36, %37, %cst_26 {dimension_numbers = #tpu.dot_dimension_numbers<[1], [0], [0], [1], [0, 0, 1, 1], [], []>} : vector<128x256xbf16>, vector<256x256xbf16>, vector<128x256xf32> -> vector<128x256xf32>
    %c0_27 = arith.constant 0 : index
    %c0_28 = arith.constant 0 : index
    %39 = vector.load %arg11[%c0_27, %c0_28] : memref<1x256xf32, #tpu.memory_space<vmem>>, vector<1x256xf32>
    %40 = vector.broadcast %39 : vector<1x256xf32> to vector<128x256xf32>
    %41 = arith.addf %38, %40 : vector<128x256xf32>
    %cst_29 = arith.constant 1.000000e-01 : f32
    %42 = vector.broadcast %cst_29 : f32 to vector<128x256xf32>
    %43 = arith.mulf %42, %41 : vector<128x256xf32>
    %44 = arith.maximumf %41, %43 : vector<128x256xf32>
    %45 = arith.truncf %44 : vector<128x256xf32> to vector<128x256xbf16>
    %c0_30 = arith.constant 0 : index
    %c0_31 = arith.constant 0 : index
    %46 = vector.load %arg12[%c0_30, %c0_31] : memref<256x256xbf16, #tpu.memory_space<vmem>>, vector<256x256xbf16>
    %cst_32 = arith.constant dense<0.000000e+00> : vector<128x256xf32>
    %47 = tpu.matmul %45, %46, %cst_32 {dimension_numbers = #tpu.dot_dimension_numbers<[1], [0], [0], [1], [0, 0, 1, 1], [], []>} : vector<128x256xbf16>, vector<256x256xbf16>, vector<128x256xf32> -> vector<128x256xf32>
    %c0_33 = arith.constant 0 : index
    %c0_34 = arith.constant 0 : index
    %48 = vector.load %arg13[%c0_33, %c0_34] : memref<1x256xf32, #tpu.memory_space<vmem>>, vector<1x256xf32>
    %49 = vector.broadcast %48 : vector<1x256xf32> to vector<128x256xf32>
    %50 = arith.addf %47, %49 : vector<128x256xf32>
    %cst_35 = arith.constant 1.000000e-01 : f32
    %51 = vector.broadcast %cst_35 : f32 to vector<128x256xf32>
    %52 = arith.mulf %51, %50 : vector<128x256xf32>
    %53 = arith.maximumf %50, %52 : vector<128x256xf32>
    %54 = arith.truncf %53 : vector<128x256xf32> to vector<128x256xbf16>
    %c0_36 = arith.constant 0 : index
    %c0_37 = arith.constant 0 : index
    %55 = vector.load %arg14[%c0_36, %c0_37] : memref<256x256xbf16, #tpu.memory_space<vmem>>, vector<256x256xbf16>
    %cst_38 = arith.constant dense<0.000000e+00> : vector<128x256xf32>
    %56 = tpu.matmul %54, %55, %cst_38 {dimension_numbers = #tpu.dot_dimension_numbers<[1], [0], [0], [1], [0, 0, 1, 1], [], []>} : vector<128x256xbf16>, vector<256x256xbf16>, vector<128x256xf32> -> vector<128x256xf32>
    %c0_39 = arith.constant 0 : index
    %c0_40 = arith.constant 0 : index
    %57 = vector.load %arg15[%c0_39, %c0_40] : memref<1x256xf32, #tpu.memory_space<vmem>>, vector<1x256xf32>
    %58 = vector.broadcast %57 : vector<1x256xf32> to vector<128x256xf32>
    %59 = arith.addf %56, %58 : vector<128x256xf32>
    %cst_41 = arith.constant 1.000000e-01 : f32
    %60 = vector.broadcast %cst_41 : f32 to vector<128x256xf32>
    %61 = arith.mulf %60, %59 : vector<128x256xf32>
    %62 = arith.maximumf %59, %61 : vector<128x256xf32>
    %c0_42 = arith.constant 0 : index
    %c0_43 = arith.constant 0 : index
    %63 = vector.load %arg16[%c0_42, %c0_43] : memref<1x256xf32, #tpu.memory_space<vmem>>, vector<1x256xf32>
    %64 = vector.broadcast %63 : vector<1x256xf32> to vector<128x256xf32>
    %65 = arith.mulf %62, %64 : vector<128x256xf32>
    %66 = vector.extract_strided_slice %65 {offsets = [0, 0], sizes = [128, 128], strides = [1, 1]} : vector<128x256xf32> to vector<128x128xf32>
    %cst_44 = arith.constant dense<0.000000e+00> : vector<128xf32>
    %67 = vector.multi_reduction <add>, %66, %cst_44 [1] : vector<128x128xf32> to vector<128xf32>
    %68 = vector.shape_cast %67 : vector<128xf32> to vector<128x1xf32>
    %69 = vector.extract_strided_slice %65 {offsets = [0, 128], sizes = [128, 128], strides = [1, 1]} : vector<128x256xf32> to vector<128x128xf32>
    %cst_45 = arith.constant dense<0.000000e+00> : vector<128xf32>
    %70 = vector.multi_reduction <add>, %69, %cst_45 [1] : vector<128x128xf32> to vector<128xf32>
    %71 = vector.shape_cast %70 : vector<128xf32> to vector<128x1xf32>
    %72 = tpu.iota {dimensions = array<i32: 1>} : vector<128x2xi32>
    %c0_i32 = arith.constant 0 : i32
    %73 = vector.broadcast %c0_i32 : i32 to vector<128x2xi32>
    %74 = arith.cmpi eq, %72, %73 : vector<128x2xi32>
    %75 = vector.shape_cast %68 : vector<128x1xf32> to vector<128x1xf32>
    %76 = vector.broadcast %75 : vector<128x1xf32> to vector<128x2xf32>
    %77 = vector.shape_cast %71 : vector<128x1xf32> to vector<128x1xf32>
    %78 = vector.broadcast %77 : vector<128x1xf32> to vector<128x2xf32>
    %79 = arith.select %74, %76, %78 : vector<128x2xi1>, vector<128x2xf32>
    %c0_46 = arith.constant 0 : index
    %c0_47 = arith.constant 0 : index
    %80 = vector.load %arg17[%c0_46, %c0_47] : memref<1x2xf32, #tpu.memory_space<vmem>>, vector<1x2xf32>
    %81 = vector.broadcast %80 : vector<1x2xf32> to vector<128x2xf32>
    %82 = arith.addf %79, %81 : vector<128x2xf32>
    %c0_48 = arith.constant 0 : index
    %c0_49 = arith.constant 0 : index
    %83 = vector.load %arg18[%c0_48, %c0_49] : memref<128x2xf32, #tpu.memory_space<vmem>>, vector<128x2xf32>
    tpu.vector_store %arg18[%c0_48, %c0_49], %82 {strides = array<i32>} : memref<128x2xf32, #tpu.memory_space<vmem>>, vector<128x2xf32>,
    return
  }
  func.func @transform_0(%arg0: i32) -> (i32, i32) {
    %c0_i32 = arith.constant 0 : i32
    %c0_i32_0 = arith.constant 0 : i32
    return %arg0, %c0_i32 : i32, i32
  }
  func.func @transform_1(%arg0: i32) -> (i32, i32) {
    %c0_i32 = arith.constant 0 : i32
    %c0_i32_0 = arith.constant 0 : i32
    %c0_i32_1 = arith.constant 0 : i32
    return %c0_i32, %c0_i32_0 : i32, i32
  }
  func.func @transform_2(%arg0: i32) -> (i32, i32) {
    %c0_i32 = arith.constant 0 : i32
    %c0_i32_0 = arith.constant 0 : i32
    %c0_i32_1 = arith.constant 0 : i32
    return %c0_i32, %c0_i32_0 : i32, i32
  }
  func.func @transform_3(%arg0: i32) -> (i32, i32) {
    %c0_i32 = arith.constant 0 : i32
    %c0_i32_0 = arith.constant 0 : i32
    %c0_i32_1 = arith.constant 0 : i32
    return %c0_i32, %c0_i32_0 : i32, i32
  }
  func.func @transform_4(%arg0: i32) -> (i32, i32) {
    %c0_i32 = arith.constant 0 : i32
    %c0_i32_0 = arith.constant 0 : i32
    %c0_i32_1 = arith.constant 0 : i32
    return %c0_i32, %c0_i32_0 : i32, i32
  }
  func.func @transform_5(%arg0: i32) -> (i32, i32) {
    %c0_i32 = arith.constant 0 : i32
    %c0_i32_0 = arith.constant 0 : i32
    %c0_i32_1 = arith.constant 0 : i32
    return %c0_i32, %c0_i32_0 : i32, i32
  }
  func.func @transform_6(%arg0: i32) -> (i32, i32) {
    %c0_i32 = arith.constant 0 : i32
    %c0_i32_0 = arith.constant 0 : i32
    %c0_i32_1 = arith.constant 0 : i32
    return %c0_i32, %c0_i32_0 : i32, i32
  }
  func.func @transform_7(%arg0: i32) -> (i32, i32) {
    %c0_i32 = arith.constant 0 : i32
    %c0_i32_0 = arith.constant 0 : i32
    %c0_i32_1 = arith.constant 0 : i32
    return %c0_i32, %c0_i32_0 : i32, i32
  }
  func.func @transform_8(%arg0: i32) -> (i32, i32) {
    %c0_i32 = arith.constant 0 : i32
    %c0_i32_0 = arith.constant 0 : i32
    %c0_i32_1 = arith.constant 0 : i32
    return %c0_i32, %c0_i32_0 : i32, i32
  }
  func.func @transform_9(%arg0: i32) -> (i32, i32) {
    %c0_i32 = arith.constant 0 : i32
    %c0_i32_0 = arith.constant 0 : i32
    %c0_i32_1 = arith.constant 0 : i32
    return %c0_i32, %c0_i32_0 : i32, i32
  }
  func.func @transform_10(%arg0: i32) -> (i32, i32) {
    %c0_i32 = arith.constant 0 : i32
    %c0_i32_0 = arith.constant 0 : i32
    %c0_i32_1 = arith.constant 0 : i32
    return %c0_i32, %c0_i32_0 : i32, i32
  }
  func.func @transform_11(%arg0: i32) -> (i32, i32) {
    %c0_i32 = arith.constant 0 : i32
    %c0_i32_0 = arith.constant 0 : i32
    %c0_i32_1 = arith.constant 0 : i32
    return %c0_i32, %c0_i32_0 : i32, i32
  }
  func.func @transform_12(%arg0: i32) -> (i32, i32) {
    %c0_i32 = arith.constant 0 : i32
    %c0_i32_0 = arith.constant 0 : i32
    %c0_i32_1 = arith.constant 0 : i32
    return %c0_i32, %c0_i32_0 : i32, i32
  }
  func.func @transform_13(%arg0: i32) -> (i32, i32) {
    %c0_i32 = arith.constant 0 : i32
    %c0_i32_0 = arith.constant 0 : i32
    %c0_i32_1 = arith.constant 0 : i32
    return %c0_i32, %c0_i32_0 : i32, i32
  }
  func.func @transform_14(%arg0: i32) -> (i32, i32) {
    %c0_i32 = arith.constant 0 : i32
    %c0_i32_0 = arith.constant 0 : i32
    %c0_i32_1 = arith.constant 0 : i32
    return %c0_i32, %c0_i32_0 : i32, i32
  }
  func.func @transform_15(%arg0: i32) -> (i32, i32) {
    %c0_i32 = arith.constant 0 : i32
    %c0_i32_0 = arith.constant 0 : i32
    %c0_i32_1 = arith.constant 0 : i32
    return %c0_i32, %c0_i32_0 : i32, i32
  }
  func.func @transform_16(%arg0: i32) -> (i32, i32) {
    %c0_i32 = arith.constant 0 : i32
    %c0_i32_0 = arith.constant 0 : i32
    %c0_i32_1 = arith.constant 0 : i32
    return %c0_i32, %c0_i32_0 : i32, i32
  }
  func.func @transform_17(%arg0: i32) -> (i32, i32) {
    %c0_i32 = arith.constant 0 : i32
    %c0_i32_0 = arith.constant 0 : i32
    return %arg0, %c0_i32 : i32, i32
  }
}

</mosaic_0001>

<bundles_post_ra>
// kernel: tpu_custom_call.1
= control target key start
LH: loop header
LB: loop body
LE: loop exit
PB: predicated region body
PF: predicated region fallthrough
CT: control target
= control target key end

     0   :  { %s6471_s0 = inlined_call_operand.vmem [shape: bf16[128,288], index: 0, kind: input, shape index: {}]   ;;  %s6472_s1 = inlined_call_operand.vmem [shape: bf16[288,256], index: 1, kind: input, shape index: {}]   ;;  %s6473_s2 = inlined_call_operand.vmem [shape: f32[1,256], index: 2, kind: input, shape index: {}]   ;;  %s6474_s3 = inlined_call_operand.hbm [shape: bf16[256,256], index: 3, kind: input, shape index: {}]   ;;  %s6475_s4 = inlined_call_operand.vmem [shape: f32[1,256], index: 4, kind: input, shape index: {}]   ;;  %s6476_s5 = inlined_call_operand.hbm [shape: bf16[256,256], index: 5, kind: input, shape index: {}]   ;;  %s6477_s6 = inlined_call_operand.vmem [shape: f32[1,256], index: 6, kind: input, shape index: {}]   ;;  %s6478_s7 = inlined_call_operand.hbm [shape: bf16[256,256], index: 7, kind: input, shape index: {}]   ;;  %s6479_s8 = inlined_call_operand.vmem [shape: f32[1,256], index: 8, kind: input, shape index: {}]   ;;  %s6480_s9 = inlined_call_operand.hbm [shape: bf16[256,256], index: 9, kind: input, shape index: {}]   ;;  %s6481_s10 = inlined_call_operand.vmem [shape: f32[1,256], index: 10, kind: input, shape index: {}]   ;;  %s6482_s11 = inlined_call_operand.hbm [shape: bf16[256,256], index: 11, kind: input, shape index: {}]   ;;  %s6483_s12 = inlined_call_operand.vmem [shape: f32[1,256], index: 12, kind: input, shape index: {}]   ;;  %s6484_s13 = inlined_call_operand.hbm [shape: bf16[256,256], index: 13, kind: input, shape index: {}]   ;;  %s6485_s14 = inlined_call_operand.vmem [shape: f32[1,256], index: 14, kind: input, shape index: {}]   ;;  %s6486_s15 = inlined_call_operand.vmem [shape: f32[1,256], index: 15, kind: input, shape index: {}]   ;;  %s6487_s16 = inlined_call_operand.vmem [shape: f32[1,2], index: 16, kind: input, shape index: {}]   ;;  %s6488_s17 = inlined_call_operand.vmem [shape: f32[128,2], index: 17, kind: output, shape index: {}]  }
   0x1   :  { %6491 = sst [smem:[#allocation16_spill]] %s6471_s0 }
   0x2   :  { %6492 = sst [smem:[#allocation17_spill]] %s6472_s1 }
   0x3   :  { %22 = vsyncpa [#allocation3], 0 }
   0x4   :  { %23 = vsyncpa [#allocation5], 0 }
   0x5   :  { %24 = vsyncpa [#allocation8], 0 }
   0x6   :  { %25 = vsyncpa [#allocation11], 0  ;;  %s51_s26 = sshll.u32 %s6476_s5, 4  ;;  %s5365_s27 = smov [#allocation4]   ;;  %s52_s26 = int_to_ptr.hbm [resolvable:$true] %s51_s26 }
   0x7   :  { %s53_s28 = sshll.u32 %s5365_s27, 4  ;;  %s81_s30 = sshll.u32 %s6480_s9, 4  ;;  %s54_s28 = int_to_ptr.vmem [resolvable:$true] %s53_s28  ;;  %s82_s30 = int_to_ptr.hbm [resolvable:$true] %s81_s30 }
   0x8   :  { %s5366_s18 = smov 128   ;;  %s5367_s19 = smov 8  }
   0x9   :  { %59 = dma.hbm_to_vmem [thread:$0]  %s52_s26, 4096, %s54_s28, [#allocation5], %s5366_s18, %s5366_s18, %s5367_s19  }
   0xa   :  { %s5368_s1 = smov [#allocation7]   ;;  %s36_s5 = sshll.u32 %s6474_s3, 4  ;;  %s37_s5 = int_to_ptr.hbm [resolvable:$true] %s36_s5 }
   0xb   :  { %s83_s20 = sshll.u32 %s5368_s1, 4  ;;  %s66_s24 = sshll.u32 %s6478_s7, 4  ;;  %s84_s20 = int_to_ptr.vmem [resolvable:$true] %s83_s20  ;;  %s67_s24 = int_to_ptr.hbm [resolvable:$true] %s66_s24 }
   0xc   :  { %89 = dma.hbm_to_vmem [thread:$0]  %s82_s30, 4096, %s84_s20, [#allocation8], %s5366_s18, %s5366_s18, %s5367_s19  }
   0xd   :  { %s5369_s25 = smov [#allocation2]   ;;  %s5370_s26 = smov [#allocation6]  }
   0xe   :  { %s38_s27 = sshll.u32 %s5369_s25, 4  ;;  %s68_s3 = sshll.u32 %s5370_s26, 4  ;;  %s39_s27 = int_to_ptr.vmem [resolvable:$true] %s38_s27  ;;  %s69_s3 = int_to_ptr.vmem [resolvable:$true] %s68_s3 }
   0xf   :  { %44 = dma.hbm_to_vmem [thread:$0]  %s37_s5, 4096, %s39_s27, [#allocation3], %s5366_s18, %s5366_s18, %s5367_s19  }
  0x10   :  { %s96_s0 = sshll.u32 %s6482_s11, 4  ;;  %s111_s1 = sshll.u32 %s6484_s13, 4  ;;  %s97_s0 = int_to_ptr.hbm [resolvable:$true] %s96_s0  ;;  %s112_s1 = int_to_ptr.hbm [resolvable:$true] %s111_s1 }
  0x11   :  { %74 = dma.hbm_to_vmem [thread:$0]  %s67_s24, 4096, %s69_s3, [#allocation5], %s5366_s18, %s5366_s18, %s5367_s19  }
  0x12   :  { %s5371_s20 = smov [#allocation9]   ;;  %s5372_s22 = smov [#allocation10]  }
  0x13   :  { %s98_s21 = sshll.u32 %s5371_s20, 4  ;;  %s113_s11 = sshll.u32 %s5372_s22, 4  ;;  %s99_s21 = int_to_ptr.vmem [resolvable:$true] %s98_s21  ;;  %s114_s11 = int_to_ptr.vmem [resolvable:$true] %s113_s11 }
  0x14   :  { %104 = dma.hbm_to_vmem [thread:$0]  %s97_s0, 4096, %s99_s21, [#allocation8], %s5366_s18, %s5366_s18, %s5367_s19  }
  0x15   :  { %119 = dma.hbm_to_vmem [thread:$0]  %s112_s1, 4096, %s114_s11, [#allocation11], %s5366_s18, %s5366_s18, %s5367_s19  }
  0x16   :  { %5357 = dma.done.wait [#allocation3], 4096  }
  0x17   :  { %5358 = vsyncadd [#allocation3], 4294963200 }
  0x18   :  { %5359 = dma.done.wait [#allocation5], 8192  }
  0x19   :  { %5360 = vsyncadd [#allocation5], 4294959104 }
  0x1a   :  { %5361 = dma.done.wait [#allocation8], 8192  }
  0x1b   :  { %5362 = vsyncadd [#allocation8], 4294959104 }
  0x1c   :  { %5363 = dma.done.wait [#allocation11], 4096  }
  0x1d   :  { %5364 = vsyncadd [#allocation11], 4294963200  ;;  %s6493_s9 = sld [smem:[#allocation17_spill]]  ;;  %vm525_vm0 = vcmask 261120   ;;  %vm3893_vm2 = vcmask 15360  }
  0x1e   :  { %s6494_s22 = sld [smem:[#allocation16_spill]] }
  0x23   :  { %v4072_v0 = vld [vmem:[%s6493_s9 + $0x70] sm:$0xf]  ;;  %v4981_v1 = vld [vmem:[%s6493_s9 + $0x74] sm:$0xf0]  ;;  %v4064_v5 = vld [vmem:[%s6493_s9 + $0x60] sm:$0xf] }
  0x24   :  { %v4152_v2 = vld [vmem:[%s6493_s9 + $0x110] sm:$0xf]  ;;  %v4073_v3 = vor.u32 %v4981_v1, %v4072_v0  ;;  %v5001_v4 = vld [vmem:[%s6493_s9 + $0x114] sm:$0xf0]  ;;  %v4979_v6 = vld [vmem:[%s6493_s9 + $0x64] sm:$0xf0] }
  0x25   :  { %v4153_v7 = vor.u32 %v5001_v4, %v4152_v2  ;;  %v4144_v8 = vld [vmem:[%s6493_s9 + $0x100] sm:$0xf]  ;;  %v4999_v9 = vld [vmem:[%s6493_s9 + $0x104] sm:$0xf0]  ;;  %v4065_v10 = vor.u32 %v4979_v6, %v4064_v5  ;;  %v4944_v12 = vld [vmem:[%s6494_s22 + $0x10] sm:$0xf0] }
  0x26   :  { %550 = vmatpush.bf16.msra.mxu0 %v4073_v3  ;;  %5194 = vmatpush.bf16.msra.mxu1 %v4073_v3  ;;  %v3928_v11 = vld [vmem:[%s6494_s22 + $0x8] sm:$0xf]  ;;  %v4145_v13 = vor.u32 %v4999_v9, %v4144_v8  ;;  %v4056_v14 = vld [vmem:[%s6493_s9 + $0x50] sm:$0xf]  ;;  %v4977_v15 = vld [vmem:[%s6493_s9 + $0x54] sm:$0xf0] }
  0x27   :  { %654 = vmatpush.bf16.msra.mxu2 %v4153_v7  ;;  %v4996_v16 = vld [vmem:[%s6493_s9 + $0xf4] sm:$0xf]  ;;  %5202 = vmatpush.bf16.msra.mxu3 %v4153_v7  ;;  %v4138_v17 = vld [vmem:[%s6493_s9 + $0xf8] sm:$0xf0]  ;;  %v5541_v19 = vor.u32 %v4944_v12, %v3928_v11  ;;  %v4057_v20 = vor.u32 %v4977_v15, %v4056_v14  ;;  %v4048_v21 = vld [vmem:[%s6493_s9 + $0x40] sm:$0xf] }
  0x28   :  { %v4141_v18 = vor.u32 %v4996_v16, %v4138_v17  ;;  %v4975_v22 = vld [vmem:[%s6493_s9 + $0x44] sm:$0xf0]  ;;  %v4994_v23 = vld [vmem:[%s6493_s9 + $0xe4] sm:$0xf]  ;;  %v4130_v24 = vld [vmem:[%s6493_s9 + $0xe8] sm:$0xf0] }
  0x29   :  { %v4133_v25 = vor.u32 %v4994_v23, %v4130_v24  ;;  %v4049_v26 = vor.u32 %v4975_v22, %v4048_v21  ;;  %v4040_v27 = vld [vmem:[%s6493_s9 + $0x30] sm:$0xf]  ;;  %v4992_v28 = vld [vmem:[%s6493_s9 + $0xd4] sm:$0xf]  ;;  %v4122_v29 = vld [vmem:[%s6493_s9 + $0xd8] sm:$0xf0] }
  0x2a   :  { %551 = vmatpush.bf16.msra.mxu0 %v4065_v10  ;;  %5195 = vmatpush.bf16.msra.mxu1 %v4065_v10  ;;  %v4973_v30 = vld [vmem:[%s6493_s9 + $0x34] sm:$0xf0]  ;;  %v3988_v31 = vld [vmem:[%s6494_s22 + $0x80] sm:$0xf]  ;;  %v4959_v32 = vld [vmem:[%s6494_s22 + $0x88] sm:$0xf0]  ;;  %v4125_v33 = vor.u32 %v4992_v28, %v4122_v29 }
  0x2b   :  { %655 = vmatpush.bf16.msra.mxu2 %v4145_v13  ;;  %5203 = vmatpush.bf16.msra.mxu3 %v4145_v13  ;;  %v5575_v34 = vor.u32 %v4959_v32, %v3988_v31  ;;  %v4980_v35 = vld [vmem:[%s6493_s9 + $0x74] sm:$0xf]  ;;  %v4041_v36 = vor.u32 %v4973_v30, %v4040_v27  ;;  %v4074_v37 = vld [vmem:[%s6493_s9 + $0x78] sm:$0xf0]  ;;  %v4990_v38 = vld [vmem:[%s6493_s9 + $0xc4] sm:$0xf] }
  0x2c   :  { %v4114_v39 = vld [vmem:[%s6493_s9 + $0xc8] sm:$0xf0]  ;;  %v4032_v40 = vld [vmem:[%s6493_s9 + $0x20] sm:$0xf]  ;;  %v4971_v41 = vld [vmem:[%s6493_s9 + $0x24] sm:$0xf0]  ;;  %v4077_v42 = vor.u32 %v4980_v35, %v4074_v37 }
  0x2d   :  { %v4117_v43 = vor.u32 %v4990_v38, %v4114_v39  ;;  %v4033_v44 = vor.u32 %v4971_v41, %v4032_v40  ;;  %v3940_v45 = vld [vmem:[%s6494_s22 + $0x20] sm:$0xf]  ;;  %v4947_v46 = vld [vmem:[%s6494_s22 + $0x28] sm:$0xf0]  ;;  %v4978_v47 = vld [vmem:[%s6493_s9 + $0x64] sm:$0xf] }
  0x2e   :  { %4158 = vmatmul.msk.bf16.vlgmr.msra.gmra.mxu2 %vm525_vm0, %v5541_v19  ;;  %552 = vmatpush.bf16.msra.mxu0 %v4057_v20  ;;  %v4024_v48 = vld [vmem:[%s6493_s9 + $0x10] sm:$0xf]  ;;  %v4969_v49 = vld [vmem:[%s6493_s9 + $0x14] sm:$0xf0]  ;;  %v4066_v50 = vld [vmem:[%s6493_s9 + $0x68] sm:$0xf0]  ;;  %v5615_v52 = vor.u32 %v4947_v46, %v3940_v45 }
  0x2f   :  { %746 = vmatpush.bf16.msrb.mxu2 %v4141_v18  ;;  %5196 = vmatpush.bf16.msra.mxu1 %v4057_v20  ;;  %v4069_v51 = vor.u32 %v4978_v47, %v4066_v50  ;;  %v4025_v53 = vor.u32 %v4969_v49, %v4024_v48  ;;  %v4016_v54 = vld [vmem:[%s6493_s9] sm:$0xf]  ;;  %v4967_v55 = vld [vmem:[%s6493_s9 + $0x4] sm:$0xf0]  ;;  %v4000_v56 = vld [vmem:[%s6494_s22 + $0x98] sm:$0xf] }
  0x30   :  { %4163 = vmatmul.msk.bf16.vlgmr.msra.gmra.mxu3 %vm525_vm0, %v5575_v34  ;;  %v4962_v57 = vld [vmem:[%s6494_s22 + $0xa0] sm:$0xf0]  ;;  %v3920_v58 = vld [vmem:[%s6494_s22] sm:$0xf]  ;;  %v5000_v59 = vld [vmem:[%s6493_s9 + $0x114] sm:$0xf]  ;;  %v4017_v0 = vor.u32 %v4967_v55, %v4016_v54 }
  0x31   :  { %697 = vmatpush.bf16.msrb.mxu3 %v4077_v42  ;;  %v4154_v60 = vld [vmem:[%s6493_s9 + $0x118] sm:$0xf0]  ;;  %v4943_v61 = vld [vmem:[%s6494_s22 + $0x8] sm:$0xf0]  ;;  %v4136_v62 = vld [vmem:[%s6493_s9 + $0xf0] sm:$0xf]  ;;  %v5649_v1 = vor.u32 %v4962_v57, %v4000_v56 }
  0x32   :  { %553 = vmatpush.bf16.msra.mxu0 %v4049_v26  ;;  %v4997_v63 = vld [vmem:[%s6493_s9 + $0xf4] sm:$0xf0]  ;;  %v4988_v2 = vld [vmem:[%s6493_s9 + $0xb4] sm:$0xf]  ;;  %v4106_v3 = vld [vmem:[%s6493_s9 + $0xb8] sm:$0xf0]  ;;  %v4157_v7 = vor.u32 %v5000_v59, %v4154_v60  ;;  %v5669_v12 = vor.u32 %v4943_v61, %v3920_v58 }
  0x33   :  { %747 = vmatpush.bf16.msrb.mxu2 %v4133_v25  ;;  %5197 = vmatpush.bf16.msra.mxu1 %v4049_v26  ;;  %v4976_v4 = vld [vmem:[%s6493_s9 + $0x54] sm:$0xf]  ;;  %v3968_v5 = vld [vmem:[%s6494_s22 + $0x60] sm:$0xf]  ;;  %v4955_v6 = vld [vmem:[%s6494_s22 + $0x68] sm:$0xf0]  ;;  %v4109_v8 = vor.u32 %v4988_v2, %v4106_v3  ;;  %v4137_v10 = vor.u32 %v4997_v63, %v4136_v62 }
  0x34   :  { %v4058_v9 = vld [vmem:[%s6493_s9 + $0x58] sm:$0xf0]  ;;  %v4128_v13 = vld [vmem:[%s6493_s9 + $0xe0] sm:$0xf]  ;;  %v4995_v14 = vld [vmem:[%s6493_s9 + $0xe4] sm:$0xf0]  ;;  %v5677_v15 = vor.u32 %v4955_v6, %v3968_v5 }
  0x35   :  { %698 = vmatpush.bf16.msrb.mxu3 %v4069_v51  ;;  %v4061_v11 = vor.u32 %v4976_v4, %v4058_v9  ;;  %v4129_v16 = vor.u32 %v4995_v14, %v4128_v13  ;;  %v4120_v17 = vld [vmem:[%s6493_s9 + $0xd0] sm:$0xf]  ;;  %v4993_v18 = vld [vmem:[%s6493_s9 + $0xd4] sm:$0xf0]  ;;  %v4950_v21 = vld [vmem:[%s6494_s22 + $0x40] sm:$0xf0] }
  0x36   :  { %554 = vmatpush.bf16.msra.mxu0 %v4041_v36  ;;  %v3952_v20 = vld [vmem:[%s6494_s22 + $0x38] sm:$0xf]  ;;  %v4974_v22 = vld [vmem:[%s6493_s9 + $0x44] sm:$0xf]  ;;  %v4050_v23 = vld [vmem:[%s6493_s9 + $0x48] sm:$0xf0]  ;;  %v4121_v26 = vor.u32 %v4993_v18, %v4120_v17 }
  0x37   :  { %748 = vmatpush.bf16.msrb.mxu2 %v4125_v33  ;;  %5198 = vmatpush.bf16.msra.mxu1 %v4041_v36  ;;  %v4986_v24 = vld [vmem:[%s6493_s9 + $0xa4] sm:$0xf]  ;;  %v4098_v25 = vld [vmem:[%s6493_s9 + $0xa8] sm:$0xf0]  ;;  %v4053_v27 = vor.u32 %v4974_v22, %v4050_v23  ;;  %v4972_v29 = vld [vmem:[%s6493_s9 + $0x34] sm:$0xf]  ;;  %v5719_v33 = vor.u32 %v4950_v21, %v3952_v20 }
  0x38   :  { %v4101_v28 = vor.u32 %v4986_v24, %v4098_v25  ;;  %v4112_v30 = vld [vmem:[%s6493_s9 + $0xc0] sm:$0xf]  ;;  %v4991_v31 = vld [vmem:[%s6493_s9 + $0xc4] sm:$0xf0]  ;;  %v4042_v32 = vld [vmem:[%s6493_s9 + $0x38] sm:$0xf0] }
  0x39   :  { %699 = vmatpush.bf16.msrb.mxu3 %v4061_v11  ;;  %v4045_v35 = vor.u32 %v4972_v29, %v4042_v32  ;;  %v4012_v36 = vld [vmem:[%s6494_s22 + $0xb0] sm:$0xf]  ;;  %v4965_v37 = vld [vmem:[%s6494_s22 + $0xb8] sm:$0xf0]  ;;  %v3932_v38 = vld [vmem:[%s6494_s22 + $0x18] sm:$0xf]  ;;  %v4113_v40 = vor.u32 %v4991_v31, %v4112_v30 }
  0x3a   :  { %555 = vmatpush.bf16.msra.mxu0 %v4033_v44  ;;  %v4946_v39 = vld [vmem:[%s6494_s22 + $0x20] sm:$0xf0]  ;;  %v3980_v41 = vld [vmem:[%s6494_s22 + $0x78] sm:$0xf]  ;;  %v5747_v45 = vor.u32 %v4965_v37, %v4012_v36  ;;  %v4146_v47 = vld [vmem:[%s6493_s9 + $0x108] sm:$0xf0] }
  0x3b   :  { %749 = vmatpush.bf16.msrb.mxu2 %v4117_v43  ;;  %5199 = vmatpush.bf16.msra.mxu1 %v4033_v44  ;;  %v4958_v42 = vld [vmem:[%s6494_s22 + $0x80] sm:$0xf0]  ;;  %v4104_v43 = vld [vmem:[%s6493_s9 + $0xb0] sm:$0xf]  ;;  %v4989_v44 = vld [vmem:[%s6493_s9 + $0xb4] sm:$0xf0]  ;;  %v3933_v59 = vor.u32 %v4946_v39, %v3932_v38 }
  0x3c   :  { %v4998_v46 = vld [vmem:[%s6493_s9 + $0x104] sm:$0xf]  ;;  %v4034_v50 = vld [vmem:[%s6493_s9 + $0x28] sm:$0xf0]  ;;  %v4984_v51 = vld [vmem:[%s6493_s9 + $0x94] sm:$0xf]  ;;  %v4105_v54 = vor.u32 %v4989_v44, %v4104_v43  ;;  %v5779_v62 = vor.u32 %v4958_v42, %v3980_v41 }
  0x3d   :  { %700 = vmatpush.bf16.msrb.mxu3 %v4053_v27  ;;  %v4970_v48 = vld [vmem:[%s6493_s9 + $0x24] sm:$0xf]  ;;  %v4149_v49 = vor.u32 %v4998_v46, %v4146_v47  ;;  %v4968_v57 = vld [vmem:[%s6493_s9 + $0x14] sm:$0xf]  ;;  %v4026_v58 = vld [vmem:[%s6493_s9 + $0x18] sm:$0xf0] }
  0x3e   :  { %4159 = vmatmul.msk.bf16.gmra.mxu2 %vm525_vm0, %v5615_v52  ;;  %556 = vmatpush.bf16.msra.mxu0 %v4025_v53  ;;  %v4037_v55 = vor.u32 %v4970_v48, %v4034_v50  ;;  %v4096_v60 = vld [vmem:[%s6493_s9 + $0xa0] sm:$0xf]  ;;  %v4987_v61 = vld [vmem:[%s6493_s9 + $0xa4] sm:$0xf0]  ;;  %v4029_v63 = vor.u32 %v4968_v57, %v4026_v58  ;;  %v3964_v2 = vld [vmem:[%s6494_s22 + $0x50] sm:$0xf] }
  0x3f   :  { %5200 = vmatpush.bf16.msra.mxu1 %v4025_v53  ;;  %750 = vmatpush.bf16.msrb.mxu2 %v4109_v8  ;;  %v4090_v53 = vld [vmem:[%s6493_s9 + $0x98] sm:$0xf0]  ;;  %v4088_v4 = vld [vmem:[%s6493_s9 + $0x90] sm:$0xf]  ;;  %v4985_v5 = vld [vmem:[%s6493_s9 + $0x94] sm:$0xf0] }
  0x40   :  { %4164 = vmatmul.msk.bf16.gmra.mxu3 %vm525_vm0, %v5649_v1  ;;  %v4093_v56 = vor.u32 %v4984_v51, %v4090_v53  ;;  %v4953_v3 = vld [vmem:[%s6494_s22 + $0x58] sm:$0xf0]  ;;  %v4966_v6 = vld [vmem:[%s6493_s9 + $0x4] sm:$0xf]  ;;  %v4082_v9 = vld [vmem:[%s6493_s9 + $0x88] sm:$0xf0] }
  0x41   :  { %701 = vmatpush.bf16.msrb.mxu3 %v4045_v35  ;;  %v4982_v8 = vld [vmem:[%s6493_s9 + $0x84] sm:$0xf]  ;;  %v4080_v14 = vld [vmem:[%s6493_s9 + $0x80] sm:$0xf]  ;;  %v5814_v17 = vor.u32 %v4953_v3, %v3964_v2  ;;  %v3944_v20 = vld [vmem:[%s6494_s22 + $0x30] sm:$0xf] }
  0x42   :  { %557 = vmatpush.bf16.msra.mxu0 %v4017_v0  ;;  %v4085_v13 = vor.u32 %v4982_v8, %v4082_v9  ;;  %v4949_v21 = vld [vmem:[%s6494_s22 + $0x38] sm:$0xf0]  ;;  %v3992_v22 = vld [vmem:[%s6494_s22 + $0x90] sm:$0xf]  ;;  %v4956_v27 = vld [vmem:[%s6494_s22 + $0x70] sm:$0xf0] }
  0x43   :  { %5201 = vmatpush.bf16.msra.mxu1 %v4017_v0  ;;  %751 = vmatpush.bf16.msrb.mxu2 %v4101_v28  ;;  %v4097_v0 = vor.u32 %v4987_v61, %v4096_v60  ;;  %v4961_v23 = vld [vmem:[%s6494_s22 + $0x98] sm:$0xf0]  ;;  %v3945_v24 = vor.u32 %v4949_v21, %v3944_v20  ;;  %v4952_v29 = vld [vmem:[%s6494_s22 + $0x50] sm:$0xf0]  ;;  %v4004_v30 = vld [vmem:[%s6494_s22 + $0xa8] sm:$0xf] }
  0x44   :  { %v5830_v25 = vor.u32 %v4961_v23, %v3992_v22  ;;  %v4964_v31 = vld [vmem:[%s6494_s22 + $0xb0] sm:$0xf0]  ;;  %v4234_v37 = vld [vmem:[#allocation2 + $0x78] sm:$0xf0]  ;;  %v4296_v38 = vld [vmem:[#allocation2 + $0xf0] sm:$0xf] }
  0x45   :  { %558 = vmatmul.bf16.vlgmr.msra.gmra.mxu0 %v5669_v12  ;;  %702 = vmatpush.bf16.msrb.mxu3 %v4037_v55  ;;  %v5856_v35 = vor.u32 %v4964_v31, %v4004_v30  ;;  %v5016_v36 = vld [vmem:[#allocation2 + $0x74] sm:$0xf]  ;;  %v4942_v39 = vld [vmem:[%s6494_s22 + $0x4] sm:$0xf]  ;;  %v5033_v42 = vld [vmem:[#allocation2 + $0xf4] sm:$0xf0] }
  0x46   :  { %801 = vmatpush.bf16.msrb.mxu0 %v4157_v7  ;;  %578 = vmatmul.bf16.vlgmr.msra.gmra.mxu1 %v5677_v15  ;;  %v4018_v7 = vld [vmem:[%s6493_s9 + $0x8] sm:$0xf0]  ;;  %v4237_v41 = vor.u32 %v5016_v36, %v4234_v37  ;;  %v4297_v43 = vor.u32 %v5033_v42, %v4296_v38  ;;  %v5032_v46 = vld [vmem:[#allocation2 + $0xf4] sm:$0xf]  ;;  %v4298_v47 = vld [vmem:[#allocation2 + $0xf8] sm:$0xf0] }
  0x47   :  { %599 = vmatpush.bf16.msrb.mxu1 %v4137_v10  ;;  %752 = vmatpush.bf16.msrb.mxu2 %v4093_v56  ;;  %v4089_v10 = vor.u32 %v4985_v5, %v4088_v4  ;;  %v4021_v11 = vor.u32 %v4966_v6, %v4018_v7  ;;  %v4232_v48 = vld [vmem:[#allocation2 + $0x70] sm:$0xf]  ;;  %v5017_v50 = vld [vmem:[#allocation2 + $0x74] sm:$0xf0]  ;;  %v5014_v53 = vld [vmem:[#allocation2 + $0x64] sm:$0xf] }
  0x48   :  { %v4233_v51 = vor.u32 %v5017_v50, %v4232_v48  ;;  %v4288_v55 = vld [vmem:[#allocation2 + $0xe0] sm:$0xf]  ;;  %v4945_v56 = vld [vmem:[%s6494_s22 + $0x1c] sm:$0xf]  ;;  %v3934_v57 = vld [vmem:[%s6494_s22 + $0x24] sm:$0xf0] }
  0x49   :  { %703 = vmatpush.bf16.msrb.mxu3 %v4029_v63  ;;  %v3937_v61 = vor.u32 %v4945_v56, %v3934_v57  ;;  %v4290_v63 = vld [vmem:[#allocation2 + $0xe8] sm:$0xf0]  ;;  %v5015_v3 = vld [vmem:[#allocation2 + $0x64] sm:$0xf0]  ;;  %v5012_v5 = vld [vmem:[#allocation2 + $0x54] sm:$0xf] }
  0x4a   :  { %802 = vmatpush.bf16.msrb.mxu0 %v4149_v49  ;;  %v4301_v49 = vor.u32 %v5032_v46, %v4298_v47  ;;  %v4218_v6 = vld [vmem:[#allocation2 + $0x58] sm:$0xf0]  ;;  %v4948_v7 = vld [vmem:[%s6494_s22 + $0x34] sm:$0xf]  ;;  %v3946_v8 = vld [vmem:[%s6494_s22 + $0x3c] sm:$0xf0] }
  0x4b   :  { %600 = vmatpush.bf16.msrb.mxu1 %v4129_v16  ;;  %v4983_v16 = vld [vmem:[%s6493_s9 + $0x84] sm:$0xf0]  ;;  %753 = vmatpush.bf16.msrb.mxu2 %v4085_v13  ;;  %v4221_v9 = vor.u32 %v5012_v5, %v4218_v6  ;;  %v3949_v13 = vor.u32 %v4948_v7, %v3946_v8  ;;  %v5013_v21 = vld [vmem:[#allocation2 + $0x54] sm:$0xf0]  ;;  %v5010_v23 = vld [vmem:[#allocation2 + $0x44] sm:$0xf] }
  0x4c   :  { %v4081_v18 = vor.u32 %v4983_v16, %v4080_v14  ;;  %v4282_v16 = vld [vmem:[#allocation2 + $0xd8] sm:$0xf0]  ;;  %v4272_v30 = vld [vmem:[#allocation2 + $0xc0] sm:$0xf]  ;;  %v5011_v38 = vld [vmem:[#allocation2 + $0x44] sm:$0xf0] }
  0x4d   :  { %704 = vmatpush.bf16.msrb.mxu3 %v4021_v11  ;;  %v5029_v11 = vld [vmem:[#allocation2 + $0xd4] sm:$0xf0]  ;;  %v4208_v36 = vld [vmem:[#allocation2 + $0x40] sm:$0xf]  ;;  %v5008_v42 = vld [vmem:[#allocation2 + $0x34] sm:$0xf] }
  0x4e   :  { %4160 = vmatmul.msk.bf16.gmra.mxu2 %vm525_vm0, %v5719_v33  ;;  %1269 = vmatpush.bf16.msra.mxu0 %v4301_v49  ;;  %v3970_v46 = vld [vmem:[%s6494_s22 + $0x6c] sm:$0xf0]  ;;  %v5908_v50 = vld [vmem:[%s6473_s2] sm:$0x3]  ;;  %v4957_v5 = vld [vmem:[%s6494_s22 + $0x7c] sm:$0xf] }
  0x4f   :  { %601 = vmatpush.bf16.msrb.mxu1 %v4121_v26  ;;  %v3976_v26 = vld [vmem:[%s6494_s22 + $0x68] sm:$0xf]  ;;  %1220 = vmatpush.bf16.msra.mxu2 %v4237_v41  ;;  %v4264_v49 = vld [vmem:[#allocation2 + $0xb0] sm:$0xf] }
  0x50   :  { %4165 = vmatmul.msk.bf16.gmra.mxu3 %vm525_vm0, %v5747_v45  ;;  %v5840_v28 = vor.u32 %v4956_v27, %v3976_v26  ;;  %v4951_v26 = vld [vmem:[%s6494_s22 + $0x4c] sm:$0xf]  ;;  %v3958_v27 = vld [vmem:[%s6494_s22 + $0x54] sm:$0xf0]  ;;  %v4200_v56 = vld [vmem:[#allocation2 + $0x30] sm:$0xf] }
  0x51   :  { %1171 = vmatpush.bf16.msra.mxu3 %v4297_v43  ;;  %v4202_v43 = vld [vmem:[#allocation2 + $0x38] sm:$0xf0] }
  0x52   :  { %v4205_v47 = vor.u32 %v5008_v42, %v4202_v43 }
  0x53   :  { %602 = vmatpush.bf16.msrb.mxu1 %v4113_v40  ;;  %v3922_v40 = vld [vmem:[%s6494_s22 + $0xc] sm:$0xf0] }
  0x54   :  { %v3925_v44 = vor.u32 %v4942_v39, %v3922_v40  ;;  %v4209_v39 = vor.u32 %v5011_v38, %v4208_v36  ;;  %v5021_v38 = vld [vmem:[#allocation2 + $0x94] sm:$0xf0] }
  0x55   :  { %563 = vmatmul.bf16.gmra.mxu0 %v3933_v59 }
  0x56   :  { %583 = vmatmul.bf16.gmra.mxu1 %v5779_v62 }
  0x57   :  { %603 = vmatpush.bf16.msrb.mxu1 %v4105_v54  ;;  %v4226_v54 = vld [vmem:[#allocation2 + $0x68] sm:$0xf0] }
  0x58   :  { %v4229_v58 = vor.u32 %v5014_v53, %v4226_v54  ;;  %v5024_v54 = vld [vmem:[#allocation2 + $0xb4] sm:$0xf] }
  0x5a   :  { %1221 = vmatpush.bf16.msra.mxu2 %v4229_v58  ;;  %v5009_v58 = vld [vmem:[#allocation2 + $0x34] sm:$0xf0] }
  0x5b   :  { %604 = vmatpush.bf16.msrb.mxu1 %v4097_v0  ;;  %v4224_v0 = vld [vmem:[#allocation2 + $0x60] sm:$0xf] }
  0x5c   :  { %v4225_v4 = vor.u32 %v5015_v3, %v4224_v0  ;;  %v5006_v3 = vld [vmem:[#allocation2 + $0x24] sm:$0xf] }
  0x5e   :  { %4161 = vmatmul.msk.bf16.gmra.mxu2 %vm525_vm0, %v5814_v17 }
  0x5f   :  { %605 = vmatpush.bf16.msrb.mxu1 %v4089_v10  ;;  %1222 = vmatpush.bf16.msra.mxu2 %v4221_v9  ;;  %v4280_v10 = vld [vmem:[#allocation2 + $0xd0] sm:$0xf] }
  0x60   :  { %705 = vmatmul.bf16.vlgmr.msrb.gmra.mxu3 %v5669_v12  ;;  %v3956_v12 = vld [vmem:[%s6494_s22 + $0x48] sm:$0xf]  ;;  %v4281_v14 = vor.u32 %v5029_v11, %v4280_v10  ;;  %v4256_v10 = vld [vmem:[#allocation2 + $0xa0] sm:$0xf] }
  0x61   :  { %v3957_v32 = vor.u32 %v4952_v29, %v3956_v12  ;;  %v3961_v29 = vor.u32 %v4951_v26, %v3958_v27  ;;  %v5023_v11 = vld [vmem:[#allocation2 + $0xa4] sm:$0xf0] }
  0x63   :  { %606 = vmatpush.bf16.msrb.mxu1 %v4081_v18  ;;  %v4216_v18 = vld [vmem:[#allocation2 + $0x50] sm:$0xf] }
  0x64   :  { %v4217_v22 = vor.u32 %v5013_v21, %v4216_v18  ;;  %v4192_v18 = vld [vmem:[#allocation2 + $0x20] sm:$0xf]  ;;  %v5007_v21 = vld [vmem:[#allocation2 + $0x24] sm:$0xf0] }
  0x65   :  { %568 = vmatmul.bf16.gmra.mxu0 %v3945_v24 }
  0x66   :  { %588 = vmatmul.bf16.gmra.mxu1 %v5830_v25 }
  0x67   :  { %1122 = vmatpush.bf16.msra.mxu1 %v4233_v51 }
  0x6b   :  { %1123 = vmatpush.bf16.msra.mxu1 %v4225_v4  ;;  %v4194_v4 = vld [vmem:[#allocation2 + $0x28] sm:$0xf0] }
  0x6c   :  { %v4197_v6 = vor.u32 %v5006_v3, %v4194_v4  ;;  %v5002_v4 = vld [vmem:[#allocation2 + $0x4] sm:$0xf] }
  0x6e   :  { %4162 = vmatmul.msk.bf16.gmra.mxu2 %vm525_vm0, %v5840_v28 }
  0x6f   :  { %1124 = vmatpush.bf16.msra.mxu1 %v4217_v22  ;;  %v4193_v22 = vor.u32 %v5007_v21, %v4192_v18  ;;  %v4176_v18 = vld [vmem:[#allocation2] sm:$0xf] }
  0x70   :  { %710 = vmatmul.bf16.gmra.mxu3 %v3933_v59  ;;  %v5031_v59 = vld [vmem:[#allocation2 + $0xe4] sm:$0xf0] }
  0x71   :  { %v4289_v60 = vor.u32 %v5031_v59, %v4288_v55  ;;  %v4266_v55 = vld [vmem:[#allocation2 + $0xb8] sm:$0xf0]  ;;  %v5913_v59 = vperm.slane %v5908_v50, 0 }
  0x72   :  { %v4269_v57 = vor.u32 %v5024_v54, %v4266_v55 }
  0x73   :  { %1172 = vmatpush.bf16.msra.mxu3 %v4289_v60  ;;  %1125 = vmatpush.bf16.msra.mxu1 %v4209_v39  ;;  %v4201_v60 = vor.u32 %v5009_v58, %v4200_v56  ;;  %v5020_v39 = vld [vmem:[#allocation2 + $0x94] sm:$0xf]  ;;  %v4006_v58 = vld [vmem:[%s6494_s22 + $0xb4] sm:$0xf0] }
  0x75   :  { %573 = vmatmul.bf16.gmra.mxu0 %v3957_v32 }
  0x76   :  { %593 = vmatmul.bf16.gmra.mxu1 %v5856_v35 }
  0x77   :  { %1173 = vmatpush.bf16.msra.mxu3 %v4281_v14  ;;  %1126 = vmatpush.bf16.msra.mxu1 %v4201_v60  ;;  %v4257_v14 = vor.u32 %v5023_v11, %v4256_v10  ;;  %v5019_v10 = vld [vmem:[#allocation2 + $0x84] sm:$0xf0]  ;;  %v5018_v11 = vld [vmem:[#allocation2 + $0x84] sm:$0xf] }
  0x7b   :  { %1127 = vmatpush.bf16.msra.mxu1 %v4193_v22 }
  0x7e   :  { %754 = vmatmul.bf16.vlgmr.msrb.gmra.mxu2 %v3925_v44 }
  0x80   :  { %715 = vmatmul.bf16.gmra.mxu3 %v3945_v24  ;;  %v4210_v24 = vld [vmem:[#allocation2 + $0x48] sm:$0xf0] }
  0x81   :  { %v4213_v12 = vor.u32 %v5010_v23, %v4210_v24 }
  0x83   :  { %1223 = vmatpush.bf16.msra.mxu2 %v4213_v12 }
  0x85   :  { %4166 = vmatmul.msk.bf16.vlgmr.msrb.gmra.mxu0 %vm525_vm0, %v5541_v19  ;;  %v5030_v19 = vld [vmem:[#allocation2 + $0xe4] sm:$0xf] }
  0x86   :  { %607 = vmatmul.bf16.vlgmr.msrb.gmra.mxu1 %v3925_v44  ;;  %v4293_v2 = vor.u32 %v5030_v19, %v4290_v63  ;;  %v4954_v44 = vld [vmem:[%s6494_s22 + $0x64] sm:$0xf] }
  0x87   :  { %1224 = vmatpush.bf16.msra.mxu2 %v4205_v47 }
  0x88   :  { %1270 = vmatpush.bf16.msra.mxu0 %v4293_v2 }
  0x8b   :  { %1225 = vmatpush.bf16.msra.mxu2 %v4197_v6 }
  0x8e   :  { %759 = vmatmul.bf16.gmra.mxu2 %v3937_v61 }
  0x90   :  { %720 = vmatmul.bf16.gmra.mxu3 %v3957_v32  ;;  %v5026_v32 = vld [vmem:[#allocation2 + $0xc4] sm:$0xf] }
  0x95   :  { %4167 = vmatmul.msk.bf16.gmra.mxu0 %vm525_vm0, %v5615_v52  ;;  %v5028_v52 = vld [vmem:[#allocation2 + $0xd4] sm:$0xf] }
  0x96   :  { %612 = vmatmul.bf16.gmra.mxu1 %v3937_v61  ;;  %v4285_v20 = vor.u32 %v5028_v52, %v4282_v16  ;;  %v5022_v52 = vld [vmem:[#allocation2 + $0xa4] sm:$0xf]  ;;  %v4258_v16 = vld [vmem:[#allocation2 + $0xa8] sm:$0xf0] }
  0x98   :  { %1271 = vmatpush.bf16.msra.mxu0 %v4285_v20  ;;  %v4261_v20 = vor.u32 %v5022_v52, %v4258_v16  ;;  %v4242_v52 = vld [vmem:[#allocation2 + $0x88] sm:$0xf0] }
  0x99   :  { %v4245_v16 = vor.u32 %v5018_v11, %v4242_v52 }
  0x9e   :  { %764 = vmatmul.bf16.gmra.mxu2 %v3949_v13 }
  0xa0   :  { %725 = vmatmul.bf16.gmra.mxu3 %v5677_v15  ;;  %v5027_v15 = vld [vmem:[#allocation2 + $0xc4] sm:$0xf0] }
  0xa1   :  { %v4273_v31 = vor.u32 %v5027_v15, %v4272_v30  ;;  %v4186_v30 = vld [vmem:[#allocation2 + $0x18] sm:$0xf0]  ;;  %v4960_v15 = vld [vmem:[%s6494_s22 + $0x94] sm:$0xf] }
  0xa3   :  { %1174 = vmatpush.bf16.msra.mxu3 %v4273_v31 }
  0xa5   :  { %4168 = vmatmul.msk.bf16.gmra.mxu0 %vm525_vm0, %v5719_v33  ;;  %v4274_v33 = vld [vmem:[#allocation2 + $0xc8] sm:$0xf0] }
  0xa6   :  { %617 = vmatmul.bf16.gmra.mxu1 %v3949_v13  ;;  %v4277_v37 = vor.u32 %v5026_v32, %v4274_v33 }
  0xa8   :  { %1272 = vmatpush.bf16.msra.mxu0 %v4277_v37  ;;  %v4248_v37 = vld [vmem:[#allocation2 + $0x90] sm:$0xf] }
  0xa9   :  { %v4249_v43 = vor.u32 %v5021_v38, %v4248_v37  ;;  %v6004_v37 = vperm.slane %v5908_v50, 1 }
  0xac   :  { %1273 = vmatpush.bf16.msra.mxu0 %v4269_v57  ;;  %v4963_v57 = vld [vmem:[%s6494_s22 + $0xac] sm:$0xf] }
  0xad   :  { %v4009_v3 = vor.u32 %v4963_v57, %v4006_v58 }
  0xae   :  { %769 = vmatmul.bf16.gmra.mxu2 %v3961_v29 }
  0xb0   :  { %730 = vmatmul.bf16.gmra.mxu3 %v5779_v62  ;;  %v3973_v62 = vor.u32 %v4954_v44, %v3970_v46  ;;  %1274 = vmatpush.bf16.msra.mxu0 %v4261_v20  ;;  %v4250_v44 = vld [vmem:[#allocation2 + $0x98] sm:$0xf0]  ;;  %v4184_v46 = vld [vmem:[#allocation2 + $0x10] sm:$0xf]  ;;  %v5003_v20 = vld [vmem:[#allocation2 + $0x4] sm:$0xf0] }
  0xb1   :  { %v5890_v40 = vpop.f32.mrf.mxu2  ;;  %v4253_v47 = vor.u32 %v5020_v39, %v4250_v44  ;;  %v4177_v22 = vor.u32 %v5003_v20, %v4176_v18 }
  0xb3   :  { %v5895_v41 = vpop.f32.mrf.mxu3 }
  0xb4   :  { %1275 = vmatpush.bf16.msra.mxu0 %v4253_v47 }
  0xb5   :  { %4169 = vmatmul.msk.bf16.gmra.mxu0 %vm525_vm0, %v5814_v17  ;;  %v5025_v17 = vld [vmem:[#allocation2 + $0xb4] sm:$0xf0] }
  0xb6   :  { %622 = vmatmul.bf16.gmra.mxu1 %v3961_v29  ;;  %v4265_v53 = vor.u32 %v5025_v17, %v4264_v49  ;;  %v5004_v29 = vld [vmem:[#allocation2 + $0x14] sm:$0xf] }
  0xb7   :  { %v4189_v31 = vor.u32 %v5004_v29, %v4186_v30 }
  0xb8   :  { %1175 = vmatpush.bf16.msra.mxu3 %v4265_v53  ;;  %1276 = vmatpush.bf16.msra.mxu0 %v4245_v16 }
  0xb9   :  { %v5903_v48 = vpop.f32.mrf.mxu2  ;;  %1226 = vmatpush.bf16.msra.mxu2 %v4189_v31 }
  0xbb   :  { %v5910_v51 = vpop.f32.mrf.mxu3 }
  0xbc   :  { %1176 = vmatpush.bf16.msra.mxu3 %v4257_v14 }
  0xbe   :  { %774 = vmatmul.bf16.gmra.mxu2 %v3973_v62 }
  0xc0   :  { %735 = vmatmul.bf16.gmra.mxu3 %v5830_v25  ;;  %v3982_v25 = vld [vmem:[%s6494_s22 + $0x84] sm:$0xf0] }
  0xc1   :  { %v5915_v61 = vpop.f32.mrf.mxu2  ;;  %1177 = vmatpush.bf16.msra.mxu3 %v4249_v43 }
  0xc2   :  { %v5917_v19 = vpop.f32.mrf.mxu0 }
  0xc3   :  { %v579_v63 = vpop.f32.mrf.mxu1  ;;  %v5925_v2 = vpop.f32.mrf.mxu3 }
  0xc4   :  { %v5921_v0 = vadd.f32 %v579_v63, %v5913_v59 }
  0xc5   :  { %4170 = vmatmul.msk.bf16.gmra.mxu0 %vm525_vm0, %v5840_v28  ;;  %v3985_v28 = vor.u32 %v4957_v5, %v3982_v25  ;;  %v4178_v5 = vld [vmem:[#allocation2 + $0x8] sm:$0xf0] }
  0xc6   :  { %627 = vmatmul.bf16.gmra.mxu1 %v3973_v62  ;;  %v5005_v62 = vld [vmem:[#allocation2 + $0x14] sm:$0xf0] }
  0xc7   :  { %v4185_v49 = vor.u32 %v5005_v62, %v4184_v46 }
  0xc9   :  { %v5933_v7 = vpop.f32.mrf.mxu2  ;;  %1128 = vmatpush.bf16.msra.mxu1 %v4185_v49 }
  0xca   :  { %v5935_v8 = vpop.f32.mrf.mxu0 }
  0xcb   :  { %v5937_v9 = vpop.f32.mrf.mxu1  ;;  %v5939_v13 = vpop.f32.mrf.mxu3  ;;  %v562_v50 = vadd.f32 %v5935_v8, %v5913_v59 }
  0xcd   :  { %1129 = vmatpush.bf16.msra.mxu1 %v4177_v22 }
  0xce   :  { %779 = vmatmul.bf16.gmra.mxu2 %v3985_v28 }
  0xd0   :  { %740 = vmatmul.bf16.gmra.mxu3 %v5856_v35  ;;  %v3994_v35 = vld [vmem:[%s6494_s22 + $0x9c] sm:$0xf0] }
  0xd1   :  { %v5941_v23 = vpop.f32.mrf.mxu2 }
  0xd2   :  { %v5943_v24 = vpop.f32.mrf.mxu0 }
  0xd3   :  { %v584_v26 = vpop.f32.mrf.mxu1  ;;  %v5951_v12 = vpop.f32.mrf.mxu3 }
  0xd4   :  { %v5947_v27 = vadd.f32 %v584_v26, %v5913_v59 }
  0xd5   :  { %4171 = vmatmul.msk.bf16.gmra.mxu0 %vm525_vm0, %v5575_v34  ;;  %v3997_v34 = vor.u32 %v4960_v15, %v3994_v35 }
  0xd6   :  { %632 = vmatmul.bf16.gmra.mxu1 %v3985_v28  ;;  %v4240_v28 = vld [vmem:[#allocation2 + $0x80] sm:$0xf] }
  0xd7   :  { %v4241_v14 = vor.u32 %v5019_v10, %v4240_v28 }
  0xd9   :  { %v5959_v32 = vpop.f32.mrf.mxu2  ;;  %1178 = vmatpush.bf16.msra.mxu3 %v4241_v14 }
  0xda   :  { %v5961_v33 = vpop.f32.mrf.mxu0 }
  0xdb   :  { %v5963_v36 = vpop.f32.mrf.mxu1  ;;  %v5965_v42 = vpop.f32.mrf.mxu3 }
  0xde   :  { %784 = vmatmul.bf16.gmra.mxu2 %v3997_v34 }
  0xe1   :  { %v5967_v17 = vpop.f32.mrf.mxu2 }
  0xe2   :  { %v5969_v53 = vpop.f32.mrf.mxu0 }
  0xe3   :  { %v589_v54 = vpop.f32.mrf.mxu1  ;;  %v706_v56 = vpop.f32.mrf.mxu3 }
  0xe4   :  { %v5972_v55 = vadd.f32 %v589_v54, %v5913_v59  ;;  %v707_v39 = vadd.f32 %v706_v56, %v6004_v37 }
  0xe5   :  { %4172 = vmatmul.msk.bf16.gmra.mxu0 %vm525_vm0, %v5649_v1  ;;  %v4181_v1 = vor.u32 %v5002_v4, %v4178_v5 }
  0xe6   :  { %637 = vmatmul.bf16.gmra.mxu1 %v3997_v34 }
  0xe7   :  { %1227 = vmatpush.bf16.msra.mxu2 %v4181_v1 }
  0xe9   :  { %v5982_v60 = vpop.f32.mrf.mxu2 }
  0xea   :  { %v5984_v63 = vpop.f32.mrf.mxu0 }
  0xeb   :  { %v5986_v25 = vpop.f32.mrf.mxu1  ;;  %v708_v6 = vpop.f32.mrf.mxu3 }
  0xec   :  { %v709_v54 = vadd.f32 %v708_v6, %v6004_v37 }
  0xee   :  { %789 = vmatmul.bf16.gmra.mxu2 %v4009_v3 }
  0xf1   :  { %v5988_v21 = vpop.f32.mrf.mxu2 }
  0xf2   :  { %v5990_v26 = vpop.f32.mrf.mxu0 }
  0xf3   :  { %v594_v29 = vpop.f32.mrf.mxu1  ;;  %v711_v15 = vpop.f32.mrf.mxu3 }
  0xf4   :  { %v5993_v30 = vadd.f32 %v594_v29, %v5913_v59  ;;  %v712_v20 = vadd.f32 %v711_v15, %v6004_v37 }
  0xf5   :  { %4173 = vmatmul.msk.bf16.gmra.mxu0 %vm525_vm0, %v5747_v45  ;;  %v560_v45 = vadd.f32 %v5917_v19, %v5913_v59 }
  0xf6   :  { %642 = vmatmul.bf16.gmra.mxu1 %v4009_v3 }
  0xf9   :  { %v5997_v35 = vpop.f32.mrf.mxu2 }
  0xfa   :  { %v5999_v31 = vpop.f32.mrf.mxu0 }
  0xfb   :  { %v6001_v34 = vpop.f32.mrf.mxu1  ;;  %v713_v38 = vpop.f32.mrf.mxu3 }
 0x101   :  { %v755_v43 = vpop.f32.mrf.mxu2 }
 0x102   :  { %v804_v44 = vpop.f32.mrf.mxu0  ;;  %v756_v47 = vadd.f32 %v755_v43, %v707_v39  ;;  %v4424_v43 = vld [vmem:[#allocation4 + $0xf0] sm:$0xf] }
 0x103   :  { %v608_v46 = vpop.f32.mrf.mxu1  ;;  %v6009_v62 = vpop.f32.mrf.mxu3 }
 0x104   :  { %v609_v49 = vadd.f32 %v608_v46, %v560_v45  ;;  %v805_v57 = vadd.f32 %v804_v44, %v756_v47  ;;  %v5065_v44 = vld [vmem:[#allocation4 + $0xf4] sm:$0xf0]  ;;  %v4360_v46 = vld [vmem:[#allocation4 + $0x70] sm:$0xf] }
 0x105   :  { %v4425_v47 = vor.u32 %v5065_v44, %v4424_v43 }
 0x106   :  { %v658_v3 = vadd.f32 %v5890_v40, %v609_v49  ;;  %v845_v1 = vmul.f32 0.1, %v805_v57  ;;  %v5049_v49 = vld [vmem:[#allocation4 + $0x74] sm:$0xf0] }
 0x107   :  { %1645 = vmatpush.bf16.msrb.mxu3 %v4425_v47  ;;  %v4361_v15 = vor.u32 %v5049_v49, %v4360_v46 }
 0x108   :  { %v844_v19 = vmul.f32 0.1, %v658_v3  ;;  %v877_v6 = vmax.f32 %v805_v57, %v845_v1  ;;  %v565_v57 = vadd.f32 %v5943_v24, %v5913_v59  ;;  %v567_v24 = vadd.f32 %v5961_v33, %v5913_v59 }
 0x109   :  { %v757_v58 = vpop.f32.mrf.mxu2  ;;  %1596 = vmatpush.bf16.msrb.mxu1 %v4361_v15 }
 0x10a   :  { %v758_v56 = vadd.f32 %v757_v58, %v709_v54  ;;  %v806_v4 = vpop.f32.mrf.mxu0  ;;  %v876_v22 = vmax.f32 %v658_v3, %v844_v19  ;;  %v4362_v54 = vld [vmem:[#allocation4 + $0x78] sm:$0xf0] }
 0x10b   :  { %v610_v5 = vpop.f32.mrf.mxu1  ;;  %v6016_v52 = vpop.f32.mrf.mxu3 }
 0x10c   :  { %v611_v28 = vadd.f32 %v610_v5, %v562_v50  ;;  %v807_v10 = vadd.f32 %v806_v4, %v758_v56  ;;  %v714_v4 = vadd.f32 %v713_v38, %v6004_v37 }
 0x10e   :  { %v660_v11 = vadd.f32 %v5903_v48, %v611_v28  ;;  %v847_v14 = vmul.f32 0.1, %v807_v10  ;;  %v5048_v48 = vld [vmem:[#allocation4 + $0x74] sm:$0xf] }
 0x10f   :  { %v4365_v3 = vor.u32 %v5048_v48, %v4362_v54  ;;  %v4416_v48 = vld [vmem:[#allocation4 + $0xe0] sm:$0xf]  ;;  %v5063_v54 = vld [vmem:[#allocation4 + $0xe4] sm:$0xf0] }
 0x110   :  { %v846_v16 = vmul.f32 0.1, %v660_v11  ;;  %v879_v18 = vmax.f32 %v807_v10, %v847_v14  ;;  %v5064_v14 = vld [vmem:[#allocation4 + $0xf4] sm:$0xf]  ;;  %v4417_v15 = vor.u32 %v5063_v54, %v4416_v48 }
 0x111   :  { %v760_v8 = vpop.f32.mrf.mxu2  ;;  %1694 = vmatpush.bf16.msrb.mxu2 %v4365_v3  ;;  %v5046_v3 = vld [vmem:[#allocation4 + $0x64] sm:$0xf] }
 0x112   :  { %v878_v40 = vmax.f32 %v660_v11, %v846_v16  ;;  %v909_v29 = vpack.c.bf16 %v879_v18, %v877_v6  ;;  %v809_v39 = vpop.f32.mrf.mxu0  ;;  %v761_v50 = vadd.f32 %v760_v8, %v712_v20  ;;  %v4426_v6 = vld [vmem:[#allocation4 + $0xf8] sm:$0xf0]  ;;  %1646 = vmatpush.bf16.msrb.mxu3 %v4417_v15  ;;  %v4344_v15 = vld [vmem:[#allocation4 + $0x50] sm:$0xf] }
 0x113   :  { %v613_v45 = vpop.f32.mrf.mxu1  ;;  %v6022_v28 = vpop.f32.mrf.mxu3  ;;  %v4429_v18 = vor.u32 %v5064_v14, %v4426_v6 }
 0x114   :  { %v908_v58 = vpack.c.bf16 %v878_v40, %v876_v22  ;;  %1179 = vmatmul.bf16.vlgmr.msra.gmra.mxu3 %v909_v29  ;;  %1277 = vmatmul.bf16.vlgmr.msra.gmra.mxu0 %v909_v29  ;;  %v614_v56 = vadd.f32 %v613_v45, %v565_v57  ;;  %v810_v5 = vadd.f32 %v809_v39, %v761_v50  ;;  %v4352_v57 = vld [vmem:[#allocation4 + $0x60] sm:$0xf] }
 0x115   :  { %1743 = vmatpush.bf16.msrb.mxu0 %v4429_v18 }
 0x116   :  { %1130 = vmatmul.bf16.vlgmr.msra.gmra.mxu1 %v908_v58  ;;  %1228 = vmatmul.bf16.vlgmr.msra.gmra.mxu2 %v908_v58  ;;  %v663_v10 = vadd.f32 %v5915_v61, %v614_v56  ;;  %v849_v20 = vmul.f32 0.1, %v810_v5  ;;  %v717_v61 = vadd.f32 %v6009_v62, %v6004_v37  ;;  %v4354_v56 = vld [vmem:[#allocation4 + $0x68] sm:$0xf0] }
 0x118   :  { %v848_v22 = vmul.f32 0.1, %v663_v10  ;;  %v881_v39 = vmax.f32 %v810_v5, %v849_v20  ;;  %v5062_v20 = vld [vmem:[#allocation4 + $0xe4] sm:$0xf] }
 0x119   :  { %v762_v1 = vpop.f32.mrf.mxu2 }
 0x11a   :  { %v763_v19 = vadd.f32 %v762_v1, %v714_v4  ;;  %v811_v11 = vpop.f32.mrf.mxu0  ;;  %v880_v46 = vmax.f32 %v663_v10, %v848_v22  ;;  %v570_v4 = vadd.f32 %v5969_v53, %v5913_v59  ;;  %v572_v53 = vadd.f32 %v5984_v63, %v5913_v59 }
 0x11b   :  { %v615_v16 = vpop.f32.mrf.mxu1  ;;  %v6030_v50 = vpop.f32.mrf.mxu3 }
 0x11c   :  { %v616_v8 = vadd.f32 %v615_v16, %v567_v24  ;;  %v812_v38 = vadd.f32 %v811_v11, %v763_v19  ;;  %v4357_v24 = vor.u32 %v5046_v3, %v4354_v56  ;;  %v719_v19 = vadd.f32 %v6016_v52, %v6004_v37  ;;  %v5045_v56 = vld [vmem:[#allocation4 + $0x54] sm:$0xf0] }
 0x11e   :  { %v665_v40 = vadd.f32 %v5933_v7, %v616_v8  ;;  %v851_v29 = vmul.f32 0.1, %v812_v38  ;;  %v5047_v7 = vld [vmem:[#allocation4 + $0x64] sm:$0xf0]  ;;  %1695 = vmatpush.bf16.msrb.mxu2 %v4357_v24  ;;  %v4418_v8 = vld [vmem:[#allocation4 + $0xe8] sm:$0xf0] }
 0x11f   :  { %v4353_v1 = vor.u32 %v5047_v7, %v4352_v57  ;;  %v4421_v22 = vor.u32 %v5062_v20, %v4418_v8  ;;  %v4408_v57 = vld [vmem:[#allocation4 + $0xd0] sm:$0xf]  ;;  %v5060_v20 = vld [vmem:[#allocation4 + $0xd4] sm:$0xf]  ;;  %v4410_v8 = vld [vmem:[#allocation4 + $0xd8] sm:$0xf0] }
 0x120   :  { %v850_v43 = vmul.f32 0.1, %v665_v40  ;;  %v883_v44 = vmax.f32 %v812_v38, %v851_v29 }
 0x121   :  { %v765_v33 = vpop.f32.mrf.mxu2  ;;  %1597 = vmatpush.bf16.msrb.mxu1 %v4353_v1  ;;  %1744 = vmatpush.bf16.msrb.mxu0 %v4421_v22  ;;  %v4345_v1 = vor.u32 %v5045_v56, %v4344_v15  ;;  %v4413_v22 = vor.u32 %v5060_v20, %v4410_v8 }
 0x122   :  { %v882_v45 = vmax.f32 %v665_v40, %v850_v43  ;;  %v814_v47 = vpop.f32.mrf.mxu0  ;;  %v911_v49 = vpack.c.bf16 %v883_v44, %v881_v39  ;;  %v766_v5 = vadd.f32 %v765_v33, %v717_v61 }
 0x123   :  { %v618_v58 = vpop.f32.mrf.mxu1  ;;  %v726_v43 = vpop.f32.mrf.mxu3 }
 0x124   :  { %1184 = vmatmul.bf16.gmra.mxu3 %v911_v49  ;;  %1282 = vmatmul.bf16.gmra.mxu0 %v911_v49  ;;  %v910_v62 = vpack.c.bf16 %v882_v45, %v880_v46  ;;  %v619_v10 = vadd.f32 %v618_v58, %v570_v4  ;;  %v815_v11 = vadd.f32 %v814_v47, %v766_v5  ;;  %v5061_v58 = vld [vmem:[#allocation4 + $0xd4] sm:$0xf0]  ;;  %v5044_v4 = vld [vmem:[#allocation4 + $0x54] sm:$0xf] }
 0x125   :  { %v4409_v3 = vor.u32 %v5061_v58, %v4408_v57  ;;  %v575_v5 = vadd.f32 %v5990_v26, %v5913_v59  ;;  %1598 = vmatpush.bf16.msrb.mxu1 %v4345_v1  ;;  %v577_v26 = vadd.f32 %v5999_v31, %v5913_v59  ;;  %1745 = vmatpush.bf16.msrb.mxu0 %v4413_v22  ;;  %v4336_v57 = vld [vmem:[#allocation4 + $0x40] sm:$0xf] }
 0x126   :  { %1135 = vmatmul.bf16.gmra.mxu1 %v910_v62  ;;  %1233 = vmatmul.bf16.gmra.mxu2 %v910_v62  ;;  %v668_v6 = vadd.f32 %v5941_v23, %v619_v10  ;;  %v853_v40 = vmul.f32 0.1, %v815_v11  ;;  %v722_v23 = vadd.f32 %v6022_v28, %v6004_v37  ;;  %v727_v31 = vadd.f32 %v726_v43, %v6004_v37 }
 0x127   :  { %1647 = vmatpush.bf16.msrb.mxu3 %v4409_v3  ;;  %v5042_v3 = vld [vmem:[#allocation4 + $0x44] sm:$0xf] }
 0x128   :  { %v852_v52 = vmul.f32 0.1, %v668_v6  ;;  %v885_v33 = vmax.f32 %v815_v11, %v853_v40 }
 0x129   :  { %v767_v14 = vpop.f32.mrf.mxu2 }
 0x12a   :  { %v768_v16 = vadd.f32 %v767_v14, %v719_v19  ;;  %v816_v18 = vpop.f32.mrf.mxu0  ;;  %v884_v47 = vmax.f32 %v668_v6, %v852_v52  ;;  %v724_v19 = vadd.f32 %v6030_v50, %v6004_v37 }
 0x12b   :  { %v620_v38 = vpop.f32.mrf.mxu1  ;;  %v728_v11 = vpop.f32.mrf.mxu3 }
 0x12c   :  { %v621_v29 = vadd.f32 %v620_v38, %v572_v53  ;;  %v817_v39 = vadd.f32 %v816_v18, %v768_v16 }
 0x12e   :  { %v670_v44 = vadd.f32 %v5959_v32, %v621_v29  ;;  %v855_v61 = vmul.f32 0.1, %v817_v39  ;;  %v4346_v32 = vld [vmem:[#allocation4 + $0x58] sm:$0xf0] }
 0x12f   :  { %v4349_v24 = vor.u32 %v5044_v4, %v4346_v32 }
 0x130   :  { %v854_v46 = vmul.f32 0.1, %v670_v44  ;;  %v887_v63 = vmax.f32 %v817_v39, %v855_v61 }
 0x131   :  { %v770_v45 = vpop.f32.mrf.mxu2  ;;  %1696 = vmatpush.bf16.msrb.mxu2 %v4349_v24  ;;  %v582_v24 = vadd.f32 %v5937_v9, %v5913_v59 }
 0x132   :  { %v886_v49 = vmax.f32 %v670_v44, %v854_v46  ;;  %v819_v48 = vpop.f32.mrf.mxu0  ;;  %v913_v54 = vpack.c.bf16 %v887_v63, %v885_v33  ;;  %v771_v62 = vadd.f32 %v770_v45, %v722_v23 }
 0x133   :  { %v623_v7 = vpop.f32.mrf.mxu1  ;;  %v731_v63 = vpop.f32.mrf.mxu3 }
 0x134   :  { %1189 = vmatmul.bf16.gmra.mxu3 %v913_v54  ;;  %1287 = vmatmul.bf16.gmra.mxu0 %v913_v54  ;;  %v912_v28 = vpack.c.bf16 %v886_v49, %v884_v47  ;;  %v624_v10 = vadd.f32 %v623_v7, %v575_v5  ;;  %v820_v14 = vadd.f32 %v819_v48, %v771_v62  ;;  %v4400_v48 = vld [vmem:[#allocation4 + $0xc0] sm:$0xf]  ;;  %v5059_v54 = vld [vmem:[#allocation4 + $0xc4] sm:$0xf0] }
 0x135   :  { %v4401_v15 = vor.u32 %v5059_v54, %v4400_v48  ;;  %v5043_v7 = vld [vmem:[#allocation4 + $0x44] sm:$0xf0]  ;;  %v729_v62 = vadd.f32 %v728_v11, %v6004_v37 }
 0x136   :  { %1140 = vmatmul.bf16.gmra.mxu1 %v912_v28  ;;  %1238 = vmatmul.bf16.gmra.mxu2 %v912_v28  ;;  %v673_v6 = vadd.f32 %v5967_v17, %v624_v10  ;;  %v857_v40 = vmul.f32 0.1, %v820_v14  ;;  %v4337_v43 = vor.u32 %v5043_v7, %v4336_v57 }
 0x137   :  { %1648 = vmatpush.bf16.msrb.mxu3 %v4401_v15 }
 0x138   :  { %v856_v50 = vmul.f32 0.1, %v673_v6  ;;  %v889_v61 = vmax.f32 %v820_v14, %v857_v40  ;;  %1599 = vmatpush.bf16.msrb.mxu1 %v4337_v43 }
 0x139   :  { %v772_v53 = vpop.f32.mrf.mxu2 }
 0x13a   :  { %v773_v16 = vadd.f32 %v772_v53, %v724_v19  ;;  %v821_v18 = vpop.f32.mrf.mxu0  ;;  %v888_v23 = vmax.f32 %v673_v6, %v856_v50  ;;  %v5058_v53 = vld [vmem:[#allocation4 + $0xc4] sm:$0xf] }
 0x13b   :  { %v625_v38 = vpop.f32.mrf.mxu1 }
 0x13c   :  { %v626_v29 = vadd.f32 %v625_v38, %v577_v26  ;;  %v822_v39 = vadd.f32 %v821_v18, %v773_v16  ;;  %v4402_v26 = vld [vmem:[#allocation4 + $0xc8] sm:$0xf0]  ;;  %v733_v16 = vpop.f32.mrf.mxu3 }
 0x13d   :  { %v734_v15 = vadd.f32 %v733_v16, %v6004_v37 }
 0x13e   :  { %v675_v52 = vadd.f32 %v5982_v60, %v626_v29  ;;  %v859_v44 = vmul.f32 0.1, %v822_v39  ;;  %v4338_v60 = vld [vmem:[#allocation4 + $0x48] sm:$0xf0] }
 0x13f   :  { %v4341_v32 = vor.u32 %v5042_v3, %v4338_v60  ;;  %v587_v60 = vadd.f32 %v5963_v36, %v5913_v59 }
 0x140   :  { %v858_v33 = vmul.f32 0.1, %v675_v52  ;;  %v891_v46 = vmax.f32 %v822_v39, %v859_v44 }
 0x141   :  { %v775_v17 = vpop.f32.mrf.mxu2  ;;  %1697 = vmatpush.bf16.msrb.mxu2 %v4341_v32  ;;  %v5056_v32 = vld [vmem:[#allocation4 + $0xb4] sm:$0xf] }
 0x142   :  { %v890_v45 = vmax.f32 %v675_v52, %v858_v33  ;;  %v824_v47 = vpop.f32.mrf.mxu0  ;;  %v915_v49 = vpack.c.bf16 %v891_v46, %v889_v61  ;;  %v776_v56 = vadd.f32 %v775_v17, %v727_v31  ;;  %v4392_v33 = vld [vmem:[#allocation4 + $0xb0] sm:$0xf]  ;;  %v5057_v46 = vld [vmem:[#allocation4 + $0xb4] sm:$0xf0] }
 0x143   :  { %v628_v58 = vpop.f32.mrf.mxu1  ;;  %v4328_v31 = vld [vmem:[#allocation4 + $0x30] sm:$0xf] }
 0x144   :  { %1194 = vmatmul.bf16.gmra.mxu3 %v915_v49  ;;  %1292 = vmatmul.bf16.gmra.mxu0 %v915_v49  ;;  %v914_v4 = vpack.c.bf16 %v890_v45, %v888_v23  ;;  %v629_v5 = vadd.f32 %v628_v58, %v5921_v0  ;;  %v825_v28 = vadd.f32 %v824_v47, %v776_v56  ;;  %v5041_v45 = vld [vmem:[#allocation4 + $0x34] sm:$0xf0]  ;;  %v5040_v47 = vld [vmem:[#allocation4 + $0x34] sm:$0xf]  ;;  %v4330_v49 = vld [vmem:[#allocation4 + $0x38] sm:$0xf0]  ;;  %v736_v54 = vpop.f32.mrf.mxu3 }
 0x145   :  { %v4405_v0 = vor.u32 %v5058_v53, %v4402_v26  ;;  %v4393_v23 = vor.u32 %v5057_v46, %v4392_v33  ;;  %v4333_v57 = vor.u32 %v5040_v47, %v4330_v49  ;;  %v5054_v46 = vld [vmem:[#allocation4 + $0xa4] sm:$0xf]  ;;  %v4312_v47 = vld [vmem:[#allocation4 + $0x10] sm:$0xf] }
 0x146   :  { %1145 = vmatmul.bf16.gmra.mxu1 %v914_v4  ;;  %1243 = vmatmul.bf16.gmra.mxu2 %v914_v4  ;;  %v678_v10 = vadd.f32 %v5988_v21, %v629_v5  ;;  %v861_v18 = vmul.f32 0.1, %v825_v28  ;;  %v732_v21 = vadd.f32 %v731_v63, %v6004_v37  ;;  %v4329_v63 = vor.u32 %v5041_v45, %v4328_v31  ;;  %v4394_v5 = vld [vmem:[#allocation4 + $0xb8] sm:$0xf0]  ;;  %v4386_v31 = vld [vmem:[#allocation4 + $0xa8] sm:$0xf0] }
 0x147   :  { %1746 = vmatpush.bf16.msrb.mxu0 %v4405_v0  ;;  %1649 = vmatpush.bf16.msrb.mxu3 %v4393_v23  ;;  %v4376_v23 = vld [vmem:[#allocation4 + $0x90] sm:$0xf]  ;;  %v5053_v45 = vld [vmem:[#allocation4 + $0x94] sm:$0xf0] }
 0x148   :  { %v860_v11 = vmul.f32 0.1, %v678_v10  ;;  %v893_v40 = vmax.f32 %v825_v28, %v861_v18  ;;  %1600 = vmatpush.bf16.msrb.mxu1 %v4329_v63  ;;  %1698 = vmatpush.bf16.msrb.mxu2 %v4333_v57  ;;  %v4397_v28 = vor.u32 %v5056_v32, %v4394_v5 }
 0x149   :  { %v777_v1 = vpop.f32.mrf.mxu2 }
 0x14a   :  { %v778_v19 = vadd.f32 %v777_v1, %v729_v62  ;;  %v826_v14 = vpop.f32.mrf.mxu0  ;;  %v892_v50 = vmax.f32 %v678_v10, %v860_v11  ;;  %v4384_v11 = vld [vmem:[#allocation4 + $0xa0] sm:$0xf] }
 0x14b   :  { %v630_v6 = vpop.f32.mrf.mxu1  ;;  %1747 = vmatpush.bf16.msrb.mxu0 %v4397_v28 }
 0x14c   :  { %v631_v20 = vadd.f32 %v630_v6, %v582_v24  ;;  %v827_v8 = vadd.f32 %v826_v14, %v778_v19  ;;  %v738_v53 = vpop.f32.mrf.mxu3 }
 0x14d   :  { %v739_v33 = vadd.f32 %v738_v53, %v6004_v37 }
 0x14e   :  { %v680_v38 = vadd.f32 %v5997_v35, %v631_v20  ;;  %v863_v22 = vmul.f32 0.1, %v827_v8 }
 0x150   :  { %v862_v29 = vmul.f32 0.1, %v680_v38  ;;  %v895_v9 = vmax.f32 %v827_v8, %v863_v22  ;;  %v4320_v22 = vld [vmem:[#allocation4 + $0x20] sm:$0xf] }
 0x151   :  { %v780_v39 = vpop.f32.mrf.mxu2 }
 0x152   :  { %v894_v52 = vmax.f32 %v680_v38, %v862_v29  ;;  %v829_v44 = vpop.f32.mrf.mxu0  ;;  %v917_v61 = vpack.c.bf16 %v895_v9, %v893_v40  ;;  %v781_v35 = vadd.f32 %v780_v39, %v732_v21  ;;  %v5055_v38 = vld [vmem:[#allocation4 + $0xa4] sm:$0xf0]  ;;  %v5038_v21 = vld [vmem:[#allocation4 + $0x24] sm:$0xf] }
 0x153   :  { %v633_v17 = vpop.f32.mrf.mxu1  ;;  %v4385_v29 = vor.u32 %v5055_v38, %v4384_v11  ;;  %v5039_v9 = vld [vmem:[#allocation4 + $0x24] sm:$0xf0] }
 0x154   :  { %1199 = vmatmul.bf16.gmra.mxu3 %v917_v61  ;;  %1297 = vmatmul.bf16.gmra.mxu0 %v917_v61  ;;  %v916_v48 = vpack.c.bf16 %v894_v52, %v892_v50  ;;  %v634_v58 = vadd.f32 %v633_v17, %v5947_v27  ;;  %v830_v7 = vadd.f32 %v829_v44, %v781_v35  ;;  %v741_v57 = vpop.f32.mrf.mxu3 }
 0x155   :  { %1650 = vmatpush.bf16.msrb.mxu3 %v4385_v29  ;;  %v4321_v52 = vor.u32 %v5039_v9, %v4320_v22  ;;  %v4389_v17 = vor.u32 %v5054_v46, %v4386_v31  ;;  %v4377_v35 = vor.u32 %v5053_v45, %v4376_v23  ;;  %v4304_v23 = vld [vmem:[#allocation4] sm:$0xf]  ;;  %v5035_v45 = vld [vmem:[#allocation4 + $0x4] sm:$0xf0] }
 0x156   :  { %1150 = vmatmul.bf16.gmra.mxu1 %v916_v48  ;;  %1248 = vmatmul.bf16.gmra.mxu2 %v916_v48  ;;  %v683_v56 = vadd.f32 %v5895_v41, %v634_v58  ;;  %v865_v27 = vmul.f32 0.1, %v830_v7  ;;  %v737_v41 = vadd.f32 %v736_v54, %v6004_v37  ;;  %v5037_v48 = vld [vmem:[#allocation4 + $0x14] sm:$0xf0]  ;;  %v5036_v54 = vld [vmem:[#allocation4 + $0x14] sm:$0xf] }
 0x157   :  { %1601 = vmatpush.bf16.msrb.mxu1 %v4321_v52  ;;  %1748 = vmatpush.bf16.msrb.mxu0 %v4389_v17  ;;  %v4314_v58 = vld [vmem:[#allocation4 + $0x18] sm:$0xf0] }
 0x158   :  { %v864_v10 = vmul.f32 0.1, %v683_v56  ;;  %v897_v26 = vmax.f32 %v830_v7, %v865_v27 }
 0x159   :  { %v782_v3 = vpop.f32.mrf.mxu2  ;;  %1651 = vmatpush.bf16.msrb.mxu3 %v4377_v35  ;;  %v4306_v35 = vld [vmem:[#allocation4 + $0x8] sm:$0xf0] }
 0x15a   :  { %v783_v4 = vadd.f32 %v782_v3, %v734_v15  ;;  %v831_v43 = vpop.f32.mrf.mxu0  ;;  %v896_v0 = vmax.f32 %v683_v56, %v864_v10  ;;  %v592_v15 = vadd.f32 %v5986_v25, %v5913_v59  ;;  %v4317_v56 = vor.u32 %v5036_v54, %v4314_v58  ;;  %v5050_v54 = vld [vmem:[#allocation4 + $0x84] sm:$0xf]  ;;  %v956_v58 = vld [vmem:[%s6475_s4] sm:$0x3] }
 0x15b   :  { %v635_v62 = vpop.f32.mrf.mxu1  ;;  %v742_v25 = vadd.f32 %v741_v57, %v6004_v37 }
 0x15c   :  { %v636_v1 = vadd.f32 %v635_v62, %v587_v60  ;;  %v832_v24 = vadd.f32 %v831_v43, %v783_v4 }
 0x15e   :  { %v685_v19 = vadd.f32 %v5910_v51, %v636_v1  ;;  %v867_v14 = vmul.f32 0.1, %v832_v24  ;;  %v4322_v51 = vld [vmem:[#allocation4 + $0x28] sm:$0xf0] }
 0x15f   :  { %v4325_v44 = vor.u32 %v5038_v21, %v4322_v51  ;;  %v5052_v51 = vld [vmem:[#allocation4 + $0x94] sm:$0xf] }
 0x160   :  { %v866_v6 = vmul.f32 0.1, %v685_v19  ;;  %v899_v36 = vmax.f32 %v832_v24, %v867_v14 }
 0x161   :  { %v785_v16 = vpop.f32.mrf.mxu2  ;;  %1699 = vmatpush.bf16.msrb.mxu2 %v4325_v44 }
 0x162   :  { %v898_v18 = vmax.f32 %v685_v19, %v866_v6  ;;  %v834_v20 = vpop.f32.mrf.mxu0  ;;  %v919_v8 = vpack.c.bf16 %v899_v36, %v897_v26  ;;  %v786_v39 = vadd.f32 %v785_v16, %v737_v41  ;;  %v743_v36 = vpop.f32.mrf.mxu3 }
 0x163   :  { %v638_v40 = vpop.f32.mrf.mxu1 }
 0x164   :  { %1204 = vmatmul.bf16.gmra.mxu3 %v919_v8  ;;  %1302 = vmatmul.bf16.gmra.mxu0 %v919_v8  ;;  %v918_v50 = vpack.c.bf16 %v898_v18, %v896_v0  ;;  %v639_v61 = vadd.f32 %v638_v40, %v5972_v55  ;;  %v835_v49 = vadd.f32 %v834_v20, %v786_v39  ;;  %v4378_v39 = vld [vmem:[#allocation4 + $0x98] sm:$0xf0] }
 0x165   :  { %v4313_v55 = vor.u32 %v5037_v48, %v4312_v47  ;;  %1700 = vmatpush.bf16.msrb.mxu2 %v4317_v56  ;;  %v597_v8 = vadd.f32 %v6001_v34, %v5913_v59  ;;  %v4368_v59 = vld [vmem:[#allocation4 + $0x80] sm:$0xf]  ;;  %v5051_v34 = vld [vmem:[#allocation4 + $0x84] sm:$0xf0]  ;;  %v5034_v47 = vld [vmem:[#allocation4 + $0x4] sm:$0xf] }
 0x166   :  { %1155 = vmatmul.bf16.gmra.mxu1 %v918_v50  ;;  %1253 = vmatmul.bf16.gmra.mxu2 %v918_v50  ;;  %v688_v7 = vadd.f32 %v5925_v2, %v639_v61  ;;  %v869_v43 = vmul.f32 0.1, %v835_v49  ;;  %v4309_v48 = vor.u32 %v5034_v47, %v4306_v35 }
 0x167   :  { %1602 = vmatpush.bf16.msrb.mxu1 %v4313_v55 }
 0x168   :  { %v868_v62 = vmul.f32 0.1, %v688_v7  ;;  %v901_v1 = vmax.f32 %v835_v49, %v869_v43  ;;  %v4305_v49 = vor.u32 %v5035_v45, %v4304_v23 }
 0x169   :  { %v787_v63 = vpop.f32.mrf.mxu2  ;;  %1701 = vmatpush.bf16.msrb.mxu2 %v4309_v48 }
 0x16a   :  { %v788_v3 = vadd.f32 %v787_v63, %v739_v33  ;;  %v836_v60 = vpop.f32.mrf.mxu0  ;;  %v900_v19 = vmax.f32 %v688_v7, %v868_v62  ;;  %v4370_v63 = vld [vmem:[#allocation4 + $0x88] sm:$0xf0]  ;;  %v6081_v7 = vperm.slane %v956_v58, 0 }
 0x16b   :  { %v640_v4 = vpop.f32.mrf.mxu1  ;;  %1603 = vmatpush.bf16.msrb.mxu1 %v4305_v49  ;;  %v4373_v57 = vor.u32 %v5050_v54, %v4370_v63 }
 0x16c   :  { %v641_v32 = vadd.f32 %v640_v4, %v592_v15  ;;  %v837_v5 = vadd.f32 %v836_v60, %v788_v3  ;;  %v6083_v60 = vperm.slane %v956_v58, 1  ;;  %v4482_v58 = vld [vmem:[#allocation6 + $0x68] sm:$0xf0] }
 0x16e   :  { %v690_v28 = vadd.f32 %v5939_v13, %v641_v32  ;;  %v871_v27 = vmul.f32 0.1, %v837_v5  ;;  %v744_v13 = vadd.f32 %v743_v36, %v6004_v37 }
 0x170   :  { %v870_v24 = vmul.f32 0.1, %v690_v28  ;;  %v903_v10 = vmax.f32 %v837_v5, %v871_v27 }
 0x171   :  { %v790_v2 = vpop.f32.mrf.mxu2 }
 0x172   :  { %v902_v14 = vmax.f32 %v690_v28, %v870_v24  ;;  %v839_v53 = vpop.f32.mrf.mxu0  ;;  %v921_v26 = vpack.c.bf16 %v903_v10, %v901_v1  ;;  %v791_v41 = vadd.f32 %v790_v2, %v742_v25 }
 0x173   :  { %v643_v6 = vpop.f32.mrf.mxu1 }
 0x174   :  { %1209 = vmatmul.bf16.gmra.mxu3 %v921_v26  ;;  %1307 = vmatmul.bf16.gmra.mxu0 %v921_v26  ;;  %v920_v16 = vpack.c.bf16 %v902_v14, %v900_v19  ;;  %v644_v0 = vadd.f32 %v643_v6, %v5993_v30  ;;  %v840_v18 = vadd.f32 %v839_v53, %v791_v41 }
 0x175   :  { %v4381_v30 = vor.u32 %v5052_v51, %v4378_v39 }
 0x176   :  { %1160 = vmatmul.bf16.gmra.mxu1 %v920_v16  ;;  %1258 = vmatmul.bf16.gmra.mxu2 %v920_v16  ;;  %v693_v11 = vadd.f32 %v5951_v12, %v644_v0  ;;  %v873_v29 = vmul.f32 0.1, %v840_v18  ;;  %v4369_v12 = vor.u32 %v5051_v34, %v4368_v59  ;;  %v5080_v16 = vld [vmem:[#allocation6 + $0x74] sm:$0xf]  ;;  %v4490_v0 = vld [vmem:[#allocation6 + $0x78] sm:$0xf0] }
 0x177   :  { %1749 = vmatpush.bf16.msrb.mxu0 %v4381_v30 }
 0x178   :  { %v872_v50 = vmul.f32 0.1, %v693_v11  ;;  %v905_v44 = vmax.f32 %v840_v18, %v873_v29  ;;  %1652 = vmatpush.bf16.msrb.mxu3 %v4369_v12 }
 0x179   :  { %v792_v20 = vpop.f32.mrf.mxu2 }
 0x17a   :  { %v793_v38 = vadd.f32 %v792_v20, %v744_v13  ;;  %v841_v22 = vpop.f32.mrf.mxu0  ;;  %v904_v46 = vmax.f32 %v693_v11, %v872_v50  ;;  %v4493_v13 = vor.u32 %v5080_v16, %v4490_v0 }
 0x17b   :  { %v645_v40 = vpop.f32.mrf.mxu1  ;;  %1750 = vmatpush.bf16.msrb.mxu0 %v4373_v57 }
 0x17c   :  { %v646_v9 = vadd.f32 %v645_v40, %v597_v8  ;;  %v842_v21 = vadd.f32 %v841_v22, %v793_v38  ;;  %2168 = vmatpush.bf16.msra.mxu2 %v4493_v13  ;;  %v4552_v22 = vld [vmem:[#allocation6 + $0xf0] sm:$0xf]  ;;  %v5097_v40 = vld [vmem:[#allocation6 + $0xf4] sm:$0xf0]  ;;  %v4480_v13 = vld [vmem:[#allocation6 + $0x60] sm:$0xf] }
 0x17e   :  { %v695_v52 = vadd.f32 %v5965_v42, %v646_v9  ;;  %v875_v37 = vmul.f32 0.1, %v842_v21 }
 0x180   :  { %v874_v61 = vmul.f32 0.1, %v695_v52  ;;  %v907_v33 = vmax.f32 %v842_v21, %v875_v37  ;;  %v4553_v21 = vor.u32 %v5097_v40, %v4552_v22  ;;  %v5096_v37 = vld [vmem:[#allocation6 + $0xf4] sm:$0xf] }
 0x182   :  { %v906_v31 = vmax.f32 %v695_v52, %v874_v61  ;;  %v923_v17 = vpack.c.bf16 %v907_v33, %v905_v44  ;;  %2119 = vmatpush.bf16.msra.mxu3 %v4553_v21  ;;  %v4554_v44 = vld [vmem:[#allocation6 + $0xf8] sm:$0xf0] }
 0x183   :  { %v4557_v61 = vor.u32 %v5096_v37, %v4554_v44 }
 0x184   :  { %1214 = vmatmul.bf16.gmra.mxu3 %v923_v17  ;;  %1312 = vmatmul.bf16.gmra.mxu0 %v923_v17  ;;  %v922_v42 = vpack.c.bf16 %v906_v31, %v904_v46  ;;  %v4488_v31 = vld [vmem:[#allocation6 + $0x70] sm:$0xf]  ;;  %v5081_v17 = vld [vmem:[#allocation6 + $0x74] sm:$0xf0] }
 0x185   :  { %2217 = vmatpush.bf16.msra.mxu0 %v4557_v61  ;;  %v4489_v47 = vor.u32 %v5081_v17, %v4488_v31 }
 0x186   :  { %1165 = vmatmul.bf16.gmra.mxu1 %v922_v42  ;;  %1263 = vmatmul.bf16.gmra.mxu2 %v922_v42 }
 0x187   :  { %2070 = vmatpush.bf16.msra.mxu1 %v4489_v47 }
 0x191   :  { %v1278_v55 = vpop.f32.mrf.mxu0 }
 0x193   :  { %v1131_v15 = vpop.f32.mrf.mxu1 }
 0x194   :  { %v1132_v43 = vadd.f32 %v1131_v15, %v6081_v7 }
 0x197   :  { %v1180_v3 = vpop.f32.mrf.mxu3 }
 0x198   :  { %v1181_v5 = vadd.f32 %v1180_v3, %v1132_v43 }
 0x199   :  { %v1229_v56 = vpop.f32.mrf.mxu2  ;;  %v1280_v4 = vpop.f32.mrf.mxu0 }
 0x19a   :  { %v1230_v62 = vadd.f32 %v1229_v56, %v6083_v60  ;;  %v1318_v1 = vmul.f32 0.1, %v1181_v5 }
 0x19b   :  { %v1133_v32 = vpop.f32.mrf.mxu1 }
 0x19c   :  { %v1134_v28 = vadd.f32 %v1133_v32, %v6081_v7  ;;  %v1279_v24 = vadd.f32 %v1278_v55, %v1230_v62  ;;  %v1350_v26 = vmax.f32 %v1181_v5, %v1318_v1  ;;  %v5078_v55 = vld [vmem:[#allocation6 + $0x64] sm:$0xf]  ;;  %v4544_v5 = vld [vmem:[#allocation6 + $0xe0] sm:$0xf]  ;;  %v5095_v62 = vld [vmem:[#allocation6 + $0xe4] sm:$0xf0] }
 0x19d   :  { %v4485_v15 = vor.u32 %v5078_v55, %v4482_v58  ;;  %v4545_v1 = vor.u32 %v5095_v62, %v4544_v5 }
 0x19e   :  { %v1319_v6 = vmul.f32 0.1, %v1279_v24 }
 0x19f   :  { %v1182_v27 = vpop.f32.mrf.mxu3  ;;  %2169 = vmatpush.bf16.msra.mxu2 %v4485_v15  ;;  %2120 = vmatpush.bf16.msra.mxu3 %v4545_v1  ;;  %v4472_v15 = vld [vmem:[#allocation6 + $0x50] sm:$0xf] }
 0x1a0   :  { %v1183_v10 = vadd.f32 %v1182_v27, %v1134_v28  ;;  %v1351_v11 = vmax.f32 %v1279_v24, %v1319_v6 }
 0x1a1   :  { %v1231_v25 = vpop.f32.mrf.mxu2  ;;  %v1283_v2 = vpop.f32.mrf.mxu0 }
 0x1a2   :  { %v1320_v19 = vmul.f32 0.1, %v1183_v10  ;;  %v1232_v14 = vadd.f32 %v1231_v25, %v6083_v60 }
 0x1a3   :  { %v1136_v53 = vpop.f32.mrf.mxu1 }
 0x1a4   :  { %v1352_v36 = vmax.f32 %v1183_v10, %v1320_v19  ;;  %v1281_v41 = vadd.f32 %v1280_v4, %v1232_v14  ;;  %v1137_v39 = vadd.f32 %v1136_v53, %v6081_v7  ;;  %v5094_v14 = vld [vmem:[#allocation6 + $0xe4] sm:$0xf]  ;;  %v4546_v53 = vld [vmem:[#allocation6 + $0xe8] sm:$0xf0] }
 0x1a6   :  { %v1382_v18 = vpack.c.bf16 %v1352_v36, %v1350_v26  ;;  %v1321_v20 = vmul.f32 0.1, %v1281_v41  ;;  %v4549_v26 = vor.u32 %v5094_v14, %v4546_v53 }
 0x1a7   :  { %v1185_v8 = vpop.f32.mrf.mxu3 }
 0x1a8   :  { %v1353_v38 = vmax.f32 %v1281_v41, %v1321_v20  ;;  %1604 = vmatmul.bf16.vlgmr.msrb.gmra.mxu1 %v1382_v18  ;;  %1702 = vmatmul.bf16.vlgmr.msrb.gmra.mxu2 %v1382_v18  ;;  %v1186_v50 = vadd.f32 %v1185_v8, %v1137_v39  ;;  %v5079_v18 = vld [vmem:[#allocation6 + $0x64] sm:$0xf0]  ;;  %v5076_v39 = vld [vmem:[#allocation6 + $0x54] sm:$0xf] }
 0x1a9   :  { %v1234_v29 = vpop.f32.mrf.mxu2  ;;  %v1285_v9 = vpop.f32.mrf.mxu0  ;;  %2218 = vmatpush.bf16.msra.mxu0 %v4549_v26 }
 0x1aa   :  { %v1383_v51 = vpack.c.bf16 %v1353_v38, %v1351_v11  ;;  %v1235_v52 = vadd.f32 %v1234_v29, %v6083_v60  ;;  %v1322_v34 = vmul.f32 0.1, %v1186_v50  ;;  %v4481_v11 = vor.u32 %v5079_v18, %v4480_v13 }
 0x1ab   :  { %v1138_v30 = vpop.f32.mrf.mxu1 }
 0x1ac   :  { %1653 = vmatmul.bf16.vlgmr.msrb.gmra.mxu3 %v1383_v51  ;;  %1751 = vmatmul.bf16.vlgmr.msrb.gmra.mxu0 %v1383_v51  ;;  %v1139_v33 = vadd.f32 %v1138_v30, %v6081_v7  ;;  %v1284_v12 = vadd.f32 %v1283_v2, %v1235_v52  ;;  %v1354_v48 = vmax.f32 %v1186_v50, %v1322_v34  ;;  %v4474_v30 = vld [vmem:[#allocation6 + $0x58] sm:$0xf0]  ;;  %v5093_v34 = vld [vmem:[#allocation6 + $0xd4] sm:$0xf0] }
 0x1ad   :  { %2071 = vmatpush.bf16.msra.mxu1 %v4481_v11  ;;  %v4477_v50 = vor.u32 %v5076_v39, %v4474_v30 }
 0x1ae   :  { %v1323_v54 = vmul.f32 0.1, %v1284_v12 }
 0x1af   :  { %v1187_v59 = vpop.f32.mrf.mxu3  ;;  %2170 = vmatpush.bf16.msra.mxu2 %v4477_v50  ;;  %v4464_v50 = vld [vmem:[#allocation6 + $0x40] sm:$0xf] }
 0x1b0   :  { %v1188_v46 = vadd.f32 %v1187_v59, %v1139_v33  ;;  %v1355_v43 = vmax.f32 %v1284_v12, %v1323_v54  ;;  %v4536_v59 = vld [vmem:[#allocation6 + $0xd0] sm:$0xf] }
 0x1b1   :  { %v1236_v23 = vpop.f32.mrf.mxu2  ;;  %v1288_v45 = vpop.f32.mrf.mxu0  ;;  %v4537_v31 = vor.u32 %v5093_v34, %v4536_v59 }
 0x1b2   :  { %v1324_v49 = vmul.f32 0.1, %v1188_v46  ;;  %v1237_v35 = vadd.f32 %v1236_v23, %v6083_v60 }
 0x1b3   :  { %v1141_v42 = vpop.f32.mrf.mxu1  ;;  %2121 = vmatpush.bf16.msra.mxu3 %v4537_v31 }
 0x1b4   :  { %v1356_v63 = vmax.f32 %v1188_v46, %v1324_v49  ;;  %v1286_v57 = vadd.f32 %v1285_v9, %v1237_v35  ;;  %v1142_v24 = vadd.f32 %v1141_v42, %v6081_v7  ;;  %v5092_v35 = vld [vmem:[#allocation6 + $0xd4] sm:$0xf]  ;;  %v4538_v42 = vld [vmem:[#allocation6 + $0xd8] sm:$0xf0] }
 0x1b6   :  { %v1325_v3 = vmul.f32 0.1, %v1286_v57  ;;  %v1384_v56 = vpack.c.bf16 %v1356_v63, %v1354_v48  ;;  %v4541_v48 = vor.u32 %v5092_v35, %v4538_v42 }
 0x1b7   :  { %v1190_v4 = vpop.f32.mrf.mxu3 }
 0x1b8   :  { %v1357_v32 = vmax.f32 %v1286_v57, %v1325_v3  ;;  %1609 = vmatmul.bf16.gmra.mxu1 %v1384_v56  ;;  %1707 = vmatmul.bf16.gmra.mxu2 %v1384_v56  ;;  %v1191_v2 = vadd.f32 %v1190_v4, %v1142_v24  ;;  %v5077_v3 = vld [vmem:[#allocation6 + $0x54] sm:$0xf0] }
 0x1b9   :  { %v1239_v28 = vpop.f32.mrf.mxu2  ;;  %v1290_v27 = vpop.f32.mrf.mxu0  ;;  %2219 = vmatpush.bf16.msra.mxu0 %v4541_v48 }
 0x1ba   :  { %v1385_v10 = vpack.c.bf16 %v1357_v32, %v1355_v43  ;;  %v1240_v19 = vadd.f32 %v1239_v28, %v6083_v60  ;;  %v1326_v41 = vmul.f32 0.1, %v1191_v2  ;;  %v4473_v43 = vor.u32 %v5077_v3, %v4472_v15 }
 0x1bb   :  { %v1143_v25 = vpop.f32.mrf.mxu1 }
 0x1bc   :  { %1658 = vmatmul.bf16.gmra.mxu3 %v1385_v10  ;;  %1756 = vmatmul.bf16.gmra.mxu0 %v1385_v10  ;;  %v1144_v6 = vadd.f32 %v1143_v25, %v6081_v7  ;;  %v1289_v16 = vadd.f32 %v1288_v45, %v1240_v19  ;;  %v1358_v29 = vmax.f32 %v1191_v2, %v1326_v41  ;;  %v5074_v10 = vld [vmem:[#allocation6 + $0x44] sm:$0xf]  ;;  %v4466_v25 = vld [vmem:[#allocation6 + $0x48] sm:$0xf0]  ;;  %v5091_v41 = vld [vmem:[#allocation6 + $0xc4] sm:$0xf0] }
 0x1bd   :  { %2072 = vmatpush.bf16.msra.mxu1 %v4473_v43  ;;  %v4469_v2 = vor.u32 %v5074_v10, %v4466_v25 }
 0x1be   :  { %v1327_v9 = vmul.f32 0.1, %v1289_v16 }
 0x1bf   :  { %v1192_v36 = vpop.f32.mrf.mxu3  ;;  %2171 = vmatpush.bf16.msra.mxu2 %v4469_v2  ;;  %v4456_v2 = vld [vmem:[#allocation6 + $0x30] sm:$0xf] }
 0x1c0   :  { %v1193_v0 = vadd.f32 %v1192_v36, %v1144_v6  ;;  %v1359_v61 = vmax.f32 %v1289_v16, %v1327_v9  ;;  %v4528_v36 = vld [vmem:[#allocation6 + $0xc0] sm:$0xf] }
 0x1c1   :  { %v1241_v20 = vpop.f32.mrf.mxu2  ;;  %v1293_v8 = vpop.f32.mrf.mxu0  ;;  %v4529_v13 = vor.u32 %v5091_v41, %v4528_v36 }
 0x1c2   :  { %v1328_v38 = vmul.f32 0.1, %v1193_v0  ;;  %v1242_v22 = vadd.f32 %v1241_v20, %v6083_v60 }
 0x1c3   :  { %v1146_v40 = vpop.f32.mrf.mxu1  ;;  %2122 = vmatpush.bf16.msra.mxu3 %v4529_v13 }
 0x1c4   :  { %v1360_v21 = vmax.f32 %v1193_v0, %v1328_v38  ;;  %v1291_v51 = vadd.f32 %v1290_v27, %v1242_v22  ;;  %v1147_v17 = vadd.f32 %v1146_v40, %v6081_v7  ;;  %v5090_v22 = vld [vmem:[#allocation6 + $0xc4] sm:$0xf]  ;;  %v4530_v40 = vld [vmem:[#allocation6 + $0xc8] sm:$0xf0] }
 0x1c6   :  { %v1329_v52 = vmul.f32 0.1, %v1291_v51  ;;  %v1386_v37 = vpack.c.bf16 %v1360_v21, %v1358_v29  ;;  %v4533_v29 = vor.u32 %v5090_v22, %v4530_v40 }
 0x1c7   :  { %v1195_v44 = vpop.f32.mrf.mxu3 }
 0x1c8   :  { %v1361_v33 = vmax.f32 %v1291_v51, %v1329_v52  ;;  %1614 = vmatmul.bf16.gmra.mxu1 %v1386_v37  ;;  %1712 = vmatmul.bf16.gmra.mxu2 %v1386_v37  ;;  %v1196_v47 = vadd.f32 %v1195_v44, %v1147_v17  ;;  %v5075_v52 = vld [vmem:[#allocation6 + $0x44] sm:$0xf0] }
 0x1c9   :  { %v1244_v12 = vpop.f32.mrf.mxu2  ;;  %v1295_v46 = vpop.f32.mrf.mxu0  ;;  %2220 = vmatpush.bf16.msra.mxu0 %v4533_v29 }
 0x1ca   :  { %v1387_v23 = vpack.c.bf16 %v1361_v33, %v1359_v61  ;;  %v1245_v49 = vadd.f32 %v1244_v12, %v6083_v60  ;;  %v1330_v57 = vmul.f32 0.1, %v1196_v47  ;;  %v4465_v61 = vor.u32 %v5075_v52, %v4464_v50  ;;  %v4514_v52 = vld [vmem:[#allocation6 + $0xa8] sm:$0xf0] }
 0x1cb   :  { %v1148_v45 = vpop.f32.mrf.mxu1 }
 0x1cc   :  { %1663 = vmatmul.bf16.gmra.mxu3 %v1387_v23  ;;  %1761 = vmatmul.bf16.gmra.mxu0 %v1387_v23  ;;  %v1149_v54 = vadd.f32 %v1148_v45, %v6081_v7  ;;  %v1294_v55 = vadd.f32 %v1293_v8, %v1245_v49  ;;  %v1362_v28 = vmax.f32 %v1196_v47, %v1330_v57  ;;  %v5072_v23 = vld [vmem:[#allocation6 + $0x34] sm:$0xf]  ;;  %v4458_v45 = vld [vmem:[#allocation6 + $0x38] sm:$0xf0]  ;;  %v5089_v57 = vld [vmem:[#allocation6 + $0xb4] sm:$0xf0] }
 0x1cd   :  { %2073 = vmatpush.bf16.msra.mxu1 %v4465_v61  ;;  %v4461_v47 = vor.u32 %v5072_v23, %v4458_v45  ;;  %v4442_v23 = vld [vmem:[#allocation6 + $0x18] sm:$0xf0] }
 0x1ce   :  { %v1331_v27 = vmul.f32 0.1, %v1294_v55 }
 0x1cf   :  { %v1197_v63 = vpop.f32.mrf.mxu3  ;;  %2172 = vmatpush.bf16.msra.mxu2 %v4461_v47 }
 0x1d0   :  { %v1198_v58 = vadd.f32 %v1197_v63, %v1149_v54  ;;  %v1363_v26 = vmax.f32 %v1294_v55, %v1331_v27  ;;  %v4520_v63 = vld [vmem:[#allocation6 + $0xb0] sm:$0xf] }
 0x1d1   :  { %v1246_v56 = vpop.f32.mrf.mxu2  ;;  %v1298_v4 = vpop.f32.mrf.mxu0 }
 0x1d2   :  { %v1332_v32 = vmul.f32 0.1, %v1198_v58  ;;  %v1247_v5 = vadd.f32 %v1246_v56, %v6083_v60 }
 0x1d3   :  { %v1151_v62 = vpop.f32.mrf.mxu1 }
 0x1d4   :  { %v1364_v1 = vmax.f32 %v1198_v58, %v1332_v32  ;;  %v1296_v24 = vadd.f32 %v1295_v46, %v1247_v5  ;;  %v1152_v18 = vadd.f32 %v1151_v62, %v6081_v7  ;;  %v4521_v58 = vor.u32 %v5089_v57, %v4520_v63  ;;  %v5088_v5 = vld [vmem:[#allocation6 + $0xb4] sm:$0xf]  ;;  %v4522_v62 = vld [vmem:[#allocation6 + $0xb8] sm:$0xf0] }
 0x1d6   :  { %v1333_v19 = vmul.f32 0.1, %v1296_v24  ;;  %v1388_v14 = vpack.c.bf16 %v1364_v1, %v1362_v28  ;;  %2123 = vmatpush.bf16.msra.mxu3 %v4521_v58  ;;  %v4525_v28 = vor.u32 %v5088_v5, %v4522_v62  ;;  %v4504_v5 = vld [vmem:[#allocation6 + $0x90] sm:$0xf]  ;;  %v5085_v62 = vld [vmem:[#allocation6 + $0x94] sm:$0xf0] }
 0x1d7   :  { %v1200_v53 = vpop.f32.mrf.mxu3 }
 0x1d8   :  { %v1365_v6 = vmax.f32 %v1296_v24, %v1333_v19  ;;  %1619 = vmatmul.bf16.gmra.mxu1 %v1388_v14  ;;  %1717 = vmatmul.bf16.gmra.mxu2 %v1388_v14  ;;  %v1201_v11 = vadd.f32 %v1200_v53, %v1152_v18  ;;  %v5073_v19 = vld [vmem:[#allocation6 + $0x34] sm:$0xf0]  ;;  %v5070_v18 = vld [vmem:[#allocation6 + $0x24] sm:$0xf] }
 0x1d9   :  { %v1249_v16 = vpop.f32.mrf.mxu2  ;;  %v1300_v0 = vpop.f32.mrf.mxu0  ;;  %2221 = vmatpush.bf16.msra.mxu0 %v4525_v28  ;;  %v4457_v53 = vor.u32 %v5073_v19, %v4456_v2 }
 0x1da   :  { %v1389_v20 = vpack.c.bf16 %v1365_v6, %v1363_v26  ;;  %v1250_v38 = vadd.f32 %v1249_v16, %v6083_v60  ;;  %v1334_v51 = vmul.f32 0.1, %v1201_v11 }
 0x1db   :  { %v1153_v8 = vpop.f32.mrf.mxu1  ;;  %2074 = vmatpush.bf16.msra.mxu1 %v4457_v53  ;;  %v4440_v53 = vld [vmem:[#allocation6 + $0x10] sm:$0xf] }
 0x1dc   :  { %1668 = vmatmul.bf16.gmra.mxu3 %v1389_v20  ;;  %1766 = vmatmul.bf16.gmra.mxu0 %v1389_v20  ;;  %v1154_v9 = vadd.f32 %v1153_v8, %v6081_v7  ;;  %v1299_v39 = vadd.f32 %v1298_v4, %v1250_v38  ;;  %v1366_v12 = vmax.f32 %v1201_v11, %v1334_v51  ;;  %v4450_v20 = vld [vmem:[#allocation6 + $0x28] sm:$0xf0]  ;;  %v5087_v51 = vld [vmem:[#allocation6 + $0xa4] sm:$0xf0] }
 0x1dd   :  { %v4453_v11 = vor.u32 %v5070_v18, %v4450_v20 }
 0x1de   :  { %v1335_v46 = vmul.f32 0.1, %v1299_v39 }
 0x1df   :  { %v1202_v21 = vpop.f32.mrf.mxu3  ;;  %2173 = vmatpush.bf16.msra.mxu2 %v4453_v11 }
 0x1e0   :  { %v1203_v30 = vadd.f32 %v1202_v21, %v1154_v9  ;;  %v1367_v48 = vmax.f32 %v1299_v39, %v1335_v46  ;;  %v4512_v21 = vld [vmem:[#allocation6 + $0xa0] sm:$0xf]  ;;  %v5086_v39 = vld [vmem:[#allocation6 + $0xa4] sm:$0xf] }
 0x1e1   :  { %v1251_v37 = vpop.f32.mrf.mxu2  ;;  %v1303_v44 = vpop.f32.mrf.mxu0  ;;  %v4513_v50 = vor.u32 %v5087_v51, %v4512_v21 }
 0x1e2   :  { %v1336_v33 = vmul.f32 0.1, %v1203_v30  ;;  %v1252_v59 = vadd.f32 %v1251_v37, %v6083_v60  ;;  %v4448_v37 = vld [vmem:[#allocation6 + $0x20] sm:$0xf] }
 0x1e3   :  { %v1156_v34 = vpop.f32.mrf.mxu1  ;;  %2124 = vmatpush.bf16.msra.mxu3 %v4513_v50  ;;  %v5066_v50 = vld [vmem:[#allocation6 + $0x4] sm:$0xf] }
 0x1e4   :  { %v1368_v31 = vmax.f32 %v1203_v30, %v1336_v33  ;;  %v1301_v17 = vadd.f32 %v1300_v0, %v1252_v59  ;;  %v1157_v15 = vadd.f32 %v1156_v34, %v6081_v7  ;;  %v4517_v59 = vor.u32 %v5086_v39, %v4514_v52  ;;  %v4434_v52 = vld [vmem:[#allocation6 + $0x8] sm:$0xf0] }
 0x1e6   :  { %v1337_v49 = vmul.f32 0.1, %v1301_v17  ;;  %v1390_v35 = vpack.c.bf16 %v1368_v31, %v1366_v12  ;;  %2222 = vmatpush.bf16.msra.mxu0 %v4517_v59  ;;  %v4496_v59 = vld [vmem:[#allocation6 + $0x80] sm:$0xf] }
 0x1e7   :  { %v1205_v42 = vpop.f32.mrf.mxu3 }
 0x1e8   :  { %v1369_v54 = vmax.f32 %v1301_v17, %v1337_v49  ;;  %1624 = vmatmul.bf16.gmra.mxu1 %v1390_v35  ;;  %1722 = vmatmul.bf16.gmra.mxu2 %v1390_v35  ;;  %v1206_v43 = vadd.f32 %v1205_v42, %v1157_v15  ;;  %v5068_v17 = vld [vmem:[#allocation6 + $0x14] sm:$0xf] }
 0x1e9   :  { %v1254_v55 = vpop.f32.mrf.mxu2  ;;  %v1305_v56 = vpop.f32.mrf.mxu0  ;;  %v4445_v45 = vor.u32 %v5068_v17, %v4442_v23  ;;  %v4432_v23 = vld [vmem:[#allocation6] sm:$0xf] }
 0x1ea   :  { %v1391_v3 = vpack.c.bf16 %v1369_v54, %v1367_v48  ;;  %v1255_v32 = vadd.f32 %v1254_v55, %v6083_v60  ;;  %v1338_v24 = vmul.f32 0.1, %v1206_v43 }
 0x1eb   :  { %v1158_v4 = vpop.f32.mrf.mxu1  ;;  %2174 = vmatpush.bf16.msra.mxu2 %v4445_v45  ;;  %v5067_v45 = vld [vmem:[#allocation6 + $0x4] sm:$0xf0] }
 0x1ec   :  { %1673 = vmatmul.bf16.gmra.mxu3 %v1391_v3  ;;  %1771 = vmatmul.bf16.gmra.mxu0 %v1391_v3  ;;  %v1159_v27 = vadd.f32 %v1158_v4, %v6081_v7  ;;  %v1304_v10 = vadd.f32 %v1303_v44, %v1255_v32  ;;  %v1370_v41 = vmax.f32 %v1206_v43, %v1338_v24  ;;  %v5071_v44 = vld [vmem:[#allocation6 + $0x24] sm:$0xf0]  ;;  %v4506_v24 = vld [vmem:[#allocation6 + $0x98] sm:$0xf0] }
 0x1ed   :  { %v4449_v12 = vor.u32 %v5071_v44, %v4448_v37  ;;  %v4437_v37 = vor.u32 %v5066_v50, %v4434_v52 }
 0x1ee   :  { %v1339_v16 = vmul.f32 0.1, %v1304_v10 }
 0x1ef   :  { %v1207_v1 = vpop.f32.mrf.mxu3  ;;  %2075 = vmatpush.bf16.msra.mxu1 %v4449_v12  ;;  %2175 = vmatpush.bf16.msra.mxu2 %v4437_v37  ;;  %v5082_v12 = vld [vmem:[#allocation6 + $0x84] sm:$0xf] }
 0x1f0   :  { %v1208_v25 = vadd.f32 %v1207_v1, %v1159_v27  ;;  %v1371_v29 = vmax.f32 %v1304_v10, %v1339_v16  ;;  %v4505_v27 = vor.u32 %v5085_v62, %v4504_v5  ;;  %v5084_v1 = vld [vmem:[#allocation6 + $0x94] sm:$0xf] }
 0x1f1   :  { %v1256_v14 = vpop.f32.mrf.mxu2  ;;  %v1308_v8 = vpop.f32.mrf.mxu0  ;;  %v4509_v2 = vor.u32 %v5084_v1, %v4506_v24 }
 0x1f2   :  { %v1340_v26 = vmul.f32 0.1, %v1208_v25  ;;  %v1257_v6 = vadd.f32 %v1256_v14, %v6083_v60  ;;  %2125 = vmatpush.bf16.msra.mxu3 %v4505_v27 }
 0x1f3   :  { %v1161_v36 = vpop.f32.mrf.mxu1  ;;  %2223 = vmatpush.bf16.msra.mxu0 %v4509_v2 }
 0x1f4   :  { %v1372_v0 = vmax.f32 %v1208_v25, %v1340_v26  ;;  %v1306_v13 = vadd.f32 %v1305_v56, %v1257_v6  ;;  %v1162_v61 = vadd.f32 %v1161_v36, %v6081_v7  ;;  %v5069_v26 = vld [vmem:[#allocation6 + $0x14] sm:$0xf0] }
 0x1f6   :  { %v1341_v38 = vmul.f32 0.1, %v1306_v13  ;;  %v1392_v22 = vpack.c.bf16 %v1372_v0, %v1370_v41  ;;  %v4441_v41 = vor.u32 %v5069_v26, %v4440_v53  ;;  %v4680_v26 = vld [vmem:[#allocation7 + $0xf0] sm:$0xf] }
 0x1f7   :  { %v1210_v40 = vpop.f32.mrf.mxu3 }
 0x1f8   :  { %v1373_v9 = vmax.f32 %v1306_v13, %v1341_v38  ;;  %1629 = vmatmul.bf16.gmra.mxu1 %v1392_v22  ;;  %1727 = vmatmul.bf16.gmra.mxu2 %v1392_v22  ;;  %v1211_v46 = vadd.f32 %v1210_v40, %v1162_v61 }
 0x1f9   :  { %v1259_v30 = vpop.f32.mrf.mxu2  ;;  %v1310_v49 = vpop.f32.mrf.mxu0  ;;  %2076 = vmatpush.bf16.msra.mxu1 %v4441_v41 }
 0x1fa   :  { %v1393_v33 = vpack.c.bf16 %v1373_v9, %v1371_v29  ;;  %v1260_v31 = vadd.f32 %v1259_v30, %v6083_v60  ;;  %v1342_v42 = vmul.f32 0.1, %v1211_v46 }
 0x1fb   :  { %v1163_v34 = vpop.f32.mrf.mxu1 }
 0x1fc   :  { %1678 = vmatmul.bf16.gmra.mxu3 %v1393_v33  ;;  %1776 = vmatmul.bf16.gmra.mxu0 %v1393_v33  ;;  %v1164_v47 = vadd.f32 %v1163_v34, %v6081_v7  ;;  %v1309_v48 = vadd.f32 %v1308_v8, %v1260_v31  ;;  %v1374_v15 = vmax.f32 %v1211_v46, %v1342_v42  ;;  %v5083_v34 = vld [vmem:[#allocation6 + $0x84] sm:$0xf0] }
 0x1fd   :  { %v4497_v46 = vor.u32 %v5083_v34, %v4496_v59 }
 0x1fe   :  { %v1343_v3 = vmul.f32 0.1, %v1309_v48 }
 0x1ff   :  { %v1212_v35 = vpop.f32.mrf.mxu3  ;;  %2126 = vmatpush.bf16.msra.mxu3 %v4497_v46 }
 0x200   :  { %v1213_v54 = vadd.f32 %v1212_v35, %v1164_v47  ;;  %v1375_v10 = vmax.f32 %v1309_v48, %v1343_v3  ;;  %v4433_v47 = vor.u32 %v5067_v45, %v4432_v23  ;;  %v1430_v35 = vld [vmem:[%s6477_s6] sm:$0x3] }
 0x201   :  { %v1261_v63 = vpop.f32.mrf.mxu2  ;;  %v1313_v19 = vpop.f32.mrf.mxu0  ;;  %v6120_v48 = vperm.slane %v1430_v35, 1 }
 0x202   :  { %v1344_v57 = vmul.f32 0.1, %v1213_v54  ;;  %v1262_v55 = vadd.f32 %v1261_v63, %v6083_v60  ;;  %2077 = vmatpush.bf16.msra.mxu1 %v4433_v47 }
 0x203   :  { %v1166_v58 = vpop.f32.mrf.mxu1 }
 0x204   :  { %v1376_v56 = vmax.f32 %v1213_v54, %v1344_v57  ;;  %v1311_v4 = vadd.f32 %v1310_v49, %v1262_v55  ;;  %v1167_v6 = vadd.f32 %v1166_v58, %v6081_v7  ;;  %v6122_v57 = vperm.slane %v1430_v35, 0  ;;  %v4672_v35 = vld [vmem:[#allocation7 + $0xe0] sm:$0xf] }
 0x206   :  { %v1345_v43 = vmul.f32 0.1, %v1311_v4  ;;  %v1394_v32 = vpack.c.bf16 %v1376_v56, %v1374_v15 }
 0x207   :  { %v1215_v28 = vpop.f32.mrf.mxu3 }
 0x208   :  { %v1377_v25 = vmax.f32 %v1311_v4, %v1345_v43  ;;  %1634 = vmatmul.bf16.gmra.mxu1 %v1394_v32  ;;  %1732 = vmatmul.bf16.gmra.mxu2 %v1394_v32  ;;  %v1216_v0 = vadd.f32 %v1215_v28, %v1167_v6  ;;  %v5129_v6 = vld [vmem:[#allocation7 + $0xf4] sm:$0xf0] }
 0x209   :  { %v1264_v14 = vpop.f32.mrf.mxu2  ;;  %v1315_v9 = vpop.f32.mrf.mxu0  ;;  %v4681_v41 = vor.u32 %v5129_v6, %v4680_v26  ;;  %v4674_v26 = vld [vmem:[#allocation7 + $0xe8] sm:$0xf0] }
 0x20a   :  { %v1395_v36 = vpack.c.bf16 %v1377_v25, %v1375_v10  ;;  %v1265_v13 = vadd.f32 %v1264_v14, %v6083_v60  ;;  %v1346_v8 = vmul.f32 0.1, %v1216_v0 }
 0x20b   :  { %v1168_v16 = vpop.f32.mrf.mxu1  ;;  %2593 = vmatpush.bf16.msrb.mxu3 %v4681_v41 }
 0x20c   :  { %1683 = vmatmul.bf16.gmra.mxu3 %v1395_v36  ;;  %1781 = vmatmul.bf16.gmra.mxu0 %v1395_v36  ;;  %v1169_v18 = vadd.f32 %v1168_v16, %v6081_v7  ;;  %v1314_v11 = vadd.f32 %v1313_v19, %v1265_v13  ;;  %v1378_v21 = vmax.f32 %v1216_v0, %v1346_v8  ;;  %v5112_v8 = vld [vmem:[#allocation7 + $0x74] sm:$0xf] }
 0x20e   :  { %v1347_v51 = vmul.f32 0.1, %v1314_v11 }
 0x20f   :  { %v1217_v20 = vpop.f32.mrf.mxu3 }
 0x210   :  { %v1218_v38 = vadd.f32 %v1217_v20, %v1169_v18  ;;  %v1379_v7 = vmax.f32 %v1314_v11, %v1347_v51  ;;  %v4616_v18 = vld [vmem:[#allocation7 + $0x70] sm:$0xf]  ;;  %v5113_v20 = vld [vmem:[#allocation7 + $0x74] sm:$0xf0] }
 0x211   :  { %v1266_v22 = vpop.f32.mrf.mxu2 }
 0x212   :  { %v1348_v40 = vmul.f32 0.1, %v1218_v38  ;;  %v1267_v29 = vadd.f32 %v1266_v22, %v6083_v60  ;;  %v4498_v60 = vld [vmem:[#allocation6 + $0x88] sm:$0xf0]  ;;  %v4618_v22 = vld [vmem:[#allocation7 + $0x78] sm:$0xf0] }
 0x213   :  { %v4501_v17 = vor.u32 %v5082_v12, %v4498_v60 }
 0x214   :  { %v1380_v39 = vmax.f32 %v1218_v38, %v1348_v40  ;;  %v1316_v30 = vadd.f32 %v1315_v9, %v1267_v29  ;;  %v4617_v38 = vor.u32 %v5113_v20, %v4616_v18 }
 0x215   :  { %2224 = vmatpush.bf16.msra.mxu0 %v4501_v17 }
 0x216   :  { %v1349_v44 = vmul.f32 0.1, %v1316_v30  ;;  %v1396_v61 = vpack.c.bf16 %v1380_v39, %v1378_v21  ;;  %2544 = vmatpush.bf16.msrb.mxu1 %v4617_v38  ;;  %v4621_v21 = vor.u32 %v5112_v8, %v4618_v22 }
 0x218   :  { %v1381_v33 = vmax.f32 %v1316_v30, %v1349_v44  ;;  %1639 = vmatmul.bf16.gmra.mxu1 %v1396_v61  ;;  %1737 = vmatmul.bf16.gmra.mxu2 %v1396_v61  ;;  %v5128_v44 = vld [vmem:[#allocation7 + $0xf4] sm:$0xf]  ;;  %v4682_v61 = vld [vmem:[#allocation7 + $0xf8] sm:$0xf0] }
 0x219   :  { %2642 = vmatpush.bf16.msrb.mxu2 %v4621_v21 }
 0x21a   :  { %v1397_v31 = vpack.c.bf16 %v1381_v33, %v1379_v7  ;;  %v4685_v33 = vor.u32 %v5128_v44, %v4682_v61  ;;  %v5108_v44 = vld [vmem:[#allocation7 + $0x54] sm:$0xf] }
 0x21c   :  { %1688 = vmatmul.bf16.gmra.mxu3 %v1397_v31  ;;  %1786 = vmatmul.bf16.gmra.mxu0 %v1397_v31 }
 0x21d   :  { %2691 = vmatpush.bf16.msrb.mxu0 %v4685_v33  ;;  %v4602_v33 = vld [vmem:[#allocation7 + $0x58] sm:$0xf0] }
 0x225   :  { %v1605_v49 = vpop.f32.mrf.mxu1 }
 0x226   :  { %v1606_v3 = vadd.f32 %v1605_v49, %v6122_v57 }
 0x229   :  { %v1752_v42 = vpop.f32.mrf.mxu0 }
 0x22b   :  { %v1703_v54 = vpop.f32.mrf.mxu2 }
 0x22c   :  { %v1704_v55 = vadd.f32 %v1703_v54, %v6120_v48 }
 0x22d   :  { %v1607_v63 = vpop.f32.mrf.mxu1 }
 0x22e   :  { %v1753_v56 = vadd.f32 %v1752_v42, %v1704_v55  ;;  %v1608_v28 = vadd.f32 %v1607_v63, %v6122_v57  ;;  %v5127_v42 = vld [vmem:[#allocation7 + $0xe4] sm:$0xf0] }
 0x22f   :  { %v1654_v58 = vpop.f32.mrf.mxu3  ;;  %v4673_v63 = vor.u32 %v5127_v42, %v4672_v35  ;;  %v4666_v35 = vld [vmem:[#allocation7 + $0xd8] sm:$0xf0] }
 0x230   :  { %v1655_v43 = vadd.f32 %v1654_v58, %v1606_v3  ;;  %v1793_v62 = vmul.f32 0.1, %v1753_v56  ;;  %v4608_v3 = vld [vmem:[#allocation7 + $0x60] sm:$0xf] }
 0x231   :  { %v1754_v15 = vpop.f32.mrf.mxu0  ;;  %2594 = vmatpush.bf16.msrb.mxu3 %v4673_v63 }
 0x232   :  { %v1792_v24 = vmul.f32 0.1, %v1655_v43  ;;  %v1825_v19 = vmax.f32 %v1753_v56, %v1793_v62  ;;  %v5111_v56 = vld [vmem:[#allocation7 + $0x64] sm:$0xf0] }
 0x233   :  { %v1705_v4 = vpop.f32.mrf.mxu2 }
 0x234   :  { %v1706_v32 = vadd.f32 %v1705_v4, %v6120_v48  ;;  %v1824_v16 = vmax.f32 %v1655_v43, %v1792_v24  ;;  %v5110_v4 = vld [vmem:[#allocation7 + $0x64] sm:$0xf] }
 0x235   :  { %v1610_v5 = vpop.f32.mrf.mxu1 }
 0x236   :  { %v1755_v27 = vadd.f32 %v1754_v15, %v1706_v32  ;;  %v1611_v39 = vadd.f32 %v1610_v5, %v6122_v57  ;;  %v4609_v32 = vor.u32 %v5111_v56, %v4608_v3  ;;  %v4610_v5 = vld [vmem:[#allocation7 + $0x68] sm:$0xf0] }
 0x237   :  { %v1656_v1 = vpop.f32.mrf.mxu3 }
 0x238   :  { %v1795_v10 = vmul.f32 0.1, %v1755_v27  ;;  %v1657_v25 = vadd.f32 %v1656_v1, %v1608_v28  ;;  %2545 = vmatpush.bf16.msrb.mxu1 %v4609_v32  ;;  %v4613_v1 = vor.u32 %v5110_v4, %v4610_v5 }
 0x239   :  { %v1757_v2 = vpop.f32.mrf.mxu0 }
 0x23a   :  { %v1827_v14 = vmax.f32 %v1755_v27, %v1795_v10  ;;  %v1794_v53 = vmul.f32 0.1, %v1657_v25  ;;  %2643 = vmatpush.bf16.msrb.mxu2 %v4613_v1 }
 0x23b   :  { %v1708_v36 = vpop.f32.mrf.mxu2 }
 0x23c   :  { %v1857_v0 = vpack.c.bf16 %v1827_v14, %v1825_v19  ;;  %v1826_v13 = vmax.f32 %v1657_v25, %v1794_v53  ;;  %v1709_v29 = vadd.f32 %v1708_v36, %v6120_v48  ;;  %v5126_v53 = vld [vmem:[#allocation7 + $0xe4] sm:$0xf] }
 0x23d   :  { %v1612_v11 = vpop.f32.mrf.mxu1  ;;  %v4677_v36 = vor.u32 %v5126_v53, %v4674_v26  ;;  %v5106_v53 = vld [vmem:[#allocation7 + $0x44] sm:$0xf] }
 0x23e   :  { %v1856_v40 = vpack.c.bf16 %v1826_v13, %v1824_v16  ;;  %2127 = vmatmul.bf16.vlgmr.msra.gmra.mxu3 %v1857_v0  ;;  %2225 = vmatmul.bf16.vlgmr.msra.gmra.mxu0 %v1857_v0  ;;  %v1758_v30 = vadd.f32 %v1757_v2, %v1709_v29  ;;  %v1613_v34 = vadd.f32 %v1612_v11, %v6122_v57  ;;  %v4664_v29 = vld [vmem:[#allocation7 + $0xd0] sm:$0xf] }
 0x23f   :  { %v1659_v9 = vpop.f32.mrf.mxu3  ;;  %2692 = vmatpush.bf16.msrb.mxu0 %v4677_v36  ;;  %v4594_v36 = vld [vmem:[#allocation7 + $0x48] sm:$0xf0] }
 0x240   :  { %2078 = vmatmul.bf16.vlgmr.msra.gmra.mxu1 %v1856_v40  ;;  %2176 = vmatmul.bf16.vlgmr.msra.gmra.mxu2 %v1856_v40  ;;  %v1660_v52 = vadd.f32 %v1659_v9, %v1611_v39  ;;  %v1797_v59 = vmul.f32 0.1, %v1758_v30  ;;  %v5125_v9 = vld [vmem:[#allocation7 + $0xd4] sm:$0xf0] }
 0x241   :  { %v1759_v51 = vpop.f32.mrf.mxu0 }
 0x242   :  { %v1796_v60 = vmul.f32 0.1, %v1660_v52  ;;  %v1829_v45 = vmax.f32 %v1758_v30, %v1797_v59 }
 0x243   :  { %v1710_v50 = vpop.f32.mrf.mxu2 }
 0x244   :  { %v1711_v37 = vadd.f32 %v1710_v50, %v6120_v48  ;;  %v1828_v55 = vmax.f32 %v1660_v52, %v1796_v60  ;;  %v4600_v52 = vld [vmem:[#allocation7 + $0x50] sm:$0xf] }
 0x245   :  { %v1615_v7 = vpop.f32.mrf.mxu1 }
 0x246   :  { %v1760_v12 = vadd.f32 %v1759_v51, %v1711_v37  ;;  %v1616_v10 = vadd.f32 %v1615_v7, %v6122_v57  ;;  %v4665_v51 = vor.u32 %v5125_v9, %v4664_v29  ;;  %v5109_v37 = vld [vmem:[#allocation7 + $0x54] sm:$0xf0]  ;;  %v4658_v29 = vld [vmem:[#allocation7 + $0xc8] sm:$0xf0] }
 0x247   :  { %v1661_v46 = vpop.f32.mrf.mxu3  ;;  %v4601_v7 = vor.u32 %v5109_v37, %v4600_v52 }
 0x248   :  { %v1799_v31 = vmul.f32 0.1, %v1760_v12  ;;  %v1662_v17 = vadd.f32 %v1661_v46, %v1613_v34  ;;  %2595 = vmatpush.bf16.msrb.mxu3 %v4665_v51  ;;  %v4605_v46 = vor.u32 %v5108_v44, %v4602_v33 }
 0x249   :  { %v1762_v23 = vpop.f32.mrf.mxu0  ;;  %2546 = vmatpush.bf16.msrb.mxu1 %v4601_v7 }
 0x24a   :  { %v1831_v47 = vmax.f32 %v1760_v12, %v1799_v31  ;;  %v1798_v49 = vmul.f32 0.1, %v1662_v17  ;;  %2644 = vmatpush.bf16.msrb.mxu2 %v4605_v46 }
 0x24b   :  { %v1713_v54 = vpop.f32.mrf.mxu2 }
 0x24c   :  { %v1830_v58 = vmax.f32 %v1662_v17, %v1798_v49  ;;  %v1859_v15 = vpack.c.bf16 %v1831_v47, %v1829_v45  ;;  %v1714_v62 = vadd.f32 %v1713_v54, %v6120_v48  ;;  %v5124_v49 = vld [vmem:[#allocation7 + $0xd4] sm:$0xf] }
 0x24d   :  { %v1617_v43 = vpop.f32.mrf.mxu1  ;;  %v4669_v54 = vor.u32 %v5124_v49, %v4666_v35  ;;  %v5104_v49 = vld [vmem:[#allocation7 + $0x34] sm:$0xf] }
 0x24e   :  { %2132 = vmatmul.bf16.gmra.mxu3 %v1859_v15  ;;  %2230 = vmatmul.bf16.gmra.mxu0 %v1859_v15  ;;  %v1858_v28 = vpack.c.bf16 %v1830_v58, %v1828_v55  ;;  %v1763_v25 = vadd.f32 %v1762_v23, %v1714_v62  ;;  %v1618_v16 = vadd.f32 %v1617_v43, %v6122_v57 }
 0x24f   :  { %v1664_v27 = vpop.f32.mrf.mxu3  ;;  %2693 = vmatpush.bf16.msrb.mxu0 %v4669_v54  ;;  %v4586_v54 = vld [vmem:[#allocation7 + $0x38] sm:$0xf0] }
 0x250   :  { %2083 = vmatmul.bf16.gmra.mxu1 %v1858_v28  ;;  %2181 = vmatmul.bf16.gmra.mxu2 %v1858_v28  ;;  %v1665_v19 = vadd.f32 %v1664_v27, %v1616_v10  ;;  %v1801_v41 = vmul.f32 0.1, %v1763_v25  ;;  %v4656_v28 = vld [vmem:[#allocation7 + $0xc0] sm:$0xf]  ;;  %v5123_v27 = vld [vmem:[#allocation7 + $0xc4] sm:$0xf0] }
 0x251   :  { %v1764_v24 = vpop.f32.mrf.mxu0 }
 0x252   :  { %v1800_v18 = vmul.f32 0.1, %v1665_v19  ;;  %v1833_v38 = vmax.f32 %v1763_v25, %v1801_v41 }
 0x253   :  { %v1715_v2 = vpop.f32.mrf.mxu2 }
 0x254   :  { %v1716_v14 = vadd.f32 %v1715_v2, %v6120_v48  ;;  %v1832_v39 = vmax.f32 %v1665_v19, %v1800_v18  ;;  %v4592_v19 = vld [vmem:[#allocation7 + $0x40] sm:$0xf] }
 0x255   :  { %v1620_v6 = vpop.f32.mrf.mxu1 }
 0x256   :  { %v1765_v0 = vadd.f32 %v1764_v24, %v1716_v14  ;;  %v1621_v31 = vadd.f32 %v1620_v6, %v6122_v57  ;;  %v4657_v24 = vor.u32 %v5123_v27, %v4656_v28  ;;  %v5107_v14 = vld [vmem:[#allocation7 + $0x44] sm:$0xf0]  ;;  %v4650_v28 = vld [vmem:[#allocation7 + $0xb8] sm:$0xf0] }
 0x257   :  { %v1666_v13 = vpop.f32.mrf.mxu3  ;;  %v4593_v6 = vor.u32 %v5107_v14, %v4592_v19 }
 0x258   :  { %v1803_v20 = vmul.f32 0.1, %v1765_v0  ;;  %v1667_v8 = vadd.f32 %v1666_v13, %v1618_v16  ;;  %2596 = vmatpush.bf16.msrb.mxu3 %v4657_v24  ;;  %v4597_v13 = vor.u32 %v5106_v53, %v4594_v36 }
 0x259   :  { %v1767_v11 = vpop.f32.mrf.mxu0  ;;  %2547 = vmatpush.bf16.msrb.mxu1 %v4593_v6 }
 0x25a   :  { %v1835_v22 = vmax.f32 %v1765_v0, %v1803_v20  ;;  %v1802_v40 = vmul.f32 0.1, %v1667_v8  ;;  %2645 = vmatpush.bf16.msrb.mxu2 %v4597_v13 }
 0x25b   :  { %v1718_v21 = vpop.f32.mrf.mxu2 }
 0x25c   :  { %v1834_v30 = vmax.f32 %v1667_v8, %v1802_v40  ;;  %v1861_v50 = vpack.c.bf16 %v1835_v22, %v1833_v38  ;;  %v1719_v59 = vadd.f32 %v1718_v21, %v6120_v48  ;;  %v5122_v40 = vld [vmem:[#allocation7 + $0xc4] sm:$0xf] }
 0x25d   :  { %v1622_v61 = vpop.f32.mrf.mxu1  ;;  %v4661_v21 = vor.u32 %v5122_v40, %v4658_v29  ;;  %v5102_v40 = vld [vmem:[#allocation7 + $0x24] sm:$0xf] }
 0x25e   :  { %2137 = vmatmul.bf16.gmra.mxu3 %v1861_v50  ;;  %2235 = vmatmul.bf16.gmra.mxu0 %v1861_v50  ;;  %v1860_v34 = vpack.c.bf16 %v1834_v30, %v1832_v39  ;;  %v1768_v17 = vadd.f32 %v1767_v11, %v1719_v59  ;;  %v1623_v55 = vadd.f32 %v1622_v61, %v6122_v57 }
 0x25f   :  { %v1669_v12 = vpop.f32.mrf.mxu3  ;;  %2694 = vmatpush.bf16.msrb.mxu0 %v4661_v21 }
 0x260   :  { %2088 = vmatmul.bf16.gmra.mxu1 %v1860_v34  ;;  %2186 = vmatmul.bf16.gmra.mxu2 %v1860_v34  ;;  %v1670_v45 = vadd.f32 %v1669_v12, %v1621_v31  ;;  %v1805_v63 = vmul.f32 0.1, %v1768_v17  ;;  %v4648_v34 = vld [vmem:[#allocation7 + $0xb0] sm:$0xf]  ;;  %v5121_v12 = vld [vmem:[#allocation7 + $0xb4] sm:$0xf0] }
 0x261   :  { %v1769_v60 = vpop.f32.mrf.mxu0 }
 0x262   :  { %v1804_v3 = vmul.f32 0.1, %v1670_v45  ;;  %v1837_v32 = vmax.f32 %v1768_v17, %v1805_v63 }
 0x263   :  { %v1720_v23 = vpop.f32.mrf.mxu2 }
 0x264   :  { %v1721_v47 = vadd.f32 %v1720_v23, %v6120_v48  ;;  %v1836_v10 = vmax.f32 %v1670_v45, %v1804_v3  ;;  %v4584_v45 = vld [vmem:[#allocation7 + $0x30] sm:$0xf] }
 0x265   :  { %v1625_v42 = vpop.f32.mrf.mxu1 }
 0x266   :  { %v1770_v58 = vadd.f32 %v1769_v60, %v1721_v47  ;;  %v1626_v20 = vadd.f32 %v1625_v42, %v6122_v57  ;;  %v4649_v60 = vor.u32 %v5121_v12, %v4648_v34  ;;  %v5105_v47 = vld [vmem:[#allocation7 + $0x34] sm:$0xf0] }
 0x267   :  { %v1671_v15 = vpop.f32.mrf.mxu3  ;;  %v4585_v42 = vor.u32 %v5105_v47, %v4584_v45  ;;  %v4570_v45 = vld [vmem:[#allocation7 + $0x18] sm:$0xf0] }
 0x268   :  { %v1807_v56 = vmul.f32 0.1, %v1770_v58  ;;  %v1672_v4 = vadd.f32 %v1671_v15, %v1623_v55  ;;  %2597 = vmatpush.bf16.msrb.mxu3 %v4649_v60  ;;  %v4589_v15 = vor.u32 %v5104_v49, %v4586_v54  ;;  %v5101_v60 = vld [vmem:[#allocation7 + $0x14] sm:$0xf0] }
 0x269   :  { %v1772_v43 = vpop.f32.mrf.mxu0  ;;  %2548 = vmatpush.bf16.msrb.mxu1 %v4585_v42 }
 0x26a   :  { %v1839_v5 = vmax.f32 %v1770_v58, %v1807_v56  ;;  %v1806_v62 = vmul.f32 0.1, %v1672_v4  ;;  %2646 = vmatpush.bf16.msrb.mxu2 %v4589_v15 }
 0x26b   :  { %v1723_v1 = vpop.f32.mrf.mxu2 }
 0x26c   :  { %v1838_v25 = vmax.f32 %v1672_v4, %v1806_v62  ;;  %v1863_v2 = vpack.c.bf16 %v1839_v5, %v1837_v32  ;;  %v1724_v41 = vadd.f32 %v1723_v1, %v6120_v48  ;;  %v5120_v62 = vld [vmem:[#allocation7 + $0xb4] sm:$0xf] }
 0x26d   :  { %v1627_v26 = vpop.f32.mrf.mxu1  ;;  %v4653_v1 = vor.u32 %v5120_v62, %v4650_v28 }
 0x26e   :  { %2142 = vmatmul.bf16.gmra.mxu3 %v1863_v2  ;;  %2240 = vmatmul.bf16.gmra.mxu0 %v1863_v2  ;;  %v1862_v16 = vpack.c.bf16 %v1838_v25, %v1836_v10  ;;  %v1773_v8 = vadd.f32 %v1772_v43, %v1724_v41  ;;  %v1628_v39 = vadd.f32 %v1627_v26, %v6122_v57 }
 0x26f   :  { %v1674_v0 = vpop.f32.mrf.mxu3  ;;  %2695 = vmatpush.bf16.msrb.mxu0 %v4653_v1 }
 0x270   :  { %2093 = vmatmul.bf16.gmra.mxu1 %v1862_v16  ;;  %2191 = vmatmul.bf16.gmra.mxu2 %v1862_v16  ;;  %v1675_v38 = vadd.f32 %v1674_v0, %v1626_v20  ;;  %v1809_v51 = vmul.f32 0.1, %v1773_v8  ;;  %v4640_v16 = vld [vmem:[#allocation7 + $0xa0] sm:$0xf]  ;;  %v5119_v0 = vld [vmem:[#allocation7 + $0xa4] sm:$0xf0] }
 0x271   :  { %v1774_v18 = vpop.f32.mrf.mxu0 }
 0x272   :  { %v1808_v52 = vmul.f32 0.1, %v1675_v38  ;;  %v1841_v7 = vmax.f32 %v1773_v8, %v1809_v51 }
 0x273   :  { %v1725_v11 = vpop.f32.mrf.mxu2 }
 0x274   :  { %v1726_v22 = vadd.f32 %v1725_v11, %v6120_v48  ;;  %v1840_v31 = vmax.f32 %v1675_v38, %v1808_v52  ;;  %v4576_v38 = vld [vmem:[#allocation7 + $0x20] sm:$0xf]  ;;  %v5118_v52 = vld [vmem:[#allocation7 + $0xa4] sm:$0xf] }
 0x275   :  { %v1630_v9 = vpop.f32.mrf.mxu1 }
 0x276   :  { %v1775_v30 = vadd.f32 %v1774_v18, %v1726_v22  ;;  %v1631_v56 = vadd.f32 %v1630_v9, %v6122_v57  ;;  %v4641_v18 = vor.u32 %v5119_v0, %v4640_v16  ;;  %v5103_v22 = vld [vmem:[#allocation7 + $0x24] sm:$0xf0]  ;;  %v4578_v9 = vld [vmem:[#allocation7 + $0x28] sm:$0xf0] }
 0x277   :  { %v1676_v50 = vpop.f32.mrf.mxu3  ;;  %v4577_v29 = vor.u32 %v5103_v22, %v4576_v38 }
 0x278   :  { %v1811_v37 = vmul.f32 0.1, %v1775_v30  ;;  %v1677_v44 = vadd.f32 %v1676_v50, %v1628_v39  ;;  %2598 = vmatpush.bf16.msrb.mxu3 %v4641_v18  ;;  %v4581_v50 = vor.u32 %v5102_v40, %v4578_v9  ;;  %v4634_v18 = vld [vmem:[#allocation7 + $0x98] sm:$0xf0] }
 0x279   :  { %v1777_v61 = vpop.f32.mrf.mxu0  ;;  %2549 = vmatpush.bf16.msrb.mxu1 %v4577_v29 }
 0x27a   :  { %v1843_v33 = vmax.f32 %v1775_v30, %v1811_v37  ;;  %v1810_v59 = vmul.f32 0.1, %v1677_v44  ;;  %v4642_v37 = vld [vmem:[#allocation7 + $0xa8] sm:$0xf0]  ;;  %2647 = vmatpush.bf16.msrb.mxu2 %v4581_v50 }
 0x27b   :  { %v1728_v46 = vpop.f32.mrf.mxu2 }
 0x27c   :  { %v1842_v17 = vmax.f32 %v1677_v44, %v1810_v59  ;;  %v1865_v23 = vpack.c.bf16 %v1843_v33, %v1841_v7  ;;  %v1729_v63 = vadd.f32 %v1728_v46, %v6120_v48  ;;  %v4632_v7 = vld [vmem:[#allocation7 + $0x90] sm:$0xf]  ;;  %v5117_v33 = vld [vmem:[#allocation7 + $0x94] sm:$0xf0] }
 0x27d   :  { %v1632_v35 = vpop.f32.mrf.mxu1  ;;  %v4568_v59 = vld [vmem:[#allocation7 + $0x10] sm:$0xf]  ;;  %v4633_v46 = vor.u32 %v5117_v33, %v4632_v7 }
 0x27e   :  { %2147 = vmatmul.bf16.gmra.mxu3 %v1865_v23  ;;  %2245 = vmatmul.bf16.gmra.mxu0 %v1865_v23  ;;  %v1864_v55 = vpack.c.bf16 %v1842_v17, %v1840_v31  ;;  %v1778_v4 = vadd.f32 %v1777_v61, %v1729_v63  ;;  %v1633_v10 = vadd.f32 %v1632_v35, %v6122_v57  ;;  %v5100_v31 = vld [vmem:[#allocation7 + $0x14] sm:$0xf] }
 0x27f   :  { %v1679_v58 = vpop.f32.mrf.mxu3  ;;  %v4645_v61 = vor.u32 %v5118_v52, %v4642_v37  ;;  %v4569_v23 = vor.u32 %v5101_v60, %v4568_v59  ;;  %2599 = vmatpush.bf16.msrb.mxu3 %v4633_v46  ;;  %v4573_v35 = vor.u32 %v5100_v31, %v4570_v45  ;;  %v4560_v52 = vld [vmem:[#allocation7] sm:$0xf]  ;;  %v5098_v37 = vld [vmem:[#allocation7 + $0x4] sm:$0xf] }
 0x280   :  { %2098 = vmatmul.bf16.gmra.mxu1 %v1864_v55  ;;  %2196 = vmatmul.bf16.gmra.mxu2 %v1864_v55  ;;  %v1680_v32 = vadd.f32 %v1679_v58, %v1631_v56  ;;  %v1813_v24 = vmul.f32 0.1, %v1778_v4  ;;  %v5114_v59 = vld [vmem:[#allocation7 + $0x84] sm:$0xf]  ;;  %v1904_v60 = vld [vmem:[%s6479_s8] sm:$0x3] }
 0x281   :  { %v1779_v3 = vpop.f32.mrf.mxu0  ;;  %2696 = vmatpush.bf16.msrb.mxu0 %v4645_v61  ;;  %2550 = vmatpush.bf16.msrb.mxu1 %v4569_v23  ;;  %v4562_v61 = vld [vmem:[#allocation7 + $0x8] sm:$0xf0]  ;;  %v6161_v45 = vperm.slane %v1904_v60, 1 }
 0x282   :  { %v1812_v19 = vmul.f32 0.1, %v1680_v32  ;;  %v1845_v6 = vmax.f32 %v1778_v4, %v1813_v24  ;;  %2648 = vmatpush.bf16.msrb.mxu2 %v4573_v35  ;;  %v4565_v33 = vor.u32 %v5098_v37, %v4562_v61 }
 0x283   :  { %v1730_v43 = vpop.f32.mrf.mxu2 }
 0x284   :  { %v1731_v5 = vadd.f32 %v1730_v43, %v6120_v48  ;;  %v1844_v20 = vmax.f32 %v1680_v32, %v1812_v19 }
 0x285   :  { %v1635_v27 = vpop.f32.mrf.mxu1 }
 0x286   :  { %v1780_v25 = vadd.f32 %v1779_v3, %v1731_v5  ;;  %v1636_v34 = vadd.f32 %v1635_v27, %v6122_v57  ;;  %2649 = vmatpush.bf16.msrb.mxu2 %v4565_v33 }
 0x287   :  { %v1681_v2 = vpop.f32.mrf.mxu3 }
 0x288   :  { %v1815_v14 = vmul.f32 0.1, %v1780_v25  ;;  %v1682_v53 = vadd.f32 %v1681_v2, %v1633_v10 }
 0x289   :  { %v1782_v26 = vpop.f32.mrf.mxu0 }
 0x28a   :  { %v1847_v36 = vmax.f32 %v1780_v25, %v1815_v14  ;;  %v1814_v41 = vmul.f32 0.1, %v1682_v53 }
 0x28b   :  { %v1733_v13 = vpop.f32.mrf.mxu2 }
 0x28c   :  { %v1846_v8 = vmax.f32 %v1682_v53, %v1814_v41  ;;  %v1867_v11 = vpack.c.bf16 %v1847_v36, %v1845_v6  ;;  %v1734_v21 = vadd.f32 %v1733_v13, %v6120_v48  ;;  %v5116_v13 = vld [vmem:[#allocation7 + $0x94] sm:$0xf] }
 0x28d   :  { %v1637_v39 = vpop.f32.mrf.mxu1 }
 0x28e   :  { %2152 = vmatmul.bf16.gmra.mxu3 %v1867_v11  ;;  %2250 = vmatmul.bf16.gmra.mxu0 %v1867_v11  ;;  %v1866_v51 = vpack.c.bf16 %v1846_v8, %v1844_v20  ;;  %v1783_v12 = vadd.f32 %v1782_v26, %v1734_v21  ;;  %v1638_v54 = vadd.f32 %v1637_v39, %v6122_v57  ;;  %v4624_v21 = vld [vmem:[#allocation7 + $0x80] sm:$0xf] }
 0x28f   :  { %v1684_v30 = vpop.f32.mrf.mxu3  ;;  %v4637_v8 = vor.u32 %v5116_v13, %v4634_v18 }
 0x290   :  { %2103 = vmatmul.bf16.gmra.mxu1 %v1866_v51  ;;  %2201 = vmatmul.bf16.gmra.mxu2 %v1866_v51  ;;  %v1685_v47 = vadd.f32 %v1684_v30, %v1636_v34  ;;  %v1817_v42 = vmul.f32 0.1, %v1783_v12  ;;  %v5115_v51 = vld [vmem:[#allocation7 + $0x84] sm:$0xf0]  ;;  %v4626_v34 = vld [vmem:[#allocation7 + $0x88] sm:$0xf0] }
 0x291   :  { %v1784_v44 = vpop.f32.mrf.mxu0  ;;  %2697 = vmatpush.bf16.msrb.mxu0 %v4637_v8  ;;  %v4625_v39 = vor.u32 %v5115_v51, %v4624_v21 }
 0x292   :  { %v1816_v58 = vmul.f32 0.1, %v1685_v47  ;;  %v1849_v4 = vmax.f32 %v1783_v12, %v1817_v42  ;;  %v4629_v12 = vor.u32 %v5114_v59, %v4626_v34 }
 0x293   :  { %v1735_v17 = vpop.f32.mrf.mxu2  ;;  %2600 = vmatpush.bf16.msrb.mxu3 %v4625_v39 }
 0x294   :  { %v1736_v49 = vadd.f32 %v1735_v17, %v6120_v48  ;;  %v1848_v28 = vmax.f32 %v1685_v47, %v1816_v58  ;;  %v6159_v17 = vperm.slane %v1904_v60, 0  ;;  %v4738_v60 = vld [vmem:[#allocation9 + $0x68] sm:$0xf0] }
 0x295   :  { %v1640_v56 = vpop.f32.mrf.mxu1  ;;  %2698 = vmatpush.bf16.msrb.mxu0 %v4629_v12 }
 0x296   :  { %v1785_v63 = vadd.f32 %v1784_v44, %v1736_v49  ;;  %v1641_v2 = vadd.f32 %v1640_v56, %v6122_v57 }
 0x297   :  { %v1686_v55 = vpop.f32.mrf.mxu3 }
 0x298   :  { %v1819_v15 = vmul.f32 0.1, %v1785_v63  ;;  %v1687_v3 = vadd.f32 %v1686_v55, %v1638_v54 }
 0x299   :  { %v1787_v5 = vpop.f32.mrf.mxu0 }
 0x29a   :  { %v1851_v43 = vmax.f32 %v1785_v63, %v1819_v15  ;;  %v1818_v32 = vmul.f32 0.1, %v1687_v3 }
 0x29b   :  { %v1738_v62 = vpop.f32.mrf.mxu2 }
 0x29c   :  { %v1850_v27 = vmax.f32 %v1687_v3, %v1818_v32  ;;  %v1869_v1 = vpack.c.bf16 %v1851_v43, %v1849_v4  ;;  %v1739_v24 = vadd.f32 %v1738_v62, %v6120_v48 }
 0x29d   :  { %v1642_v14 = vpop.f32.mrf.mxu1 }
 0x29e   :  { %2157 = vmatmul.bf16.gmra.mxu3 %v1869_v1  ;;  %2255 = vmatmul.bf16.gmra.mxu0 %v1869_v1  ;;  %v1868_v10 = vpack.c.bf16 %v1850_v27, %v1848_v28  ;;  %v1788_v19 = vadd.f32 %v1787_v5, %v1739_v24  ;;  %v1643_v16 = vadd.f32 %v1642_v14, %v6122_v57  ;;  %v5099_v57 = vld [vmem:[#allocation7 + $0x4] sm:$0xf0] }
 0x29f   :  { %v1689_v25 = vpop.f32.mrf.mxu3  ;;  %v4561_v44 = vor.u32 %v5099_v57, %v4560_v52 }
 0x2a0   :  { %2108 = vmatmul.bf16.gmra.mxu1 %v1868_v10  ;;  %2206 = vmatmul.bf16.gmra.mxu2 %v1868_v10  ;;  %v1690_v26 = vadd.f32 %v1689_v25, %v1641_v2  ;;  %v1821_v41 = vmul.f32 0.1, %v1788_v19  ;;  %v5144_v10 = vld [vmem:[#allocation9 + $0x74] sm:$0xf]  ;;  %v4746_v25 = vld [vmem:[#allocation9 + $0x78] sm:$0xf0] }
 0x2a1   :  { %v1789_v36 = vpop.f32.mrf.mxu0  ;;  %2551 = vmatpush.bf16.msrb.mxu1 %v4561_v44  ;;  %v4749_v2 = vor.u32 %v5144_v10, %v4746_v25 }
 0x2a2   :  { %v1820_v11 = vmul.f32 0.1, %v1690_v26  ;;  %v1853_v40 = vmax.f32 %v1788_v19, %v1821_v41  ;;  %v5161_v41 = vld [vmem:[#allocation9 + $0xf4] sm:$0xf0] }
 0x2a3   :  { %v1740_v53 = vpop.f32.mrf.mxu2  ;;  %3116 = vmatpush.bf16.msra.mxu2 %v4749_v2  ;;  %v4736_v2 = vld [vmem:[#allocation9 + $0x60] sm:$0xf] }
 0x2a4   :  { %v1741_v6 = vadd.f32 %v1740_v53, %v6120_v48  ;;  %v1852_v48 = vmax.f32 %v1690_v26, %v1820_v11 }
 0x2a6   :  { %v1790_v0 = vadd.f32 %v1789_v36, %v1741_v6  ;;  %v4808_v36 = vld [vmem:[#allocation9 + $0xf0] sm:$0xf] }
 0x2a7   :  { %v1691_v20 = vpop.f32.mrf.mxu3  ;;  %v4809_v13 = vor.u32 %v5161_v41, %v4808_v36 }
 0x2a8   :  { %v1823_v38 = vmul.f32 0.1, %v1790_v0  ;;  %v1692_v22 = vadd.f32 %v1691_v20, %v1643_v16 }
 0x2a9   :  { %3067 = vmatpush.bf16.msra.mxu3 %v4809_v13 }
 0x2aa   :  { %v1855_v29 = vmax.f32 %v1790_v0, %v1823_v38  ;;  %v1822_v9 = vmul.f32 0.1, %v1692_v22 }
 0x2ac   :  { %v1854_v30 = vmax.f32 %v1692_v22, %v1822_v9  ;;  %v1871_v50 = vpack.c.bf16 %v1855_v29, %v1853_v40  ;;  %v5160_v22 = vld [vmem:[#allocation9 + $0xf4] sm:$0xf]  ;;  %v4810_v40 = vld [vmem:[#allocation9 + $0xf8] sm:$0xf0] }
 0x2ad   :  { %v4813_v29 = vor.u32 %v5160_v22, %v4810_v40 }
 0x2ae   :  { %2162 = vmatmul.bf16.gmra.mxu3 %v1871_v50  ;;  %2260 = vmatmul.bf16.gmra.mxu0 %v1871_v50  ;;  %v1870_v7 = vpack.c.bf16 %v1854_v30, %v1852_v48  ;;  %v4744_v30 = vld [vmem:[#allocation9 + $0x70] sm:$0xf]  ;;  %v5145_v50 = vld [vmem:[#allocation9 + $0x74] sm:$0xf0] }
 0x2af   :  { %3165 = vmatpush.bf16.msra.mxu0 %v4813_v29  ;;  %v4745_v37 = vor.u32 %v5145_v50, %v4744_v30 }
 0x2b0   :  { %2113 = vmatmul.bf16.gmra.mxu1 %v1870_v7  ;;  %2211 = vmatmul.bf16.gmra.mxu2 %v1870_v7 }
 0x2b1   :  { %3018 = vmatpush.bf16.msra.mxu1 %v4745_v37 }
 0x2bb   :  { %v2226_v46 = vpop.f32.mrf.mxu0 }
 0x2bd   :  { %v2079_v31 = vpop.f32.mrf.mxu1 }
 0x2be   :  { %v2080_v35 = vadd.f32 %v2079_v31, %v6159_v17 }
 0x2c1   :  { %v2128_v23 = vpop.f32.mrf.mxu3 }
 0x2c2   :  { %v2129_v54 = vadd.f32 %v2128_v23, %v2080_v35 }
 0x2c3   :  { %v2177_v47 = vpop.f32.mrf.mxu2  ;;  %v2228_v49 = vpop.f32.mrf.mxu0 }
 0x2c4   :  { %v2178_v63 = vadd.f32 %v2177_v47, %v6161_v45  ;;  %v2266_v15 = vmul.f32 0.1, %v2129_v54 }
 0x2c5   :  { %v2081_v42 = vpop.f32.mrf.mxu1 }
 0x2c6   :  { %v2082_v55 = vadd.f32 %v2081_v42, %v6159_v17  ;;  %v2227_v3 = vadd.f32 %v2226_v46, %v2178_v63  ;;  %v2298_v28 = vmax.f32 %v2129_v54, %v2266_v15  ;;  %v5142_v46 = vld [vmem:[#allocation9 + $0x64] sm:$0xf]  ;;  %v4800_v54 = vld [vmem:[#allocation9 + $0xe0] sm:$0xf]  ;;  %v5159_v63 = vld [vmem:[#allocation9 + $0xe4] sm:$0xf0] }
 0x2c7   :  { %v4741_v31 = vor.u32 %v5142_v46, %v4738_v60  ;;  %v4801_v15 = vor.u32 %v5159_v63, %v4800_v54 }
 0x2c8   :  { %v2267_v27 = vmul.f32 0.1, %v2227_v3 }
 0x2c9   :  { %v2130_v58 = vpop.f32.mrf.mxu3  ;;  %3117 = vmatpush.bf16.msra.mxu2 %v4741_v31  ;;  %3068 = vmatpush.bf16.msra.mxu3 %v4801_v15  ;;  %v4728_v31 = vld [vmem:[#allocation9 + $0x50] sm:$0xf] }
 0x2ca   :  { %v2131_v56 = vadd.f32 %v2130_v58, %v2082_v55  ;;  %v2299_v26 = vmax.f32 %v2227_v3, %v2267_v27 }
 0x2cb   :  { %v2179_v4 = vpop.f32.mrf.mxu2  ;;  %v2231_v43 = vpop.f32.mrf.mxu0 }
 0x2cc   :  { %v2268_v32 = vmul.f32 0.1, %v2131_v56  ;;  %v2180_v5 = vadd.f32 %v2179_v4, %v6161_v45 }
 0x2cd   :  { %v2084_v62 = vpop.f32.mrf.mxu1 }
 0x2ce   :  { %v2300_v1 = vmax.f32 %v2131_v56, %v2268_v32  ;;  %v2229_v24 = vadd.f32 %v2228_v49, %v2180_v5  ;;  %v2085_v20 = vadd.f32 %v2084_v62, %v6159_v17  ;;  %v5158_v5 = vld [vmem:[#allocation9 + $0xe4] sm:$0xf]  ;;  %v4802_v62 = vld [vmem:[#allocation9 + $0xe8] sm:$0xf0] }
 0x2d0   :  { %v2330_v19 = vpack.c.bf16 %v2300_v1, %v2298_v28  ;;  %v2269_v14 = vmul.f32 0.1, %v2229_v24  ;;  %v4805_v28 = vor.u32 %v5158_v5, %v4802_v62 }
 0x2d1   :  { %v2133_v53 = vpop.f32.mrf.mxu3 }
 0x2d2   :  { %v2301_v6 = vmax.f32 %v2229_v24, %v2269_v14  ;;  %2552 = vmatmul.bf16.vlgmr.msrb.gmra.mxu1 %v2330_v19  ;;  %2650 = vmatmul.bf16.vlgmr.msrb.gmra.mxu2 %v2330_v19  ;;  %v2134_v11 = vadd.f32 %v2133_v53, %v2085_v20  ;;  %v5143_v19 = vld [vmem:[#allocation9 + $0x64] sm:$0xf0]  ;;  %v5140_v20 = vld [vmem:[#allocation9 + $0x54] sm:$0xf] }
 0x2d3   :  { %v2182_v16 = vpop.f32.mrf.mxu2  ;;  %v2233_v0 = vpop.f32.mrf.mxu0  ;;  %3166 = vmatpush.bf16.msra.mxu0 %v4805_v28 }
 0x2d4   :  { %v2331_v18 = vpack.c.bf16 %v2301_v6, %v2299_v26  ;;  %v2183_v38 = vadd.f32 %v2182_v16, %v6161_v45  ;;  %v2270_v51 = vmul.f32 0.1, %v2134_v11  ;;  %v4737_v26 = vor.u32 %v5143_v19, %v4736_v2 }
 0x2d5   :  { %v2086_v8 = vpop.f32.mrf.mxu1 }
 0x2d6   :  { %2601 = vmatmul.bf16.vlgmr.msrb.gmra.mxu3 %v2331_v18  ;;  %2699 = vmatmul.bf16.vlgmr.msrb.gmra.mxu0 %v2331_v18  ;;  %v2087_v9 = vadd.f32 %v2086_v8, %v6159_v17  ;;  %v2232_v39 = vadd.f32 %v2231_v43, %v2183_v38  ;;  %v2302_v33 = vmax.f32 %v2134_v11, %v2270_v51  ;;  %v4730_v8 = vld [vmem:[#allocation9 + $0x58] sm:$0xf0]  ;;  %v5157_v51 = vld [vmem:[#allocation9 + $0xd4] sm:$0xf0] }
 0x2d7   :  { %3019 = vmatpush.bf16.msra.mxu1 %v4737_v26  ;;  %v4733_v11 = vor.u32 %v5140_v20, %v4730_v8 }
 0x2d8   :  { %v2271_v59 = vmul.f32 0.1, %v2232_v39 }
 0x2d9   :  { %v2135_v21 = vpop.f32.mrf.mxu3  ;;  %3118 = vmatpush.bf16.msra.mxu2 %v4733_v11  ;;  %v4720_v11 = vld [vmem:[#allocation9 + $0x40] sm:$0xf] }
 0x2da   :  { %v2136_v48 = vadd.f32 %v2135_v21, %v2087_v9  ;;  %v2303_v35 = vmax.f32 %v2232_v39, %v2271_v59  ;;  %v4792_v21 = vld [vmem:[#allocation9 + $0xd0] sm:$0xf] }
 0x2db   :  { %v2184_v52 = vpop.f32.mrf.mxu2  ;;  %v2236_v57 = vpop.f32.mrf.mxu0  ;;  %v4793_v30 = vor.u32 %v5157_v51, %v4792_v21 }
 0x2dc   :  { %v2272_v44 = vmul.f32 0.1, %v2136_v48  ;;  %v2185_v61 = vadd.f32 %v2184_v52, %v6161_v45 }
 0x2dd   :  { %v2089_v7 = vpop.f32.mrf.mxu1  ;;  %3069 = vmatpush.bf16.msra.mxu3 %v4793_v30 }
 0x2de   :  { %v2304_v34 = vmax.f32 %v2136_v48, %v2272_v44  ;;  %v2234_v12 = vadd.f32 %v2233_v0, %v2185_v61  ;;  %v2090_v3 = vadd.f32 %v2089_v7, %v6159_v17  ;;  %v5156_v61 = vld [vmem:[#allocation9 + $0xd4] sm:$0xf]  ;;  %v4794_v7 = vld [vmem:[#allocation9 + $0xd8] sm:$0xf0] }
 0x2e0   :  { %v2273_v23 = vmul.f32 0.1, %v2234_v12  ;;  %v2332_v47 = vpack.c.bf16 %v2304_v34, %v2302_v33  ;;  %v4797_v33 = vor.u32 %v5156_v61, %v4794_v7 }
 0x2e1   :  { %v2138_v49 = vpop.f32.mrf.mxu3 }
 0x2e2   :  { %v2305_v42 = vmax.f32 %v2234_v12, %v2273_v23  ;;  %2557 = vmatmul.bf16.gmra.mxu1 %v2332_v47  ;;  %2655 = vmatmul.bf16.gmra.mxu2 %v2332_v47  ;;  %v2139_v43 = vadd.f32 %v2138_v49, %v2090_v3  ;;  %v5141_v23 = vld [vmem:[#allocation9 + $0x54] sm:$0xf0] }
 0x2e3   :  { %v2187_v55 = vpop.f32.mrf.mxu2  ;;  %v2238_v58 = vpop.f32.mrf.mxu0  ;;  %3167 = vmatpush.bf16.msra.mxu0 %v4797_v33 }
 0x2e4   :  { %v2333_v56 = vpack.c.bf16 %v2305_v42, %v2303_v35  ;;  %v2188_v32 = vadd.f32 %v2187_v55, %v6161_v45  ;;  %v2274_v24 = vmul.f32 0.1, %v2139_v43  ;;  %v4729_v35 = vor.u32 %v5141_v23, %v4728_v31 }
 0x2e5   :  { %v2091_v4 = vpop.f32.mrf.mxu1 }
 0x2e6   :  { %2606 = vmatmul.bf16.gmra.mxu3 %v2333_v56  ;;  %2704 = vmatmul.bf16.gmra.mxu0 %v2333_v56  ;;  %v2092_v27 = vadd.f32 %v2091_v4, %v6159_v17  ;;  %v2237_v10 = vadd.f32 %v2236_v57, %v2188_v32  ;;  %v2306_v16 = vmax.f32 %v2139_v43, %v2274_v24  ;;  %v5138_v56 = vld [vmem:[#allocation9 + $0x44] sm:$0xf]  ;;  %v4722_v4 = vld [vmem:[#allocation9 + $0x48] sm:$0xf0]  ;;  %v5155_v24 = vld [vmem:[#allocation9 + $0xc4] sm:$0xf0] }
 0x2e7   :  { %3020 = vmatpush.bf16.msra.mxu1 %v4729_v35  ;;  %v4725_v43 = vor.u32 %v5138_v56, %v4722_v4 }
 0x2e8   :  { %v2275_v0 = vmul.f32 0.1, %v2237_v10 }
 0x2e9   :  { %v2140_v1 = vpop.f32.mrf.mxu3  ;;  %3119 = vmatpush.bf16.msra.mxu2 %v4725_v43  ;;  %v4712_v43 = vld [vmem:[#allocation9 + $0x30] sm:$0xf] }
 0x2ea   :  { %v2141_v25 = vadd.f32 %v2140_v1, %v2092_v27  ;;  %v2307_v29 = vmax.f32 %v2237_v10, %v2275_v0  ;;  %v4784_v1 = vld [vmem:[#allocation9 + $0xc0] sm:$0xf] }
 0x2eb   :  { %v2189_v14 = vpop.f32.mrf.mxu2  ;;  %v2241_v53 = vpop.f32.mrf.mxu0  ;;  %v4785_v2 = vor.u32 %v5155_v24, %v4784_v1 }
 0x2ec   :  { %v2276_v6 = vmul.f32 0.1, %v2141_v25  ;;  %v2190_v36 = vadd.f32 %v2189_v14, %v6161_v45 }
 0x2ed   :  { %v2094_v41 = vpop.f32.mrf.mxu1  ;;  %3070 = vmatpush.bf16.msra.mxu3 %v4785_v2 }
 0x2ee   :  { %v2308_v13 = vmax.f32 %v2141_v25, %v2276_v6  ;;  %v2239_v18 = vadd.f32 %v2238_v58, %v2190_v36  ;;  %v2095_v50 = vadd.f32 %v2094_v41, %v6159_v17  ;;  %v5154_v36 = vld [vmem:[#allocation9 + $0xc4] sm:$0xf]  ;;  %v4786_v41 = vld [vmem:[#allocation9 + $0xc8] sm:$0xf0] }
 0x2f0   :  { %v2277_v38 = vmul.f32 0.1, %v2239_v18  ;;  %v2334_v22 = vpack.c.bf16 %v2308_v13, %v2306_v16  ;;  %v4789_v16 = vor.u32 %v5154_v36, %v4786_v41 }
 0x2f1   :  { %v2143_v40 = vpop.f32.mrf.mxu3 }
 0x2f2   :  { %v2309_v9 = vmax.f32 %v2239_v18, %v2277_v38  ;;  %2562 = vmatmul.bf16.gmra.mxu1 %v2334_v22  ;;  %2660 = vmatmul.bf16.gmra.mxu2 %v2334_v22  ;;  %v2144_v37 = vadd.f32 %v2143_v40, %v2095_v50  ;;  %v5139_v38 = vld [vmem:[#allocation9 + $0x44] sm:$0xf0] }
 0x2f3   :  { %v2192_v39 = vpop.f32.mrf.mxu2  ;;  %v2243_v48 = vpop.f32.mrf.mxu0  ;;  %3168 = vmatpush.bf16.msra.mxu0 %v4789_v16 }
 0x2f4   :  { %v2335_v52 = vpack.c.bf16 %v2309_v9, %v2307_v29  ;;  %v2193_v44 = vadd.f32 %v2192_v39, %v6161_v45  ;;  %v2278_v12 = vmul.f32 0.1, %v2144_v37  ;;  %v4721_v29 = vor.u32 %v5139_v38, %v4720_v11  ;;  %v4770_v38 = vld [vmem:[#allocation9 + $0xa8] sm:$0xf0] }
 0x2f5   :  { %v2096_v57 = vpop.f32.mrf.mxu1 }
 0x2f6   :  { %2611 = vmatmul.bf16.gmra.mxu3 %v2335_v52  ;;  %2709 = vmatmul.bf16.gmra.mxu0 %v2335_v52  ;;  %v2097_v59 = vadd.f32 %v2096_v57, %v6159_v17  ;;  %v2242_v46 = vadd.f32 %v2241_v53, %v2193_v44  ;;  %v2310_v55 = vmax.f32 %v2144_v37, %v2278_v12  ;;  %v5136_v52 = vld [vmem:[#allocation9 + $0x34] sm:$0xf]  ;;  %v4714_v57 = vld [vmem:[#allocation9 + $0x38] sm:$0xf0]  ;;  %v5153_v12 = vld [vmem:[#allocation9 + $0xb4] sm:$0xf0] }
 0x2f7   :  { %3021 = vmatpush.bf16.msra.mxu1 %v4721_v29  ;;  %v4717_v37 = vor.u32 %v5136_v52, %v4714_v57  ;;  %v4698_v52 = vld [vmem:[#allocation9 + $0x18] sm:$0xf0] }
 0x2f8   :  { %v2279_v58 = vmul.f32 0.1, %v2242_v46 }
 0x2f9   :  { %v2145_v34 = vpop.f32.mrf.mxu3  ;;  %3120 = vmatpush.bf16.msra.mxu2 %v4717_v37 }
 0x2fa   :  { %v2146_v60 = vadd.f32 %v2145_v34, %v2097_v59  ;;  %v2311_v28 = vmax.f32 %v2242_v46, %v2279_v58  ;;  %v4776_v34 = vld [vmem:[#allocation9 + $0xb0] sm:$0xf] }
 0x2fb   :  { %v2194_v47 = vpop.f32.mrf.mxu2  ;;  %v2246_v49 = vpop.f32.mrf.mxu0 }
 0x2fc   :  { %v2280_v42 = vmul.f32 0.1, %v2146_v60  ;;  %v2195_v54 = vadd.f32 %v2194_v47, %v6161_v45 }
 0x2fd   :  { %v2099_v63 = vpop.f32.mrf.mxu1 }
 0x2fe   :  { %v2312_v15 = vmax.f32 %v2146_v60, %v2280_v42  ;;  %v2244_v3 = vadd.f32 %v2243_v48, %v2195_v54  ;;  %v2100_v19 = vadd.f32 %v2099_v63, %v6159_v17  ;;  %v4777_v60 = vor.u32 %v5153_v12, %v4776_v34  ;;  %v5152_v54 = vld [vmem:[#allocation9 + $0xb4] sm:$0xf]  ;;  %v4778_v63 = vld [vmem:[#allocation9 + $0xb8] sm:$0xf0] }
 0x300   :  { %v2281_v32 = vmul.f32 0.1, %v2244_v3  ;;  %v2336_v5 = vpack.c.bf16 %v2312_v15, %v2310_v55  ;;  %3071 = vmatpush.bf16.msra.mxu3 %v4777_v60  ;;  %v4781_v55 = vor.u32 %v5152_v54, %v4778_v63  ;;  %v4760_v54 = vld [vmem:[#allocation9 + $0x90] sm:$0xf]  ;;  %v5149_v63 = vld [vmem:[#allocation9 + $0x94] sm:$0xf0] }
 0x301   :  { %v2148_v62 = vpop.f32.mrf.mxu3 }
 0x302   :  { %v2313_v27 = vmax.f32 %v2244_v3, %v2281_v32  ;;  %2567 = vmatmul.bf16.gmra.mxu1 %v2336_v5  ;;  %2665 = vmatmul.bf16.gmra.mxu2 %v2336_v5  ;;  %v2149_v26 = vadd.f32 %v2148_v62, %v2100_v19  ;;  %v5137_v32 = vld [vmem:[#allocation9 + $0x34] sm:$0xf0]  ;;  %v5134_v19 = vld [vmem:[#allocation9 + $0x24] sm:$0xf] }
 0x303   :  { %v2197_v10 = vpop.f32.mrf.mxu2  ;;  %v2248_v25 = vpop.f32.mrf.mxu0  ;;  %3169 = vmatpush.bf16.msra.mxu0 %v4781_v55  ;;  %v4713_v62 = vor.u32 %v5137_v32, %v4712_v43 }
 0x304   :  { %v2337_v14 = vpack.c.bf16 %v2313_v27, %v2311_v28  ;;  %v2198_v6 = vadd.f32 %v2197_v10, %v6161_v45  ;;  %v2282_v18 = vmul.f32 0.1, %v2149_v26 }
 0x305   :  { %v2101_v53 = vpop.f32.mrf.mxu1  ;;  %3022 = vmatpush.bf16.msra.mxu1 %v4713_v62  ;;  %v4696_v62 = vld [vmem:[#allocation9 + $0x10] sm:$0xf] }
 0x306   :  { %2616 = vmatmul.bf16.gmra.mxu3 %v2337_v14  ;;  %2714 = vmatmul.bf16.gmra.mxu0 %v2337_v14  ;;  %v2102_v0 = vadd.f32 %v2101_v53, %v6159_v17  ;;  %v2247_v20 = vadd.f32 %v2246_v49, %v2198_v6  ;;  %v2314_v39 = vmax.f32 %v2149_v26, %v2282_v18  ;;  %v4706_v14 = vld [vmem:[#allocation9 + $0x28] sm:$0xf0]  ;;  %v5151_v18 = vld [vmem:[#allocation9 + $0xa4] sm:$0xf0] }
 0x307   :  { %v4709_v26 = vor.u32 %v5134_v19, %v4706_v14 }
 0x308   :  { %v2283_v48 = vmul.f32 0.1, %v2247_v20 }
 0x309   :  { %v2150_v13 = vpop.f32.mrf.mxu3  ;;  %3121 = vmatpush.bf16.msra.mxu2 %v4709_v26 }
 0x30a   :  { %v2151_v8 = vadd.f32 %v2150_v13, %v2102_v0  ;;  %v2315_v33 = vmax.f32 %v2247_v20, %v2283_v48  ;;  %v4768_v13 = vld [vmem:[#allocation9 + $0xa0] sm:$0xf]  ;;  %v5150_v20 = vld [vmem:[#allocation9 + $0xa4] sm:$0xf] }
 0x30b   :  { %v2199_v22 = vpop.f32.mrf.mxu2  ;;  %v2251_v40 = vpop.f32.mrf.mxu0  ;;  %v4769_v11 = vor.u32 %v5151_v18, %v4768_v13 }
 0x30c   :  { %v2284_v9 = vmul.f32 0.1, %v2151_v8  ;;  %v2200_v21 = vadd.f32 %v2199_v22, %v6161_v45  ;;  %v4704_v22 = vld [vmem:[#allocation9 + $0x20] sm:$0xf] }
 0x30d   :  { %v2104_v51 = vpop.f32.mrf.mxu1  ;;  %3072 = vmatpush.bf16.msra.mxu3 %v4769_v11  ;;  %v5130_v11 = vld [vmem:[#allocation9 + $0x4] sm:$0xf] }
 0x30e   :  { %v2316_v30 = vmax.f32 %v2151_v8, %v2284_v9  ;;  %v2249_v50 = vadd.f32 %v2248_v25, %v2200_v21  ;;  %v2105_v31 = vadd.f32 %v2104_v51, %v6159_v17  ;;  %v4773_v21 = vor.u32 %v5150_v20, %v4770_v38  ;;  %v4690_v38 = vld [vmem:[#allocation9 + $0x8] sm:$0xf0] }
 0x310   :  { %v2285_v44 = vmul.f32 0.1, %v2249_v50  ;;  %v2338_v61 = vpack.c.bf16 %v2316_v30, %v2314_v39  ;;  %3170 = vmatpush.bf16.msra.mxu0 %v4773_v21  ;;  %v4752_v21 = vld [vmem:[#allocation9 + $0x80] sm:$0xf] }
 0x311   :  { %v2153_v7 = vpop.f32.mrf.mxu3 }
 0x312   :  { %v2317_v59 = vmax.f32 %v2249_v50, %v2285_v44  ;;  %2572 = vmatmul.bf16.gmra.mxu1 %v2338_v61  ;;  %2670 = vmatmul.bf16.gmra.mxu2 %v2338_v61  ;;  %v2154_v35 = vadd.f32 %v2153_v7, %v2105_v31  ;;  %v5132_v50 = vld [vmem:[#allocation9 + $0x14] sm:$0xf] }
 0x313   :  { %v2202_v46 = vpop.f32.mrf.mxu2  ;;  %v2253_v47 = vpop.f32.mrf.mxu0  ;;  %v4701_v57 = vor.u32 %v5132_v50, %v4698_v52  ;;  %v4688_v52 = vld [vmem:[#allocation9] sm:$0xf] }
 0x314   :  { %v2339_v23 = vpack.c.bf16 %v2317_v59, %v2315_v33  ;;  %v2203_v42 = vadd.f32 %v2202_v46, %v6161_v45  ;;  %v2286_v3 = vmul.f32 0.1, %v2154_v35 }
 0x315   :  { %v2106_v49 = vpop.f32.mrf.mxu1  ;;  %3122 = vmatpush.bf16.msra.mxu2 %v4701_v57  ;;  %v5131_v57 = vld [vmem:[#allocation9 + $0x4] sm:$0xf0] }
 0x316   :  { %2621 = vmatmul.bf16.gmra.mxu3 %v2339_v23  ;;  %2719 = vmatmul.bf16.gmra.mxu0 %v2339_v23  ;;  %v2107_v58 = vadd.f32 %v2106_v49, %v6159_v17  ;;  %v2252_v56 = vadd.f32 %v2251_v40, %v2203_v42  ;;  %v2318_v24 = vmax.f32 %v2154_v35, %v2286_v3  ;;  %v5135_v40 = vld [vmem:[#allocation9 + $0x24] sm:$0xf0]  ;;  %v4762_v3 = vld [vmem:[#allocation9 + $0x98] sm:$0xf0] }
 0x317   :  { %v4705_v39 = vor.u32 %v5135_v40, %v4704_v22  ;;  %v4693_v22 = vor.u32 %v5130_v11, %v4690_v38 }
 0x318   :  { %v2287_v10 = vmul.f32 0.1, %v2252_v56 }
 0x319   :  { %v2155_v15 = vpop.f32.mrf.mxu3  ;;  %3023 = vmatpush.bf16.msra.mxu1 %v4705_v39  ;;  %3123 = vmatpush.bf16.msra.mxu2 %v4693_v22  ;;  %v5146_v39 = vld [vmem:[#allocation9 + $0x84] sm:$0xf] }
 0x31a   :  { %v2156_v4 = vadd.f32 %v2155_v15, %v2107_v58  ;;  %v2319_v16 = vmax.f32 %v2252_v56, %v2287_v10  ;;  %v4761_v58 = vor.u32 %v5149_v63, %v4760_v54  ;;  %v5148_v15 = vld [vmem:[#allocation9 + $0x94] sm:$0xf] }
 0x31b   :  { %v2204_v5 = vpop.f32.mrf.mxu2  ;;  %v2256_v53 = vpop.f32.mrf.mxu0  ;;  %v4765_v43 = vor.u32 %v5148_v15, %v4762_v3 }
 0x31c   :  { %v2288_v28 = vmul.f32 0.1, %v2156_v4  ;;  %v2205_v27 = vadd.f32 %v2204_v5, %v6161_v45  ;;  %3073 = vmatpush.bf16.msra.mxu3 %v4761_v58 }
 0x31d   :  { %v2109_v1 = vpop.f32.mrf.mxu1  ;;  %3171 = vmatpush.bf16.msra.mxu0 %v4765_v43 }
 0x31e   :  { %v2320_v25 = vmax.f32 %v2156_v4, %v2288_v28  ;;  %v2254_v2 = vadd.f32 %v2253_v47, %v2205_v27  ;;  %v2110_v29 = vadd.f32 %v2109_v1, %v6159_v17  ;;  %v5133_v28 = vld [vmem:[#allocation9 + $0x14] sm:$0xf0] }
 0x320   :  { %v2289_v6 = vmul.f32 0.1, %v2254_v2  ;;  %v2340_v36 = vpack.c.bf16 %v2320_v25, %v2318_v24  ;;  %v4697_v24 = vor.u32 %v5133_v28, %v4696_v62  ;;  %v4936_v28 = vld [vmem:[#allocation10 + $0xf0] sm:$0xf] }
 0x321   :  { %v2158_v41 = vpop.f32.mrf.mxu3 }
 0x322   :  { %v2321_v0 = vmax.f32 %v2254_v2, %v2289_v6  ;;  %2577 = vmatmul.bf16.gmra.mxu1 %v2340_v36  ;;  %2675 = vmatmul.bf16.gmra.mxu2 %v2340_v36  ;;  %v2159_v48 = vadd.f32 %v2158_v41, %v2110_v29 }
 0x323   :  { %v2207_v8 = vpop.f32.mrf.mxu2  ;;  %v2258_v44 = vpop.f32.mrf.mxu0  ;;  %3024 = vmatpush.bf16.msra.mxu1 %v4697_v24 }
 0x324   :  { %v2341_v9 = vpack.c.bf16 %v2321_v0, %v2319_v16  ;;  %v2208_v30 = vadd.f32 %v2207_v8, %v6161_v45  ;;  %v2290_v7 = vmul.f32 0.1, %v2159_v48 }
 0x325   :  { %v2111_v51 = vpop.f32.mrf.mxu1 }
 0x326   :  { %2626 = vmatmul.bf16.gmra.mxu3 %v2341_v9  ;;  %2724 = vmatmul.bf16.gmra.mxu0 %v2341_v9  ;;  %v2112_v37 = vadd.f32 %v2111_v51, %v6159_v17  ;;  %v2257_v33 = vadd.f32 %v2256_v53, %v2208_v30  ;;  %v2322_v31 = vmax.f32 %v2159_v48, %v2290_v7  ;;  %v5147_v51 = vld [vmem:[#allocation9 + $0x84] sm:$0xf0] }
 0x327   :  { %v4753_v48 = vor.u32 %v5147_v51, %v4752_v21 }
 0x328   :  { %v2291_v23 = vmul.f32 0.1, %v2257_v33 }
 0x329   :  { %v2160_v61 = vpop.f32.mrf.mxu3  ;;  %3074 = vmatpush.bf16.msra.mxu3 %v4753_v48 }
 0x32a   :  { %v2161_v59 = vadd.f32 %v2160_v61, %v2112_v37  ;;  %v2323_v56 = vmax.f32 %v2257_v33, %v2291_v23  ;;  %v4689_v37 = vor.u32 %v5131_v57, %v4688_v52  ;;  %v2378_v61 = vld [vmem:[%s6481_s10] sm:$0x3]  ;;  %v5192_v57 = vld [vmem:[#allocation10 + $0xf4] sm:$0xf] }
 0x32b   :  { %v2209_v34 = vpop.f32.mrf.mxu2  ;;  %v2261_v32 = vpop.f32.mrf.mxu0  ;;  %v6198_v33 = vperm.slane %v2378_v61, 1 }
 0x32c   :  { %v2292_v12 = vmul.f32 0.1, %v2161_v59  ;;  %v2210_v46 = vadd.f32 %v2209_v34, %v6161_v45  ;;  %3025 = vmatpush.bf16.msra.mxu1 %v4689_v37  ;;  %v4938_v37 = vld [vmem:[#allocation10 + $0xf8] sm:$0xf0] }
 0x32d   :  { %v2114_v60 = vpop.f32.mrf.mxu1 }
 0x32e   :  { %v2324_v47 = vmax.f32 %v2161_v59, %v2292_v12  ;;  %v2259_v49 = vadd.f32 %v2258_v44, %v2210_v46  ;;  %v2115_v27 = vadd.f32 %v2114_v60, %v6159_v17  ;;  %v6200_v12 = vperm.slane %v2378_v61, 0 }
 0x32f   :  { %v4941_v61 = vor.u32 %v5192_v57, %v4938_v37 }
 0x330   :  { %v2293_v35 = vmul.f32 0.1, %v2259_v49  ;;  %v2342_v42 = vpack.c.bf16 %v2324_v47, %v2322_v31 }
 0x331   :  { %v2163_v55 = vpop.f32.mrf.mxu3 }
 0x332   :  { %v2325_v4 = vmax.f32 %v2259_v49, %v2293_v35  ;;  %2582 = vmatmul.bf16.gmra.mxu1 %v2342_v42  ;;  %2680 = vmatmul.bf16.gmra.mxu2 %v2342_v42  ;;  %v2164_v25 = vadd.f32 %v2163_v55, %v2115_v27  ;;  %v5193_v27 = vld [vmem:[#allocation10 + $0xf4] sm:$0xf0] }
 0x333   :  { %v2212_v5 = vpop.f32.mrf.mxu2  ;;  %v2263_v0 = vpop.f32.mrf.mxu0  ;;  %v4937_v24 = vor.u32 %v5193_v27, %v4936_v28 }
 0x334   :  { %v2343_v1 = vpack.c.bf16 %v2325_v4, %v2323_v56  ;;  %v2213_v2 = vadd.f32 %v2212_v5, %v6161_v45  ;;  %v2294_v53 = vmul.f32 0.1, %v2164_v25 }
 0x335   :  { %v2116_v10 = vpop.f32.mrf.mxu1  ;;  %3541 = vmatpush.bf16.msrb.mxu3 %v4937_v24 }
 0x336   :  { %2631 = vmatmul.bf16.gmra.mxu3 %v2343_v1  ;;  %2729 = vmatmul.bf16.gmra.mxu0 %v2343_v1  ;;  %v2117_v19 = vadd.f32 %v2116_v10, %v6159_v17  ;;  %v2262_v26 = vadd.f32 %v2261_v32, %v2213_v2  ;;  %v2326_v13 = vmax.f32 %v2164_v25, %v2294_v53 }
 0x338   :  { %v2295_v18 = vmul.f32 0.1, %v2262_v26 }
 0x339   :  { %v2165_v14 = vpop.f32.mrf.mxu3 }
 0x33a   :  { %v2166_v6 = vadd.f32 %v2165_v14, %v2117_v19  ;;  %v2327_v17 = vmax.f32 %v2262_v26, %v2295_v18  ;;  %v4872_v19 = vld [vmem:[#allocation10 + $0x70] sm:$0xf]  ;;  %v5177_v14 = vld [vmem:[#allocation10 + $0x74] sm:$0xf0]  ;;  %v5176_v18 = vld [vmem:[#allocation10 + $0x74] sm:$0xf] }
 0x33b   :  { %v2214_v36 = vpop.f32.mrf.mxu2  ;;  %v4873_v26 = vor.u32 %v5177_v14, %v4872_v19 }
 0x33c   :  { %v2296_v41 = vmul.f32 0.1, %v2166_v6  ;;  %v2215_v16 = vadd.f32 %v2214_v36, %v6161_v45  ;;  %v4754_v45 = vld [vmem:[#allocation9 + $0x88] sm:$0xf0] }
 0x33d   :  { %v4757_v50 = vor.u32 %v5146_v39, %v4754_v45  ;;  %3492 = vmatpush.bf16.msrb.mxu1 %v4873_v26 }
 0x33e   :  { %v2328_v20 = vmax.f32 %v2166_v6, %v2296_v41  ;;  %v2264_v8 = vadd.f32 %v2263_v0, %v2215_v16 }
 0x33f   :  { %3172 = vmatpush.bf16.msra.mxu0 %v4757_v50 }
 0x340   :  { %v2297_v40 = vmul.f32 0.1, %v2264_v8  ;;  %v2344_v29 = vpack.c.bf16 %v2328_v20, %v2326_v13  ;;  %v4874_v20 = vld [vmem:[#allocation10 + $0x78] sm:$0xf0] }
 0x341   :  { %v4877_v11 = vor.u32 %v5176_v18, %v4874_v20 }
 0x342   :  { %v2329_v9 = vmax.f32 %v2264_v8, %v2297_v40  ;;  %2587 = vmatmul.bf16.gmra.mxu1 %v2344_v29  ;;  %2685 = vmatmul.bf16.gmra.mxu2 %v2344_v29 }
 0x343   :  { %3590 = vmatpush.bf16.msrb.mxu2 %v4877_v11  ;;  %3639 = vmatpush.bf16.msrb.mxu0 %v4941_v61 }
 0x344   :  { %v2345_v30 = vpack.c.bf16 %v2329_v9, %v2327_v17 }
 0x346   :  { %2636 = vmatmul.bf16.gmra.mxu3 %v2345_v30  ;;  %2734 = vmatmul.bf16.gmra.mxu0 %v2345_v30 }
 0x34f   :  { %v2553_v44 = vpop.f32.mrf.mxu1 }
 0x350   :  { %v2554_v23 = vadd.f32 %v2553_v44, %v6200_v12 }
 0x353   :  { %v2700_v7 = vpop.f32.mrf.mxu0 }
 0x355   :  { %v2651_v59 = vpop.f32.mrf.mxu2 }
 0x356   :  { %v2652_v46 = vadd.f32 %v2651_v59, %v6198_v33  ;;  %v5191_v59 = vld [vmem:[#allocation10 + $0xe4] sm:$0xf0] }
 0x357   :  { %v2555_v34 = vpop.f32.mrf.mxu1 }
 0x358   :  { %v2701_v47 = vadd.f32 %v2700_v7, %v2652_v46  ;;  %v2556_v55 = vadd.f32 %v2555_v34, %v6200_v12  ;;  %v4928_v7 = vld [vmem:[#allocation10 + $0xe0] sm:$0xf] }
 0x359   :  { %v2602_v60 = vpop.f32.mrf.mxu3 }
 0x35a   :  { %v2603_v35 = vadd.f32 %v2602_v60, %v2554_v23  ;;  %v2741_v63 = vmul.f32 0.1, %v2701_v47  ;;  %v4864_v23 = vld [vmem:[#allocation10 + $0x60] sm:$0xf] }
 0x35b   :  { %v2702_v31 = vpop.f32.mrf.mxu0 }
 0x35c   :  { %v2740_v3 = vmul.f32 0.1, %v2603_v35  ;;  %v2773_v32 = vmax.f32 %v2701_v47, %v2741_v63  ;;  %v5175_v47 = vld [vmem:[#allocation10 + $0x64] sm:$0xf0] }
 0x35d   :  { %v2653_v49 = vpop.f32.mrf.mxu2 }
 0x35e   :  { %v2654_v42 = vadd.f32 %v2653_v49, %v6198_v33  ;;  %v2772_v10 = vmax.f32 %v2603_v35, %v2740_v3  ;;  %v4865_v35 = vor.u32 %v5175_v47, %v4864_v23  ;;  %v5174_v3 = vld [vmem:[#allocation10 + $0x64] sm:$0xf] }
 0x35f   :  { %v2558_v54 = vpop.f32.mrf.mxu1 }
 0x360   :  { %v2703_v58 = vadd.f32 %v2702_v31, %v2654_v42  ;;  %v2559_v0 = vadd.f32 %v2558_v54, %v6200_v12  ;;  %v4929_v31 = vor.u32 %v5191_v59, %v4928_v7  ;;  %3493 = vmatpush.bf16.msrb.mxu1 %v4865_v35 }
 0x361   :  { %v2604_v15 = vpop.f32.mrf.mxu3 }
 0x362   :  { %v2743_v56 = vmul.f32 0.1, %v2703_v58  ;;  %v2605_v4 = vadd.f32 %v2604_v15, %v2556_v55  ;;  %3542 = vmatpush.bf16.msrb.mxu3 %v4929_v31 }
 0x363   :  { %v2705_v43 = vpop.f32.mrf.mxu0 }
 0x364   :  { %v2775_v5 = vmax.f32 %v2703_v58, %v2743_v56  ;;  %v2742_v62 = vmul.f32 0.1, %v2605_v4  ;;  %v4866_v56 = vld [vmem:[#allocation10 + $0x68] sm:$0xf0] }
 0x365   :  { %v2656_v1 = vpop.f32.mrf.mxu2 }
 0x366   :  { %v2805_v25 = vpack.c.bf16 %v2775_v5, %v2773_v32  ;;  %v2774_v2 = vmax.f32 %v2605_v4, %v2742_v62  ;;  %v2657_v36 = vadd.f32 %v2656_v1, %v6198_v33 }
 0x367   :  { %v2560_v53 = vpop.f32.mrf.mxu1 }
 0x368   :  { %v2804_v6 = vpack.c.bf16 %v2774_v2, %v2772_v10  ;;  %3075 = vmatmul.bf16.vlgmr.msra.gmra.mxu3 %v2805_v25  ;;  %3173 = vmatmul.bf16.vlgmr.msra.gmra.mxu0 %v2805_v25  ;;  %v2706_v13 = vadd.f32 %v2705_v43, %v2657_v36  ;;  %v2561_v17 = vadd.f32 %v2560_v53, %v6200_v12  ;;  %v4930_v36 = vld [vmem:[#allocation10 + $0xe8] sm:$0xf0] }
 0x369   :  { %v2607_v41 = vpop.f32.mrf.mxu3  ;;  %v4869_v43 = vor.u32 %v5174_v3, %v4866_v56 }
 0x36a   :  { %3026 = vmatmul.bf16.vlgmr.msra.gmra.mxu1 %v2804_v6  ;;  %3124 = vmatmul.bf16.vlgmr.msra.gmra.mxu2 %v2804_v6  ;;  %v2608_v38 = vadd.f32 %v2607_v41, %v2559_v0  ;;  %v2745_v29 = vmul.f32 0.1, %v2706_v13  ;;  %v5190_v6 = vld [vmem:[#allocation10 + $0xe4] sm:$0xf]  ;;  %v4920_v0 = vld [vmem:[#allocation10 + $0xd0] sm:$0xf] }
 0x36b   :  { %v2707_v16 = vpop.f32.mrf.mxu0  ;;  %3591 = vmatpush.bf16.msrb.mxu2 %v4869_v43 }
 0x36c   :  { %v2744_v51 = vmul.f32 0.1, %v2608_v38  ;;  %v2777_v30 = vmax.f32 %v2706_v13, %v2745_v29  ;;  %v5189_v13 = vld [vmem:[#allocation10 + $0xd4] sm:$0xf0] }
 0x36d   :  { %v2658_v8 = vpop.f32.mrf.mxu2  ;;  %v4921_v11 = vor.u32 %v5189_v13, %v4920_v0 }
 0x36e   :  { %v2659_v22 = vadd.f32 %v2658_v8, %v6198_v33  ;;  %v2776_v34 = vmax.f32 %v2608_v38, %v2744_v51  ;;  %v4856_v38 = vld [vmem:[#allocation10 + $0x50] sm:$0xf] }
 0x36f   :  { %v2563_v40 = vpop.f32.mrf.mxu1  ;;  %3543 = vmatpush.bf16.msrb.mxu3 %v4921_v11 }
 0x370   :  { %v2708_v9 = vadd.f32 %v2707_v16, %v2659_v22  ;;  %v2564_v58 = vadd.f32 %v2563_v40, %v6200_v12  ;;  %v4933_v16 = vor.u32 %v5190_v6, %v4930_v36  ;;  %v5173_v22 = vld [vmem:[#allocation10 + $0x54] sm:$0xf0] }
 0x371   :  { %v2609_v21 = vpop.f32.mrf.mxu3  ;;  %v4857_v29 = vor.u32 %v5173_v22, %v4856_v38 }
 0x372   :  { %v2747_v39 = vmul.f32 0.1, %v2708_v9  ;;  %v2610_v48 = vadd.f32 %v2609_v21, %v2561_v17  ;;  %3640 = vmatpush.bf16.msrb.mxu0 %v4933_v16 }
 0x373   :  { %v2710_v45 = vpop.f32.mrf.mxu0  ;;  %3494 = vmatpush.bf16.msrb.mxu1 %v4857_v29 }
 0x374   :  { %v2779_v50 = vmax.f32 %v2708_v9, %v2747_v39  ;;  %v2746_v52 = vmul.f32 0.1, %v2610_v48 }
 0x375   :  { %v2661_v44 = vpop.f32.mrf.mxu2 }
 0x376   :  { %v2778_v46 = vmax.f32 %v2610_v48, %v2746_v52  ;;  %v2807_v60 = vpack.c.bf16 %v2779_v50, %v2777_v30  ;;  %v2662_v42 = vadd.f32 %v2661_v44, %v6198_v33  ;;  %v4858_v30 = vld [vmem:[#allocation10 + $0x58] sm:$0xf0] }
 0x377   :  { %v2565_v49 = vpop.f32.mrf.mxu1 }
 0x378   :  { %3080 = vmatmul.bf16.gmra.mxu3 %v2807_v60  ;;  %3178 = vmatmul.bf16.gmra.mxu0 %v2807_v60  ;;  %v2806_v54 = vpack.c.bf16 %v2778_v46, %v2776_v34  ;;  %v2711_v15 = vadd.f32 %v2710_v45, %v2662_v42  ;;  %v2566_v27 = vadd.f32 %v2565_v49, %v6200_v12  ;;  %v5172_v45 = vld [vmem:[#allocation10 + $0x54] sm:$0xf] }
 0x379   :  { %v2612_v63 = vpop.f32.mrf.mxu3  ;;  %v4861_v52 = vor.u32 %v5172_v45, %v4858_v30  ;;  %v5188_v42 = vld [vmem:[#allocation10 + $0xd4] sm:$0xf] }
 0x37a   :  { %3031 = vmatmul.bf16.gmra.mxu1 %v2806_v54  ;;  %3129 = vmatmul.bf16.gmra.mxu2 %v2806_v54  ;;  %v2613_v32 = vadd.f32 %v2612_v63, %v2564_v58  ;;  %v2749_v28 = vmul.f32 0.1, %v2711_v15  ;;  %v4922_v54 = vld [vmem:[#allocation10 + $0xd8] sm:$0xf0]  ;;  %v4912_v58 = vld [vmem:[#allocation10 + $0xc0] sm:$0xf] }
 0x37b   :  { %v2712_v55 = vpop.f32.mrf.mxu0  ;;  %3592 = vmatpush.bf16.msrb.mxu2 %v4861_v52 }
 0x37c   :  { %v2748_v10 = vmul.f32 0.1, %v2613_v32  ;;  %v2781_v14 = vmax.f32 %v2711_v15, %v2749_v28  ;;  %v5187_v15 = vld [vmem:[#allocation10 + $0xc4] sm:$0xf0] }
 0x37d   :  { %v2663_v4 = vpop.f32.mrf.mxu2  ;;  %v4913_v43 = vor.u32 %v5187_v15, %v4912_v58 }
 0x37e   :  { %v2664_v5 = vadd.f32 %v2663_v4, %v6198_v33  ;;  %v2780_v18 = vmax.f32 %v2613_v32, %v2748_v10  ;;  %v4848_v32 = vld [vmem:[#allocation10 + $0x40] sm:$0xf] }
 0x37f   :  { %v2568_v62 = vpop.f32.mrf.mxu1  ;;  %3544 = vmatpush.bf16.msrb.mxu3 %v4913_v43 }
 0x380   :  { %v2713_v1 = vadd.f32 %v2712_v55, %v2664_v5  ;;  %v2569_v39 = vadd.f32 %v2568_v62, %v6200_v12  ;;  %v4925_v55 = vor.u32 %v5188_v42, %v4922_v54  ;;  %v5171_v5 = vld [vmem:[#allocation10 + $0x44] sm:$0xf0] }
 0x381   :  { %v2614_v24 = vpop.f32.mrf.mxu3  ;;  %v4849_v28 = vor.u32 %v5171_v5, %v4848_v32 }
 0x382   :  { %v2751_v25 = vmul.f32 0.1, %v2713_v1  ;;  %v2615_v2 = vadd.f32 %v2614_v24, %v2566_v27  ;;  %3641 = vmatpush.bf16.msrb.mxu0 %v4925_v55 }
 0x383   :  { %v2715_v19 = vpop.f32.mrf.mxu0  ;;  %3495 = vmatpush.bf16.msrb.mxu1 %v4849_v28 }
 0x384   :  { %v2783_v53 = vmax.f32 %v2713_v1, %v2751_v25  ;;  %v2750_v26 = vmul.f32 0.1, %v2615_v2 }
 0x385   :  { %v2666_v41 = vpop.f32.mrf.mxu2 }
 0x386   :  { %v2782_v20 = vmax.f32 %v2615_v2, %v2750_v26  ;;  %v2809_v8 = vpack.c.bf16 %v2783_v53, %v2781_v14  ;;  %v2667_v17 = vadd.f32 %v2666_v41, %v6198_v33  ;;  %v4850_v14 = vld [vmem:[#allocation10 + $0x48] sm:$0xf0] }
 0x387   :  { %v2570_v40 = vpop.f32.mrf.mxu1 }
 0x388   :  { %3085 = vmatmul.bf16.gmra.mxu3 %v2809_v8  ;;  %3183 = vmatmul.bf16.gmra.mxu0 %v2809_v8  ;;  %v2808_v9 = vpack.c.bf16 %v2782_v20, %v2780_v18  ;;  %v2716_v48 = vadd.f32 %v2715_v19, %v2667_v17  ;;  %v2571_v7 = vadd.f32 %v2570_v40, %v6200_v12  ;;  %v5170_v19 = vld [vmem:[#allocation10 + $0x44] sm:$0xf] }
 0x389   :  { %v2617_v21 = vpop.f32.mrf.mxu3  ;;  %v4853_v26 = vor.u32 %v5170_v19, %v4850_v14  ;;  %v5186_v17 = vld [vmem:[#allocation10 + $0xc4] sm:$0xf] }
 0x38a   :  { %3036 = vmatmul.bf16.gmra.mxu1 %v2808_v9  ;;  %3134 = vmatmul.bf16.gmra.mxu2 %v2808_v9  ;;  %v2618_v57 = vadd.f32 %v2617_v21, %v2569_v39  ;;  %v2753_v61 = vmul.f32 0.1, %v2716_v48  ;;  %v4914_v9 = vld [vmem:[#allocation10 + $0xc8] sm:$0xf0]  ;;  %v4904_v39 = vld [vmem:[#allocation10 + $0xb0] sm:$0xf] }
 0x38b   :  { %v2717_v51 = vpop.f32.mrf.mxu0  ;;  %3593 = vmatpush.bf16.msrb.mxu2 %v4853_v26 }
 0x38c   :  { %v2752_v46 = vmul.f32 0.1, %v2618_v57  ;;  %v2785_v47 = vmax.f32 %v2716_v48, %v2753_v61  ;;  %v5185_v48 = vld [vmem:[#allocation10 + $0xb4] sm:$0xf0] }
 0x38d   :  { %v2668_v50 = vpop.f32.mrf.mxu2  ;;  %v4905_v52 = vor.u32 %v5185_v48, %v4904_v39 }
 0x38e   :  { %v2669_v37 = vadd.f32 %v2668_v50, %v6198_v33  ;;  %v2784_v3 = vmax.f32 %v2618_v57, %v2752_v46  ;;  %v4840_v57 = vld [vmem:[#allocation10 + $0x30] sm:$0xf] }
 0x38f   :  { %v2573_v44 = vpop.f32.mrf.mxu1  ;;  %3545 = vmatpush.bf16.msrb.mxu3 %v4905_v52 }
 0x390   :  { %v2718_v59 = vadd.f32 %v2717_v51, %v2669_v37  ;;  %v2574_v25 = vadd.f32 %v2573_v44, %v6200_v12  ;;  %v4917_v51 = vor.u32 %v5186_v17, %v4914_v9  ;;  %v5169_v37 = vld [vmem:[#allocation10 + $0x34] sm:$0xf0]  ;;  %v4888_v17 = vld [vmem:[#allocation10 + $0x90] sm:$0xf] }
 0x391   :  { %v2619_v34 = vpop.f32.mrf.mxu3  ;;  %v4841_v61 = vor.u32 %v5169_v37, %v4840_v57  ;;  %v5181_v9 = vld [vmem:[#allocation10 + $0x94] sm:$0xf0] }
 0x392   :  { %v2755_v60 = vmul.f32 0.1, %v2718_v59  ;;  %v2620_v31 = vadd.f32 %v2619_v34, %v2571_v7  ;;  %3642 = vmatpush.bf16.msrb.mxu0 %v4917_v51  ;;  %v4889_v48 = vor.u32 %v5181_v9, %v4888_v17 }
 0x393   :  { %v2720_v23 = vpop.f32.mrf.mxu0  ;;  %3496 = vmatpush.bf16.msrb.mxu1 %v4841_v61 }
 0x394   :  { %v2787_v49 = vmax.f32 %v2718_v59, %v2755_v60  ;;  %v2754_v35 = vmul.f32 0.1, %v2620_v31 }
 0x395   :  { %v2671_v63 = vpop.f32.mrf.mxu2 }
 0x396   :  { %v2786_v56 = vmax.f32 %v2620_v31, %v2754_v35  ;;  %v2811_v4 = vpack.c.bf16 %v2787_v49, %v2785_v47  ;;  %v2672_v27 = vadd.f32 %v2671_v63, %v6198_v33  ;;  %v4842_v47 = vld [vmem:[#allocation10 + $0x38] sm:$0xf0] }
 0x397   :  { %v2575_v62 = vpop.f32.mrf.mxu1 }
 0x398   :  { %3090 = vmatmul.bf16.gmra.mxu3 %v2811_v4  ;;  %3188 = vmatmul.bf16.gmra.mxu0 %v2811_v4  ;;  %v2810_v1 = vpack.c.bf16 %v2786_v56, %v2784_v3  ;;  %v2721_v2 = vadd.f32 %v2720_v23, %v2672_v27  ;;  %v2576_v0 = vadd.f32 %v2575_v62, %v6200_v12  ;;  %v5168_v23 = vld [vmem:[#allocation10 + $0x34] sm:$0xf] }
 0x399   :  { %v2622_v24 = vpop.f32.mrf.mxu3  ;;  %v4845_v35 = vor.u32 %v5168_v23, %v4842_v47  ;;  %v5184_v27 = vld [vmem:[#allocation10 + $0xb4] sm:$0xf] }
 0x39a   :  { %3041 = vmatmul.bf16.gmra.mxu1 %v2810_v1  ;;  %3139 = vmatmul.bf16.gmra.mxu2 %v2810_v1  ;;  %v2623_v6 = vadd.f32 %v2622_v24, %v2574_v25  ;;  %v2757_v16 = vmul.f32 0.1, %v2721_v2  ;;  %v4906_v1 = vld [vmem:[#allocation10 + $0xb8] sm:$0xf0]  ;;  %v4896_v25 = vld [vmem:[#allocation10 + $0xa0] sm:$0xf] }
 0x39b   :  { %v2722_v10 = vpop.f32.mrf.mxu0  ;;  %3594 = vmatpush.bf16.msrb.mxu2 %v4845_v35 }
 0x39c   :  { %v2756_v20 = vmul.f32 0.1, %v2623_v6  ;;  %v2789_v22 = vmax.f32 %v2721_v2, %v2757_v16  ;;  %v5183_v2 = vld [vmem:[#allocation10 + $0xa4] sm:$0xf0] }
 0x39d   :  { %v2673_v53 = vpop.f32.mrf.mxu2  ;;  %v4897_v26 = vor.u32 %v5183_v2, %v4896_v25 }
 0x39e   :  { %v2674_v36 = vadd.f32 %v2673_v53, %v6198_v33  ;;  %v2788_v45 = vmax.f32 %v2623_v6, %v2756_v20  ;;  %v4832_v6 = vld [vmem:[#allocation10 + $0x20] sm:$0xf] }
 0x39f   :  { %v2578_v41 = vpop.f32.mrf.mxu1  ;;  %3546 = vmatpush.bf16.msrb.mxu3 %v4897_v26 }
 0x3a0   :  { %v2723_v13 = vadd.f32 %v2722_v10, %v2674_v36  ;;  %v2579_v60 = vadd.f32 %v2578_v41, %v6200_v12  ;;  %v4909_v10 = vor.u32 %v5184_v27, %v4906_v1  ;;  %v5167_v36 = vld [vmem:[#allocation10 + $0x24] sm:$0xf0]  ;;  %v5166_v41 = vld [vmem:[#allocation10 + $0x24] sm:$0xf] }
 0x3a1   :  { %v2624_v18 = vpop.f32.mrf.mxu3  ;;  %v4833_v16 = vor.u32 %v5167_v36, %v4832_v6 }
 0x3a2   :  { %v2759_v8 = vmul.f32 0.1, %v2723_v13  ;;  %v2625_v11 = vadd.f32 %v2624_v18, %v2576_v0  ;;  %3643 = vmatpush.bf16.msrb.mxu0 %v4909_v10  ;;  %v4834_v0 = vld [vmem:[#allocation10 + $0x28] sm:$0xf0] }
 0x3a3   :  { %v2725_v38 = vpop.f32.mrf.mxu0  ;;  %3497 = vmatpush.bf16.msrb.mxu1 %v4833_v16  ;;  %3547 = vmatpush.bf16.msrb.mxu3 %v4889_v48  ;;  %v4890_v16 = vld [vmem:[#allocation10 + $0x98] sm:$0xf0] }
 0x3a4   :  { %v2791_v40 = vmax.f32 %v2723_v13, %v2759_v8  ;;  %v2758_v29 = vmul.f32 0.1, %v2625_v11 }
 0x3a5   :  { %v2676_v21 = vpop.f32.mrf.mxu2 }
 0x3a6   :  { %v2790_v30 = vmax.f32 %v2625_v11, %v2758_v29  ;;  %v2813_v50 = vpack.c.bf16 %v2791_v40, %v2789_v22  ;;  %v2677_v7 = vadd.f32 %v2676_v21, %v6198_v33  ;;  %v4837_v11 = vor.u32 %v5166_v41, %v4834_v0  ;;  %v4898_v22 = vld [vmem:[#allocation10 + $0xa8] sm:$0xf0]  ;;  %v4824_v21 = vld [vmem:[#allocation10 + $0x10] sm:$0xf]  ;;  %v5180_v41 = vld [vmem:[#allocation10 + $0x94] sm:$0xf] }
 0x3a7   :  { %v2580_v44 = vpop.f32.mrf.mxu1  ;;  %v4893_v0 = vor.u32 %v5180_v41, %v4890_v16 }
 0x3a8   :  { %3095 = vmatmul.bf16.gmra.mxu3 %v2813_v50  ;;  %3193 = vmatmul.bf16.gmra.mxu0 %v2813_v50  ;;  %v2812_v59 = vpack.c.bf16 %v2790_v30, %v2788_v45  ;;  %v2726_v31 = vadd.f32 %v2725_v38, %v2677_v7  ;;  %v2581_v58 = vadd.f32 %v2580_v44, %v6200_v12  ;;  %v5182_v38 = vld [vmem:[#allocation10 + $0xa4] sm:$0xf]  ;;  %v5165_v45 = vld [vmem:[#allocation10 + $0x14] sm:$0xf0] }
 0x3a9   :  { %v2627_v34 = vpop.f32.mrf.mxu3  ;;  %3595 = vmatpush.bf16.msrb.mxu2 %v4837_v11  ;;  %v4901_v29 = vor.u32 %v5182_v38, %v4898_v22  ;;  %v4825_v50 = vor.u32 %v5165_v45, %v4824_v21  ;;  %v4816_v38 = vld [vmem:[#allocation10] sm:$0xf]  ;;  %v5163_v22 = vld [vmem:[#allocation10 + $0x4] sm:$0xf0]  ;;  %v5178_v21 = vld [vmem:[#allocation10 + $0x84] sm:$0xf] }
 0x3aa   :  { %3046 = vmatmul.bf16.gmra.mxu1 %v2812_v59  ;;  %3144 = vmatmul.bf16.gmra.mxu2 %v2812_v59  ;;  %v2628_v42 = vadd.f32 %v2627_v34, %v2579_v60  ;;  %v2761_v55 = vmul.f32 0.1, %v2726_v31  ;;  %v2852_v45 = vld [vmem:[%s6483_s12] sm:$0x3] }
 0x3ab   :  { %v2727_v46 = vpop.f32.mrf.mxu0  ;;  %3644 = vmatpush.bf16.msrb.mxu0 %v4901_v29  ;;  %3498 = vmatpush.bf16.msrb.mxu1 %v4825_v50  ;;  %v4818_v29 = vld [vmem:[#allocation10 + $0x8] sm:$0xf0]  ;;  %v6237_v50 = vperm.slane %v2852_v45, 0 }
 0x3ac   :  { %v2760_v56 = vmul.f32 0.1, %v2628_v42  ;;  %v2793_v5 = vmax.f32 %v2726_v31, %v2761_v55 }
 0x3ad   :  { %v2678_v49 = vpop.f32.mrf.mxu2 }
 0x3ae   :  { %v2679_v54 = vadd.f32 %v2678_v49, %v6198_v33  ;;  %v2792_v19 = vmax.f32 %v2628_v42, %v2760_v56  ;;  %v5164_v42 = vld [vmem:[#allocation10 + $0x14] sm:$0xf] }
 0x3af   :  { %v2583_v63 = vpop.f32.mrf.mxu1  ;;  %3645 = vmatpush.bf16.msrb.mxu0 %v4893_v0 }
 0x3b0   :  { %v2728_v15 = vadd.f32 %v2727_v46, %v2679_v54  ;;  %v2584_v51 = vadd.f32 %v2583_v63, %v6200_v12  ;;  %v4826_v54 = vld [vmem:[#allocation10 + $0x18] sm:$0xf0] }
 0x3b1   :  { %v2629_v3 = vpop.f32.mrf.mxu3 }
 0x3b2   :  { %v2763_v4 = vmul.f32 0.1, %v2728_v15  ;;  %v2630_v43 = vadd.f32 %v2629_v3, %v2581_v58 }
 0x3b3   :  { %v2730_v32 = vpop.f32.mrf.mxu0 }
 0x3b4   :  { %v2795_v62 = vmax.f32 %v2728_v15, %v2763_v4  ;;  %v2762_v28 = vmul.f32 0.1, %v2630_v43  ;;  %v4829_v15 = vor.u32 %v5164_v42, %v4826_v54 }
 0x3b5   :  { %v2681_v24 = vpop.f32.mrf.mxu2 }
 0x3b6   :  { %v2794_v14 = vmax.f32 %v2630_v43, %v2762_v28  ;;  %v2815_v53 = vpack.c.bf16 %v2795_v62, %v2793_v5  ;;  %v2682_v13 = vadd.f32 %v2681_v24, %v6198_v33  ;;  %3596 = vmatpush.bf16.msrb.mxu2 %v4829_v15 }
 0x3b7   :  { %v2585_v20 = vpop.f32.mrf.mxu1 }
 0x3b8   :  { %3100 = vmatmul.bf16.gmra.mxu3 %v2815_v53  ;;  %3198 = vmatmul.bf16.gmra.mxu0 %v2815_v53  ;;  %v2814_v18 = vpack.c.bf16 %v2794_v14, %v2792_v19  ;;  %v2731_v39 = vadd.f32 %v2730_v32, %v2682_v13  ;;  %v2586_v44 = vadd.f32 %v2585_v20, %v6200_v12  ;;  %v4880_v13 = vld [vmem:[#allocation10 + $0x80] sm:$0xf] }
 0x3b9   :  { %v2632_v8 = vpop.f32.mrf.mxu3 }
 0x3ba   :  { %3051 = vmatmul.bf16.gmra.mxu1 %v2814_v18  ;;  %3149 = vmatmul.bf16.gmra.mxu2 %v2814_v18  ;;  %v2633_v52 = vadd.f32 %v2632_v8, %v2584_v51  ;;  %v2765_v37 = vmul.f32 0.1, %v2731_v39  ;;  %v5179_v18 = vld [vmem:[#allocation10 + $0x84] sm:$0xf0]  ;;  %v4882_v51 = vld [vmem:[#allocation10 + $0x88] sm:$0xf0] }
 0x3bb   :  { %v2732_v40 = vpop.f32.mrf.mxu0  ;;  %v4881_v11 = vor.u32 %v5179_v18, %v4880_v13 }
 0x3bc   :  { %v2764_v59 = vmul.f32 0.1, %v2633_v52  ;;  %v2797_v31 = vmax.f32 %v2731_v39, %v2765_v37  ;;  %v4885_v39 = vor.u32 %v5178_v21, %v4882_v51 }
 0x3bd   :  { %v2683_v30 = vpop.f32.mrf.mxu2  ;;  %3548 = vmatpush.bf16.msrb.mxu3 %v4881_v11 }
 0x3be   :  { %v2684_v57 = vadd.f32 %v2683_v30, %v6198_v33  ;;  %v2796_v63 = vmax.f32 %v2633_v52, %v2764_v59  ;;  %3646 = vmatpush.bf16.msrb.mxu0 %v4885_v39 }
 0x3bf   :  { %v2588_v60 = vpop.f32.mrf.mxu1 }
 0x3c0   :  { %v2733_v61 = vadd.f32 %v2732_v40, %v2684_v57  ;;  %v2589_v43 = vadd.f32 %v2588_v60, %v6200_v12  ;;  %v4817_v40 = vor.u32 %v5163_v22, %v4816_v38  ;;  %v6239_v57 = vperm.slane %v2852_v45, 1 }
 0x3c1   :  { %v2634_v7 = vpop.f32.mrf.mxu3 }
 0x3c2   :  { %v2767_v34 = vmul.f32 0.1, %v2733_v61  ;;  %v2635_v46 = vadd.f32 %v2634_v7, %v2586_v44  ;;  %3499 = vmatpush.bf16.msrb.mxu1 %v4817_v40 }
 0x3c3   :  { %v2735_v49 = vpop.f32.mrf.mxu0 }
 0x3c4   :  { %v2799_v23 = vmax.f32 %v2733_v61, %v2767_v34  ;;  %v2766_v47 = vmul.f32 0.1, %v2635_v46 }
 0x3c5   :  { %v2686_v35 = vpop.f32.mrf.mxu2 }
 0x3c6   :  { %v2798_v55 = vmax.f32 %v2635_v46, %v2766_v47  ;;  %v2817_v58 = vpack.c.bf16 %v2799_v23, %v2797_v31  ;;  %v2687_v3 = vadd.f32 %v2686_v35, %v6198_v33 }
 0x3c7   :  { %v2590_v5 = vpop.f32.mrf.mxu1 }
 0x3c8   :  { %3105 = vmatmul.bf16.gmra.mxu3 %v2817_v58  ;;  %3203 = vmatmul.bf16.gmra.mxu0 %v2817_v58  ;;  %v2816_v56 = vpack.c.bf16 %v2798_v55, %v2796_v63  ;;  %v2736_v32 = vadd.f32 %v2735_v49, %v2687_v3  ;;  %v2591_v10 = vadd.f32 %v2590_v5, %v6200_v12  ;;  %v5162_v12 = vld [vmem:[#allocation10 + $0x4] sm:$0xf] }
 0x3c9   :  { %v2637_v4 = vpop.f32.mrf.mxu3  ;;  %v4821_v9 = vor.u32 %v5162_v12, %v4818_v29 }
 0x3ca   :  { %3056 = vmatmul.bf16.gmra.mxu1 %v2816_v56  ;;  %3154 = vmatmul.bf16.gmra.mxu2 %v2816_v56  ;;  %v2638_v28 = vadd.f32 %v2637_v4, %v2589_v43  ;;  %v2769_v24 = vmul.f32 0.1, %v2736_v32 }
 0x3cb   :  { %v2737_v1 = vpop.f32.mrf.mxu0  ;;  %3597 = vmatpush.bf16.msrb.mxu2 %v4821_v9 }
 0x3cc   :  { %v2768_v19 = vmul.f32 0.1, %v2638_v28  ;;  %v2801_v26 = vmax.f32 %v2736_v32, %v2769_v24 }
 0x3cd   :  { %v2688_v62 = vpop.f32.mrf.mxu2 }
 0x3ce   :  { %v2689_v27 = vadd.f32 %v2688_v62, %v6198_v33  ;;  %v2800_v20 = vmax.f32 %v2638_v28, %v2768_v19 }
 0x3d0   :  { %v2738_v25 = vadd.f32 %v2737_v1, %v2689_v27 }
 0x3d1   :  { %v2639_v2 = vpop.f32.mrf.mxu3 }
 0x3d2   :  { %v2771_v14 = vmul.f32 0.1, %v2738_v25  ;;  %v2640_v53 = vadd.f32 %v2639_v2, %v2591_v10 }
 0x3d4   :  { %v2803_v6 = vmax.f32 %v2738_v25, %v2771_v14  ;;  %v2770_v36 = vmul.f32 0.1, %v2640_v53 }
 0x3d6   :  { %v2802_v8 = vmax.f32 %v2640_v53, %v2770_v36  ;;  %v2819_v33 = vpack.c.bf16 %v2803_v6, %v2801_v26 }
 0x3d8   :  { %3110 = vmatmul.bf16.gmra.mxu3 %v2819_v33  ;;  %3208 = vmatmul.bf16.gmra.mxu0 %v2819_v33  ;;  %v2818_v17 = vpack.c.bf16 %v2802_v8, %v2800_v20 }
 0x3da   :  { %3061 = vmatmul.bf16.gmra.mxu1 %v2818_v17  ;;  %3159 = vmatmul.bf16.gmra.mxu2 %v2818_v17 }
 0x3e5   :  { %v3174_v48 = vpop.f32.mrf.mxu0 }
 0x3e7   :  { %v3027_v30 = vpop.f32.mrf.mxu1 }
 0x3e8   :  { %v3028_v61 = vadd.f32 %v3027_v30, %v6237_v50 }
 0x3eb   :  { %v3076_v52 = vpop.f32.mrf.mxu3 }
 0x3ec   :  { %v3077_v59 = vadd.f32 %v3076_v52, %v3028_v61 }
 0x3ed   :  { %v3125_v37 = vpop.f32.mrf.mxu2  ;;  %v3176_v44 = vpop.f32.mrf.mxu0 }
 0x3ee   :  { %v3126_v34 = vadd.f32 %v3125_v37, %v6239_v57  ;;  %v3214_v31 = vmul.f32 0.1, %v3077_v59 }
 0x3ef   :  { %v3029_v7 = vpop.f32.mrf.mxu1 }
 0x3f0   :  { %v3030_v46 = vadd.f32 %v3029_v7, %v6237_v50  ;;  %v3175_v23 = vadd.f32 %v3174_v48, %v3126_v34  ;;  %v3246_v55 = vmax.f32 %v3077_v59, %v3214_v31 }
 0x3f2   :  { %v3215_v58 = vmul.f32 0.1, %v3175_v23 }
 0x3f3   :  { %v3078_v60 = vpop.f32.mrf.mxu3 }
 0x3f4   :  { %v3079_v47 = vadd.f32 %v3078_v60, %v3030_v46  ;;  %v3247_v32 = vmax.f32 %v3175_v23, %v3215_v58 }
 0x3f5   :  { %v3127_v49 = vpop.f32.mrf.mxu2  ;;  %v3179_v35 = vpop.f32.mrf.mxu0 }
 0x3f6   :  { %v3216_v42 = vmul.f32 0.1, %v3079_v47  ;;  %v3128_v54 = vadd.f32 %v3127_v49, %v6239_v57 }
 0x3f7   :  { %v3032_v63 = vpop.f32.mrf.mxu1 }
 0x3f8   :  { %v3248_v15 = vmax.f32 %v3079_v47, %v3216_v42  ;;  %v3177_v3 = vadd.f32 %v3176_v44, %v3128_v54  ;;  %v3033_v1 = vadd.f32 %v3032_v63, %v6237_v50 }
 0x3fa   :  { %v3278_v56 = vpack.c.bf16 %v3248_v15, %v3246_v55  ;;  %v3217_v4 = vmul.f32 0.1, %v3177_v3 }
 0x3fb   :  { %v3081_v43 = vpop.f32.mrf.mxu3 }
 0x3fc   :  { %v3249_v5 = vmax.f32 %v3177_v3, %v3217_v4  ;;  %3500 = vmatmul.bf16.vlgmr.msrb.gmra.mxu1 %v3278_v56  ;;  %3598 = vmatmul.bf16.vlgmr.msrb.gmra.mxu2 %v3278_v56  ;;  %v3082_v10 = vadd.f32 %v3081_v43, %v3033_v1 }
 0x3fd   :  { %v3130_v62 = vpop.f32.mrf.mxu2  ;;  %v3181_v28 = vpop.f32.mrf.mxu0 }
 0x3fe   :  { %v3279_v27 = vpack.c.bf16 %v3249_v5, %v3247_v32  ;;  %v3131_v25 = vadd.f32 %v3130_v62, %v6239_v57  ;;  %v3218_v14 = vmul.f32 0.1, %v3082_v10 }
 0x3ff   :  { %v3034_v24 = vpop.f32.mrf.mxu1 }
 0x400   :  { %3549 = vmatmul.bf16.vlgmr.msrb.gmra.mxu3 %v3279_v27  ;;  %3647 = vmatmul.bf16.vlgmr.msrb.gmra.mxu0 %v3279_v27  ;;  %v3035_v2 = vadd.f32 %v3034_v24, %v6237_v50  ;;  %v3180_v53 = vadd.f32 %v3179_v35, %v3131_v25  ;;  %v3250_v13 = vmax.f32 %v3082_v10, %v3218_v14 }
 0x402   :  { %v3219_v18 = vmul.f32 0.1, %v3180_v53 }
 0x403   :  { %v3083_v19 = vpop.f32.mrf.mxu3 }
 0x404   :  { %v3084_v26 = vadd.f32 %v3083_v19, %v3035_v2  ;;  %v3251_v22 = vmax.f32 %v3180_v53, %v3219_v18 }
 0x405   :  { %v3132_v6 = vpop.f32.mrf.mxu2  ;;  %v3184_v36 = vpop.f32.mrf.mxu0 }
 0x406   :  { %v3220_v41 = vmul.f32 0.1, %v3084_v26  ;;  %v3133_v16 = vadd.f32 %v3132_v6, %v6239_v57 }
 0x407   :  { %v3037_v0 = vpop.f32.mrf.mxu1 }
 0x408   :  { %v3252_v20 = vmax.f32 %v3084_v26, %v3220_v41  ;;  %v3182_v8 = vadd.f32 %v3181_v28, %v3133_v16  ;;  %v3038_v17 = vadd.f32 %v3037_v0, %v6237_v50 }
 0x40a   :  { %v3221_v33 = vmul.f32 0.1, %v3182_v8  ;;  %v3280_v11 = vpack.c.bf16 %v3252_v20, %v3250_v13 }
 0x40b   :  { %v3086_v38 = vpop.f32.mrf.mxu3 }
 0x40c   :  { %v3253_v12 = vmax.f32 %v3182_v8, %v3221_v33  ;;  %3505 = vmatmul.bf16.gmra.mxu1 %v3280_v11  ;;  %3603 = vmatmul.bf16.gmra.mxu2 %v3280_v11  ;;  %v3087_v51 = vadd.f32 %v3086_v38, %v3038_v17 }
 0x40d   :  { %v3135_v40 = vpop.f32.mrf.mxu2  ;;  %v3186_v29 = vpop.f32.mrf.mxu0 }
 0x40e   :  { %v3281_v9 = vpack.c.bf16 %v3253_v12, %v3251_v22  ;;  %v3136_v39 = vadd.f32 %v3135_v40, %v6239_v57  ;;  %v3222_v30 = vmul.f32 0.1, %v3087_v51 }
 0x40f   :  { %v3039_v21 = vpop.f32.mrf.mxu1 }
 0x410   :  { %3554 = vmatmul.bf16.gmra.mxu3 %v3281_v9  ;;  %3652 = vmatmul.bf16.gmra.mxu0 %v3281_v9  ;;  %v3040_v48 = vadd.f32 %v3039_v21, %v6237_v50  ;;  %v3185_v52 = vadd.f32 %v3184_v36, %v3136_v39  ;;  %v3254_v46 = vmax.f32 %v3087_v51, %v3222_v30 }
 0x412   :  { %v3223_v60 = vmul.f32 0.1, %v3185_v52 }
 0x413   :  { %v3088_v45 = vpop.f32.mrf.mxu3 }
 0x414   :  { %v3089_v37 = vadd.f32 %v3088_v45, %v3040_v48  ;;  %v3255_v42 = vmax.f32 %v3185_v52, %v3223_v60 }
 0x415   :  { %v3137_v44 = vpop.f32.mrf.mxu2  ;;  %v3189_v61 = vpop.f32.mrf.mxu0 }
 0x416   :  { %v3224_v7 = vmul.f32 0.1, %v3089_v37  ;;  %v3138_v59 = vadd.f32 %v3137_v44, %v6239_v57 }
 0x417   :  { %v3042_v34 = vpop.f32.mrf.mxu1 }
 0x418   :  { %v3256_v31 = vmax.f32 %v3089_v37, %v3224_v7  ;;  %v3187_v23 = vadd.f32 %v3186_v29, %v3138_v59  ;;  %v3043_v58 = vadd.f32 %v3042_v34, %v6237_v50 }
 0x41a   :  { %v3225_v47 = vmul.f32 0.1, %v3187_v23  ;;  %v3282_v49 = vpack.c.bf16 %v3256_v31, %v3254_v46 }
 0x41b   :  { %v3091_v35 = vpop.f32.mrf.mxu3 }
 0x41c   :  { %v3257_v54 = vmax.f32 %v3187_v23, %v3225_v47  ;;  %3510 = vmatmul.bf16.gmra.mxu1 %v3282_v49  ;;  %3608 = vmatmul.bf16.gmra.mxu2 %v3282_v49  ;;  %v3092_v56 = vadd.f32 %v3091_v35, %v3043_v58 }
 0x41d   :  { %v3140_v63 = vpop.f32.mrf.mxu2  ;;  %v3191_v55 = vpop.f32.mrf.mxu0 }
 0x41e   :  { %v3283_v15 = vpack.c.bf16 %v3257_v54, %v3255_v42  ;;  %v3141_v4 = vadd.f32 %v3140_v63, %v6239_v57  ;;  %v3226_v5 = vmul.f32 0.1, %v3092_v56 }
 0x41f   :  { %v3044_v3 = vpop.f32.mrf.mxu1 }
 0x420   :  { %3559 = vmatmul.bf16.gmra.mxu3 %v3283_v15  ;;  %3657 = vmatmul.bf16.gmra.mxu0 %v3283_v15  ;;  %v3045_v43 = vadd.f32 %v3044_v3, %v6237_v50  ;;  %v3190_v62 = vadd.f32 %v3189_v61, %v3141_v4  ;;  %v3258_v2 = vmax.f32 %v3092_v56, %v3226_v5 }
 0x422   :  { %v3227_v19 = vmul.f32 0.1, %v3190_v62 }
 0x423   :  { %v3093_v32 = vpop.f32.mrf.mxu3 }
 0x424   :  { %v3094_v28 = vadd.f32 %v3093_v32, %v3045_v43  ;;  %v3259_v41 = vmax.f32 %v3190_v62, %v3227_v19 }
 0x425   :  { %v3142_v27 = vpop.f32.mrf.mxu2  ;;  %v3194_v1 = vpop.f32.mrf.mxu0 }
 0x426   :  { %v3228_v24 = vmul.f32 0.1, %v3094_v28  ;;  %v3143_v10 = vadd.f32 %v3142_v27, %v6239_v57 }
 0x427   :  { %v3047_v25 = vpop.f32.mrf.mxu1 }
 0x428   :  { %v3260_v14 = vmax.f32 %v3094_v28, %v3228_v24  ;;  %v3192_v53 = vadd.f32 %v3191_v55, %v3143_v10  ;;  %v3048_v18 = vadd.f32 %v3047_v25, %v6237_v50 }
 0x42a   :  { %v3229_v26 = vmul.f32 0.1, %v3192_v53  ;;  %v3284_v6 = vpack.c.bf16 %v3260_v14, %v3258_v2 }
 0x42b   :  { %v3096_v36 = vpop.f32.mrf.mxu3 }
 0x42c   :  { %v3261_v16 = vmax.f32 %v3192_v53, %v3229_v26  ;;  %3515 = vmatmul.bf16.gmra.mxu1 %v3284_v6  ;;  %3613 = vmatmul.bf16.gmra.mxu2 %v3284_v6  ;;  %v3097_v33 = vadd.f32 %v3096_v36, %v3048_v18 }
 0x42d   :  { %v3145_v0 = vpop.f32.mrf.mxu2  ;;  %v3196_v13 = vpop.f32.mrf.mxu0 }
 0x42e   :  { %v3285_v20 = vpack.c.bf16 %v3261_v16, %v3259_v41  ;;  %v3146_v11 = vadd.f32 %v3145_v0, %v6239_v57  ;;  %v3230_v12 = vmul.f32 0.1, %v3097_v33 }
 0x42f   :  { %v3049_v8 = vpop.f32.mrf.mxu1 }
 0x430   :  { %3564 = vmatmul.bf16.gmra.mxu3 %v3285_v20  ;;  %3662 = vmatmul.bf16.gmra.mxu0 %v3285_v20  ;;  %v3050_v38 = vadd.f32 %v3049_v8, %v6237_v50  ;;  %v3195_v40 = vadd.f32 %v3194_v1, %v3146_v11  ;;  %v3262_v48 = vmax.f32 %v3097_v33, %v3230_v12 }
 0x432   :  { %v3231_v45 = vmul.f32 0.1, %v3195_v40 }
 0x433   :  { %v3098_v22 = vpop.f32.mrf.mxu3 }
 0x434   :  { %v3099_v29 = vadd.f32 %v3098_v22, %v3050_v38  ;;  %v3263_v7 = vmax.f32 %v3195_v40, %v3231_v45 }
 0x435   :  { %v3147_v17 = vpop.f32.mrf.mxu2  ;;  %v3199_v9 = vpop.f32.mrf.mxu0 }
 0x436   :  { %v3232_v21 = vmul.f32 0.1, %v3099_v29  ;;  %v3148_v51 = vadd.f32 %v3147_v17, %v6239_v57 }
 0x437   :  { %v3052_v39 = vpop.f32.mrf.mxu1 }
 0x438   :  { %v3264_v30 = vmax.f32 %v3099_v29, %v3232_v21  ;;  %v3197_v52 = vadd.f32 %v3196_v13, %v3148_v51  ;;  %v3053_v46 = vadd.f32 %v3052_v39, %v6237_v50 }
 0x43a   :  { %v3233_v37 = vmul.f32 0.1, %v3197_v52  ;;  %v3286_v44 = vpack.c.bf16 %v3264_v30, %v3262_v48 }
 0x43b   :  { %v3101_v61 = vpop.f32.mrf.mxu3 }
 0x43c   :  { %v3265_v59 = vmax.f32 %v3197_v52, %v3233_v37  ;;  %3520 = vmatmul.bf16.gmra.mxu1 %v3286_v44  ;;  %3618 = vmatmul.bf16.gmra.mxu2 %v3286_v44  ;;  %v3102_v47 = vadd.f32 %v3101_v61, %v3053_v46 }
 0x43d   :  { %v3150_v34 = vpop.f32.mrf.mxu2  ;;  %v3201_v31 = vpop.f32.mrf.mxu0 }
 0x43e   :  { %v3287_v60 = vpack.c.bf16 %v3265_v59, %v3263_v7  ;;  %v3151_v49 = vadd.f32 %v3150_v34, %v6239_v57  ;;  %v3234_v54 = vmul.f32 0.1, %v3102_v47 }
 0x43f   :  { %v3054_v23 = vpop.f32.mrf.mxu1 }
 0x440   :  { %3569 = vmatmul.bf16.gmra.mxu3 %v3287_v60  ;;  %3667 = vmatmul.bf16.gmra.mxu0 %v3287_v60  ;;  %v3055_v35 = vadd.f32 %v3054_v23, %v6237_v50  ;;  %v3200_v63 = vadd.f32 %v3199_v9, %v3151_v49  ;;  %v3266_v4 = vmax.f32 %v3102_v47, %v3234_v54 }
 0x442   :  { %v3235_v43 = vmul.f32 0.1, %v3200_v63 }
 0x443   :  { %v3103_v42 = vpop.f32.mrf.mxu3 }
 0x444   :  { %v3104_v55 = vadd.f32 %v3103_v42, %v3055_v35  ;;  %v3267_v24 = vmax.f32 %v3200_v63, %v3235_v43 }
 0x445   :  { %v3152_v58 = vpop.f32.mrf.mxu2  ;;  %v3204_v62 = vpop.f32.mrf.mxu0 }
 0x446   :  { %v3236_v15 = vmul.f32 0.1, %v3104_v55  ;;  %v3153_v3 = vadd.f32 %v3152_v58, %v6239_v57 }
 0x447   :  { %v3057_v56 = vpop.f32.mrf.mxu1 }
 0x448   :  { %v3268_v32 = vmax.f32 %v3104_v55, %v3236_v15  ;;  %v3202_v5 = vadd.f32 %v3201_v31, %v3153_v3  ;;  %v3058_v2 = vadd.f32 %v3057_v56, %v6237_v50  ;;  %v3326_v3 = vld [vmem:[%s6485_s14] sm:$0x3] }
 0x44a   :  { %v3237_v28 = vmul.f32 0.1, %v3202_v5  ;;  %v3288_v27 = vpack.c.bf16 %v3268_v32, %v3266_v4  ;;  %v6278_v4 = vperm.slane %v3326_v3, 0 }
 0x44b   :  { %v3106_v1 = vpop.f32.mrf.mxu3 }
 0x44c   :  { %v3269_v10 = vmax.f32 %v3202_v5, %v3237_v28  ;;  %3525 = vmatmul.bf16.gmra.mxu1 %v3288_v27  ;;  %3623 = vmatmul.bf16.gmra.mxu2 %v3288_v27  ;;  %v3107_v53 = vadd.f32 %v3106_v1, %v3058_v2 }
 0x44d   :  { %v3155_v25 = vpop.f32.mrf.mxu2  ;;  %v3206_v36 = vpop.f32.mrf.mxu0 }
 0x44e   :  { %v3289_v19 = vpack.c.bf16 %v3269_v10, %v3267_v24  ;;  %v3156_v26 = vadd.f32 %v3155_v25, %v6239_v57  ;;  %v3238_v16 = vmul.f32 0.1, %v3107_v53 }
 0x44f   :  { %v3059_v14 = vpop.f32.mrf.mxu1 }
 0x450   :  { %3574 = vmatmul.bf16.gmra.mxu3 %v3289_v19  ;;  %3672 = vmatmul.bf16.gmra.mxu0 %v3289_v19  ;;  %v3060_v6 = vadd.f32 %v3059_v14, %v6237_v50  ;;  %v3205_v0 = vadd.f32 %v3204_v62, %v3156_v26  ;;  %v3270_v11 = vmax.f32 %v3107_v53, %v3238_v16  ;;  %v3752_v62 = vld [vmem:[%s6486_s15] sm:$0x3] }
 0x451   :  { %v6285_v25 = vperm.slane %v3752_v62, 1  ;;  %v6287_v53 = vperm.slane %v3752_v62, 0 }
 0x452   :  { %v3239_v38 = vmul.f32 0.1, %v3205_v0 }
 0x453   :  { %v3108_v41 = vpop.f32.mrf.mxu3 }
 0x454   :  { %v3109_v13 = vadd.f32 %v3108_v41, %v3060_v6  ;;  %v3271_v9 = vmax.f32 %v3205_v0, %v3239_v38 }
 0x455   :  { %v3157_v18 = vpop.f32.mrf.mxu2  ;;  %v3209_v51 = vpop.f32.mrf.mxu0 }
 0x456   :  { %v3240_v20 = vmul.f32 0.1, %v3109_v13  ;;  %v3158_v8 = vadd.f32 %v3157_v18, %v6239_v57 }
 0x457   :  { %v3062_v33 = vpop.f32.mrf.mxu1 }
 0x458   :  { %v3272_v22 = vmax.f32 %v3109_v13, %v3240_v20  ;;  %v3207_v12 = vadd.f32 %v3206_v36, %v3158_v8  ;;  %v3063_v48 = vadd.f32 %v3062_v33, %v6237_v50 }
 0x45a   :  { %v3241_v40 = vmul.f32 0.1, %v3207_v12  ;;  %v3290_v29 = vpack.c.bf16 %v3272_v22, %v3270_v11 }
 0x45b   :  { %v3111_v17 = vpop.f32.mrf.mxu3 }
 0x45c   :  { %v3273_v21 = vmax.f32 %v3207_v12, %v3241_v40  ;;  %3530 = vmatmul.bf16.gmra.mxu1 %v3290_v29  ;;  %3628 = vmatmul.bf16.gmra.mxu2 %v3290_v29  ;;  %v3112_v52 = vadd.f32 %v3111_v17, %v3063_v48 }
 0x45d   :  { %v3160_v39 = vpop.f32.mrf.mxu2  ;;  %v3211_v23 = vpop.f32.mrf.mxu0 }
 0x45e   :  { %v3291_v45 = vpack.c.bf16 %v3273_v21, %v3271_v9  ;;  %v3161_v37 = vadd.f32 %v3160_v39, %v6239_v57  ;;  %v3242_v7 = vmul.f32 0.1, %v3112_v52 }
 0x45f   :  { %v3064_v30 = vpop.f32.mrf.mxu1 }
 0x460   :  { %3579 = vmatmul.bf16.gmra.mxu3 %v3291_v45  ;;  %3677 = vmatmul.bf16.gmra.mxu0 %v3291_v45  ;;  %v3065_v44 = vadd.f32 %v3064_v30, %v6237_v50  ;;  %v3210_v59 = vadd.f32 %v3209_v51, %v3161_v37  ;;  %v3274_v47 = vmax.f32 %v3112_v52, %v3242_v7 }
 0x462   :  { %v3243_v49 = vmul.f32 0.1, %v3210_v59 }
 0x463   :  { %v3113_v61 = vpop.f32.mrf.mxu3 }
 0x464   :  { %v3114_v34 = vadd.f32 %v3113_v61, %v3065_v44  ;;  %v3275_v55 = vmax.f32 %v3210_v59, %v3243_v49 }
 0x465   :  { %v3162_v46 = vpop.f32.mrf.mxu2 }
 0x466   :  { %v3244_v60 = vmul.f32 0.1, %v3114_v34  ;;  %v3163_v31 = vadd.f32 %v3162_v46, %v6239_v57  ;;  %v6276_v57 = vperm.slane %v3326_v3, 1 }
 0x468   :  { %v3276_v35 = vmax.f32 %v3114_v34, %v3244_v60  ;;  %v3212_v42 = vadd.f32 %v3211_v23, %v3163_v31 }
 0x46a   :  { %v3245_v54 = vmul.f32 0.1, %v3212_v42  ;;  %v3292_v63 = vpack.c.bf16 %v3276_v35, %v3274_v47 }
 0x46c   :  { %v3277_v58 = vmax.f32 %v3212_v42, %v3245_v54  ;;  %3535 = vmatmul.bf16.gmra.mxu1 %v3292_v63  ;;  %3633 = vmatmul.bf16.gmra.mxu2 %v3292_v63 }
 0x46e   :  { %v3293_v50 = vpack.c.bf16 %v3277_v58, %v3275_v55 }
 0x470   :  { %3584 = vmatmul.bf16.gmra.mxu3 %v3293_v50  ;;  %3682 = vmatmul.bf16.gmra.mxu0 %v3293_v50 }
 0x479   :  { %v3501_v15 = vpop.f32.mrf.mxu1 }
 0x47a   :  { %v3502_v28 = vadd.f32 %v3501_v15, %v6278_v4 }
 0x47d   :  { %v3648_v56 = vpop.f32.mrf.mxu0 }
 0x47f   :  { %v3599_v43 = vpop.f32.mrf.mxu2 }
 0x480   :  { %v3600_v32 = vadd.f32 %v3599_v43, %v6276_v57 }
 0x481   :  { %v3503_v5 = vpop.f32.mrf.mxu1 }
 0x482   :  { %v3649_v27 = vadd.f32 %v3648_v56, %v3600_v32  ;;  %v3504_v0 = vadd.f32 %v3503_v5, %v6278_v4 }
 0x483   :  { %v3550_v1 = vpop.f32.mrf.mxu3 }
 0x484   :  { %v3551_v24 = vadd.f32 %v3550_v1, %v3502_v28  ;;  %v3689_v10 = vmul.f32 0.1, %v3649_v27 }
 0x485   :  { %v3650_v2 = vpop.f32.mrf.mxu0 }
 0x486   :  { %v3688_v19 = vmul.f32 0.1, %v3551_v24  ;;  %v3721_v14 = vmax.f32 %v3649_v27, %v3689_v10 }
 0x487   :  { %v3601_v26 = vpop.f32.mrf.mxu2 }
 0x488   :  { %v3602_v6 = vadd.f32 %v3601_v26, %v6276_v57  ;;  %v3759_v36 = vmul.f32 %v6285_v25, %v3721_v14  ;;  %v3720_v41 = vmax.f32 %v3551_v24, %v3688_v19 }
 0x489   :  { %v3506_v16 = vpop.f32.mrf.mxu1 }
 0x48a   :  { %v3651_v13 = vadd.f32 %v3650_v2, %v3602_v6  ;;  %3822 = vadd.xlane.f32.xlu1 %v3759_v36  ;;  %v3758_v18 = vmul.f32 %v6287_v53, %v3720_v41  ;;  %v3507_v21 = vadd.f32 %v3506_v16, %v6278_v4 }
 0x48b   :  { %v3552_v20 = vpop.f32.mrf.mxu3 }
 0x48c   :  { %v3553_v8 = vadd.f32 %v3552_v20, %v3504_v0  ;;  %3790 = vadd.xlane.f32.xlu0 %v3758_v18  ;;  %v3691_v33 = vmul.f32 0.1, %v3651_v13 }
 0x48d   :  { %v3653_v11 = vpop.f32.mrf.mxu0 }
 0x48e   :  { %v3690_v38 = vmul.f32 0.1, %v3553_v8  ;;  %v3723_v22 = vmax.f32 %v3651_v13, %v3691_v33 }
 0x48f   :  { %v3604_v12 = vpop.f32.mrf.mxu2 }
 0x490   :  { %v3722_v40 = vmax.f32 %v3553_v8, %v3690_v38  ;;  %v3605_v29 = vadd.f32 %v3604_v12, %v6276_v57  ;;  %v3761_v17 = vmul.f32 %v6285_v25, %v3723_v22 }
 0x491   :  { %v3508_v9 = vpop.f32.mrf.mxu1 }
 0x492   :  { %v3654_v51 = vadd.f32 %v3653_v11, %v3605_v29  ;;  %3824 = vadd.xlane.f32.xlu2 %v3761_v17  ;;  %v3760_v39 = vmul.f32 %v6287_v53, %v3722_v40  ;;  %v3509_v47 = vadd.f32 %v3508_v9, %v6278_v4 }
 0x493   :  { %v3555_v48 = vpop.f32.mrf.mxu3 }
 0x494   :  { %v3693_v45 = vmul.f32 0.1, %v3654_v51  ;;  %v3556_v30 = vadd.f32 %v3555_v48, %v3507_v21  ;;  %3792 = vadd.xlane.f32.xlu0 %v3760_v39 }
 0x495   :  { %v3655_v52 = vpop.f32.mrf.mxu0 }
 0x496   :  { %v3692_v37 = vmul.f32 0.1, %v3556_v30  ;;  %v3725_v44 = vmax.f32 %v3654_v51, %v3693_v45 }
 0x497   :  { %v3606_v61 = vpop.f32.mrf.mxu2 }
 0x498   :  { %v3724_v7 = vmax.f32 %v3556_v30, %v3692_v37  ;;  %v3607_v59 = vadd.f32 %v3606_v61, %v6276_v57  ;;  %v3763_v31 = vmul.f32 %v6285_v25, %v3725_v44 }
 0x499   :  { %v3511_v34 = vpop.f32.mrf.mxu1 }
 0x49a   :  { %v3656_v46 = vadd.f32 %v3655_v52, %v3607_v59  ;;  %v3762_v60 = vmul.f32 %v6287_v53, %v3724_v7  ;;  %v3512_v50 = vadd.f32 %v3511_v34, %v6278_v4 }
 0x49b   :  { %v3557_v23 = vpop.f32.mrf.mxu3 }
 0x49c   :  { %v3695_v49 = vmul.f32 0.1, %v3656_v46  ;;  %3794 = vadd.xlane.f32.xlu1 %v3762_v60  ;;  %3826 = vadd.xlane.f32.xlu0 %v3763_v31  ;;  %v3558_v42 = vadd.f32 %v3557_v23, %v3509_v47 }
 0x49d   :  { %v3658_v35 = vpop.f32.mrf.mxu0 }
 0x49e   :  { %v3727_v54 = vmax.f32 %v3656_v46, %v3695_v49  ;;  %v3694_v15 = vmul.f32 0.1, %v3558_v42 }
 0x49f   :  { %v3609_v63 = vpop.f32.mrf.mxu2 }
 0x4a0   :  { %v3610_v55 = vadd.f32 %v3609_v63, %v6276_v57  ;;  %v3765_v56 = vmul.f32 %v6285_v25, %v3727_v54  ;;  %v3726_v28 = vmax.f32 %v3558_v42, %v3694_v15 }
 0x4a1   :  { %v3513_v58 = vpop.f32.mrf.mxu1 }
 0x4a2   :  { %v3659_v3 = vadd.f32 %v3658_v35, %v3610_v55  ;;  %v3514_v14 = vadd.f32 %v3513_v58, %v6278_v4  ;;  %v3764_v6 = vmul.f32 %v6287_v53, %v3726_v28 }
 0x4a3   :  { %v3560_v43 = vpop.f32.mrf.mxu3 }
 0x4a4   :  { %v3697_v32 = vmul.f32 0.1, %v3659_v3  ;;  %v3561_v5 = vadd.f32 %v3560_v43, %v3512_v50  ;;  %3828 = vadd.xlane.f32.xlu1 %v3765_v56 }
 0x4a5   :  { %v3660_v62 = vpop.f32.mrf.mxu0 }
 0x4a6   :  { %v3729_v27 = vmax.f32 %v3659_v3, %v3697_v32  ;;  %v3696_v24 = vmul.f32 0.1, %v3561_v5 }
 0x4a7   :  { %v3611_v1 = vpop.f32.mrf.mxu2 }
 0x4a8   :  { %v3612_v10 = vadd.f32 %v3611_v1, %v6276_v57  ;;  %v3767_v2 = vmul.f32 %v6285_v25, %v3729_v27  ;;  %v3728_v41 = vmax.f32 %v3561_v5, %v3696_v24 }
 0x4a9   :  { %v3516_v19 = vpop.f32.mrf.mxu1 }
 0x4aa   :  { %v3661_v26 = vadd.f32 %v3660_v62, %v3612_v10  ;;  %3830 = vadd.xlane.f32.xlu2 %v3767_v2  ;;  %v3766_v11 = vmul.f32 %v6287_v53, %v3728_v41  ;;  %v3517_v12 = vadd.f32 %v3516_v19, %v6278_v4 }
 0x4ab   :  { %v3562_v36 = vpop.f32.mrf.mxu3 }
 0x4ac   :  { %v3699_v16 = vmul.f32 0.1, %v3661_v26  ;;  %v3563_v0 = vadd.f32 %v3562_v36, %v3514_v14  ;;  %3796 = vadd.xlane.f32.xlu1 %v3764_v6 }
 0x4ad   :  { %v3663_v13 = vpop.f32.mrf.mxu0 }
 0x4ae   :  { %v3731_v18 = vmax.f32 %v3661_v26, %v3699_v16  ;;  %v3698_v8 = vmul.f32 0.1, %v3563_v0 }
 0x4af   :  { %v3614_v20 = vpop.f32.mrf.mxu2 }
 0x4b0   :  { %v3615_v33 = vadd.f32 %v3614_v20, %v6276_v57  ;;  %v3769_v38 = vmul.f32 %v6285_v25, %v3731_v18  ;;  %v3730_v17 = vmax.f32 %v3563_v0, %v3698_v8 }
 0x4b1   :  { %v3518_v22 = vpop.f32.mrf.mxu1 }
 0x4b2   :  { %v3664_v40 = vadd.f32 %v3663_v13, %v3615_v33  ;;  %3798 = vadd.xlane.f32.xlu2 %v3766_v11  ;;  %3832 = vadd.xlane.f32.xlu0 %v3769_v38  ;;  %v3768_v37 = vmul.f32 %v6287_v53, %v3730_v17  ;;  %v3519_v7 = vadd.f32 %v3518_v22, %v6278_v4 }
 0x4b3   :  { %v3565_v29 = vpop.f32.mrf.mxu3 }
 0x4b4   :  { %v3701_v9 = vmul.f32 0.1, %v3664_v40  ;;  %v3566_v21 = vadd.f32 %v3565_v29, %v3517_v12 }
 0x4b5   :  { %v3665_v51 = vpop.f32.mrf.mxu0 }
 0x4b6   :  { %v3700_v39 = vmul.f32 0.1, %v3566_v21  ;;  %v3733_v48 = vmax.f32 %v3664_v40, %v3701_v9 }
 0x4b7   :  { %v3616_v45 = vpop.f32.mrf.mxu2 }
 0x4b8   :  { %v3732_v30 = vmax.f32 %v3566_v21, %v3700_v39  ;;  %v3617_v52 = vadd.f32 %v3616_v45, %v6276_v57  ;;  %v3771_v44 = vmul.f32 %v6285_v25, %v3733_v48 }
 0x4b9   :  { %v3521_v61 = vpop.f32.mrf.mxu1 }
 0x4ba   :  { %v3666_v59 = vadd.f32 %v3665_v51, %v3617_v52  ;;  %3800 = vadd.xlane.f32.xlu2 %v3768_v37  ;;  %3834 = vadd.xlane.f32.xlu1 %v3771_v44  ;;  %v3770_v34 = vmul.f32 %v6287_v53, %v3732_v30  ;;  %v3522_v58 = vadd.f32 %v3521_v61, %v6278_v4 }
 0x4bb   :  { %v3567_v46 = vpop.f32.mrf.mxu3 }
 0x4bc   :  { %v3703_v60 = vmul.f32 0.1, %v3666_v59  ;;  %v3568_v31 = vadd.f32 %v3567_v46, %v3519_v7  ;;  %3802 = vadd.xlane.f32.xlu0 %v3770_v34 }
 0x4bd   :  { %v3668_v23 = vpop.f32.mrf.mxu0 }
 0x4be   :  { %v3702_v47 = vmul.f32 0.1, %v3568_v31  ;;  %v3735_v49 = vmax.f32 %v3666_v59, %v3703_v60 }
 0x4bf   :  { %v3619_v35 = vpop.f32.mrf.mxu2 }
 0x4c0   :  { %v3734_v42 = vmax.f32 %v3568_v31, %v3702_v47  ;;  %v3620_v54 = vadd.f32 %v3619_v35, %v6276_v57  ;;  %v3773_v63 = vmul.f32 %v6285_v25, %v3735_v49 }
 0x4c1   :  { %v3523_v55 = vpop.f32.mrf.mxu1 }
 0x4c2   :  { %v3669_v50 = vadd.f32 %v3668_v23, %v3620_v54  ;;  %3836 = vadd.xlane.f32.xlu2 %v3773_v63  ;;  %v3772_v15 = vmul.f32 %v6287_v53, %v3734_v42  ;;  %v3524_v2 = vadd.f32 %v3523_v55, %v6278_v4 }
 0x4c3   :  { %v3570_v3 = vpop.f32.mrf.mxu3 }
 0x4c4   :  { %v3705_v56 = vmul.f32 0.1, %v3669_v50  ;;  %v3571_v43 = vadd.f32 %v3570_v3, %v3522_v58  ;;  %3804 = vadd.xlane.f32.xlu1 %v3772_v15 }
 0x4c5   :  { %v3670_v32 = vpop.f32.mrf.mxu0 }
 0x4c6   :  { %v3704_v5 = vmul.f32 0.1, %v3571_v43  ;;  %v3737_v62 = vmax.f32 %v3669_v50, %v3705_v56 }
 0x4c7   :  { %v3621_v28 = vpop.f32.mrf.mxu2 }
 0x4c8   :  { %v3736_v27 = vmax.f32 %v3571_v43, %v3704_v5  ;;  %v3622_v1 = vadd.f32 %v3621_v28, %v6276_v57  ;;  %v3775_v24 = vmul.f32 %v6285_v25, %v3737_v62 }
 0x4c9   :  { %v3526_v10 = vpop.f32.mrf.mxu1 }
 0x4ca   :  { %v3671_v19 = vadd.f32 %v3670_v32, %v3622_v1  ;;  %3838 = vadd.xlane.f32.xlu0 %v3775_v24  ;;  %v3774_v14 = vmul.f32 %v6287_v53, %v3736_v27  ;;  %v3527_v11 = vadd.f32 %v3526_v10, %v6278_v4 }
 0x4cb   :  { %v3572_v26 = vpop.f32.mrf.mxu3 }
 0x4cc   :  { %v3707_v6 = vmul.f32 0.1, %v3671_v19  ;;  %v3573_v36 = vadd.f32 %v3572_v26, %v3524_v2  ;;  %3806 = vadd.xlane.f32.xlu2 %v3774_v14 }
 0x4cd   :  { %v3673_v41 = vpop.f32.mrf.mxu0 }
 0x4ce   :  { %v3706_v16 = vmul.f32 0.1, %v3573_v36  ;;  %v3739_v0 = vmax.f32 %v3671_v19, %v3707_v6 }
 0x4cf   :  { %v3624_v13 = vpop.f32.mrf.mxu2 }
 0x4d0   :  { %v3738_v18 = vmax.f32 %v3573_v36, %v3706_v16  ;;  %v3625_v20 = vadd.f32 %v3624_v13, %v6276_v57  ;;  %v3777_v8 = vmul.f32 %v6285_v25, %v3739_v0  ;;  %v3854_v13 = vlaneseq }
 0x4d1   :  { %v3528_v33 = vpop.f32.mrf.mxu1 }
 0x4d2   :  { %v3674_v38 = vadd.f32 %v3673_v41, %v3625_v20  ;;  %3840 = vadd.xlane.f32.xlu1 %v3777_v8  ;;  %v3776_v22 = vmul.f32 %v6287_v53, %v3738_v18  ;;  %v3529_v52 = vadd.f32 %v3528_v33, %v6278_v4 }
 0x4d3   :  { %v3575_v12 = vpop.f32.mrf.mxu3 }
 0x4d4   :  { %v3709_v40 = vmul.f32 0.1, %v3674_v38  ;;  %v3576_v29 = vadd.f32 %v3575_v12, %v3527_v11  ;;  %3808 = vadd.xlane.f32.xlu0 %v3776_v22  ;;  %v6344_v12 = vand.u32 127, %v3854_v13 }
 0x4d5   :  { %v3675_v17 = vpop.f32.mrf.mxu0 }
 0x4d6   :  { %v3708_v9 = vmul.f32 0.1, %v3576_v29  ;;  %v3741_v21 = vmax.f32 %v3674_v38, %v3709_v40  ;;  %vm3856_vm1 = vcmp.eq.s32.totalorder %v6344_v12, 0 }
 0x4d7   :  { %v3626_v51 = vpop.f32.mrf.mxu2 }
 0x4d8   :  { %v3740_v39 = vmax.f32 %v3576_v29, %v3708_v9  ;;  %v3627_v48 = vadd.f32 %v3626_v51, %v6276_v57  ;;  %v3779_v45 = vmul.f32 %v6285_v25, %v3741_v21 }
 0x4d9   :  { %v3531_v30 = vpop.f32.mrf.mxu1 }
 0x4da   :  { %v3676_v37 = vadd.f32 %v3675_v17, %v3627_v48  ;;  %3842 = vadd.xlane.f32.xlu2 %v3779_v45  ;;  %v3778_v44 = vmul.f32 %v6287_v53, %v3740_v39  ;;  %v3532_v35 = vadd.f32 %v3531_v30, %v6278_v4  ;;  %v6353_v48 = vld [vmem:[%s6487_s16] ss:$0 sm:$0xff] }
 0x4db   :  { %v3577_v61 = vpop.f32.mrf.mxu3 }
 0x4dc   :  { %v3711_v7 = vmul.f32 0.1, %v3676_v37  ;;  %v3578_v59 = vadd.f32 %v3577_v61, %v3529_v52  ;;  %3810 = vadd.xlane.f32.xlu1 %v3778_v44 }
 0x4dd   :  { %v3678_v34 = vpop.f32.mrf.mxu0 }
 0x4de   :  { %v3710_v46 = vmul.f32 0.1, %v3578_v59  ;;  %v3743_v60 = vmax.f32 %v3676_v37, %v3711_v7 }
 0x4df   :  { %v3629_v31 = vpop.f32.mrf.mxu2 }
 0x4e0   :  { %v3742_v23 = vmax.f32 %v3578_v59, %v3710_v46  ;;  %v3630_v47 = vadd.f32 %v3629_v31, %v6276_v57  ;;  %v3781_v49 = vmul.f32 %v6285_v25, %v3743_v60 }
 0x4e1   :  { %v3533_v63 = vpop.f32.mrf.mxu1 }
 0x4e2   :  { %v3679_v42 = vadd.f32 %v3678_v34, %v3630_v47  ;;  %3844 = vadd.xlane.f32.xlu0 %v3781_v49  ;;  %v3780_v54 = vmul.f32 %v6287_v53, %v3742_v23  ;;  %v3534_v62 = vadd.f32 %v3533_v63, %v6278_v4 }
 0x4e3   :  { %v3580_v55 = vpop.f32.mrf.mxu3 }
 0x4e4   :  { %v3713_v58 = vmul.f32 0.1, %v3679_v42  ;;  %v3581_v50 = vadd.f32 %v3580_v55, %v3532_v35  ;;  %3812 = vadd.xlane.f32.xlu2 %v3780_v54 }
 0x4e5   :  { %v3680_v15 = vpop.f32.mrf.mxu0 }
 0x4e6   :  { %v3712_v3 = vmul.f32 0.1, %v3581_v50  ;;  %v3745_v56 = vmax.f32 %v3679_v42, %v3713_v58 }
 0x4e7   :  { %v3631_v43 = vpop.f32.mrf.mxu2 }
 0x4e8   :  { %v3744_v32 = vmax.f32 %v3581_v50, %v3712_v3  ;;  %v3783_v5 = vmul.f32 %v6285_v25, %v3745_v56  ;;  %v3632_v26 = vadd.f32 %v3631_v43, %v6276_v57 }
 0x4e9   :  { %v3536_v24 = vpop.f32.mrf.mxu1 }
 0x4ea   :  { %3846 = vadd.xlane.f32.xlu1 %v3783_v5  ;;  %v3782_v28 = vmul.f32 %v6287_v53, %v3744_v32  ;;  %v3537_v6 = vadd.f32 %v3536_v24, %v6278_v4  ;;  %v3681_v0 = vadd.f32 %v3680_v15, %v3632_v26 }
 0x4eb   :  { %v3582_v27 = vpop.f32.mrf.mxu3 }
 0x4ec   :  { %v3583_v1 = vadd.f32 %v3582_v27, %v3534_v62  ;;  %3814 = vadd.xlane.f32.xlu0 %v3782_v28  ;;  %v3715_v38 = vmul.f32 0.1, %v3681_v0 }
 0x4ed   :  { %v3683_v2 = vpop.f32.mrf.mxu0 }
 0x4ee   :  { %v3714_v10 = vmul.f32 0.1, %v3583_v1 }
 0x4ef   :  { %v3634_v19 = vpop.f32.mrf.mxu2 }
 0x4f0   :  { %v3746_v14 = vmax.f32 %v3583_v1, %v3714_v10  ;;  %v3635_v40 = vadd.f32 %v3634_v19, %v6276_v57 }
 0x4f1   :  { %v3538_v20 = vpop.f32.mrf.mxu1 }
 0x4f2   :  { %v3784_v36 = vmul.f32 %v6287_v53, %v3746_v14  ;;  %v3539_v29 = vadd.f32 %v3538_v20, %v6278_v4  ;;  %v3684_v45 = vadd.f32 %v3683_v2, %v3635_v40 }
 0x4f3   :  { %v3585_v41 = vpop.f32.mrf.mxu3 }
 0x4f4   :  { %v3586_v16 = vadd.f32 %v3585_v41, %v3537_v6  ;;  %3816 = vadd.xlane.f32.xlu1 %v3784_v36  ;;  %v3717_v34 = vmul.f32 0.1, %v3684_v45 }
 0x4f5   :  { %v3685_v22 = vpop.f32.mrf.mxu0 }
 0x4f6   :  { %v3716_v18 = vmul.f32 0.1, %v3586_v16  ;;  %v3749_v31 = vmax.f32 %v3684_v45, %v3717_v34 }
 0x4f7   :  { %v3636_v8 = vpop.f32.mrf.mxu2 }
 0x4f8   :  { %v3748_v33 = vmax.f32 %v3586_v16, %v3716_v18  ;;  %v3637_v11 = vadd.f32 %v3636_v8, %v6276_v57  ;;  %v3747_v57 = vmax.f32 %v3681_v0, %v3715_v38  ;;  %v3787_v42 = vmul.f32 %v6285_v25, %v3749_v31 }
 0x4fa   :  { %v3686_v17 = vadd.f32 %v3685_v22, %v3637_v11  ;;  %v3786_v9 = vmul.f32 %v6287_v53, %v3748_v33  ;;  %v3785_v46 = vmul.f32 %v6285_v25, %v3747_v57 }
 0x4fb   :  { %v3587_v21 = vpop.f32.mrf.mxu3 }
 0x4fc   :  { %v3719_v51 = vmul.f32 0.1, %v3686_v17  ;;  %v3588_v39 = vadd.f32 %v3587_v21, %v3539_v29  ;;  %3818 = vadd.xlane.f32.xlu2 %v3786_v9 }
 0x4fd   :  { %v3823_v37 = vpop.xlane.xlu1 %3822 }
 0x4fe   :  { %v3718_v30 = vmul.f32 0.1, %v3588_v39  ;;  %v3751_v52 = vmax.f32 %v3686_v17, %v3719_v51 }
 0x4ff   :  { %v3791_v4 = vpop.xlane.xlu0 %3790 }
 0x500   :  { %v3750_v44 = vmax.f32 %v3588_v39, %v3718_v30  ;;  %v3857_v61 = vsel %vm3856_vm1, %v3791_v4, %v3823_v37  ;;  %v3789_v7 = vmul.f32 %v6285_v25, %v3751_v52 }
 0x501   :  { %v3877_v59 = vadd.f32 %v6353_v48, %v3857_v61 }
 0x502   :  { %3852 = vadd.xlane.f32.xlu1 %v3789_v7  ;;  %v3788_v60 = vmul.f32 %v6287_v53, %v3750_v44 }
 0x503   :  { %3894 = vst.msk [vmem:[%s6488_s17] sm:$0xff] %vm3893_vm2, %v3877_v59 }
 0x504   :  { %3848 = vadd.xlane.f32.xlu2 %v3785_v46  ;;  %3820 = vadd.xlane.f32.xlu0 %v3788_v60 }
 0x505   :  { %v3825_v23 = vpop.xlane.xlu2 %3824 }
 0x507   :  { %v3793_v47 = vpop.xlane.xlu0 %3792 }
 0x508   :  { %v3858_v49 = vsel %vm3856_vm1, %v3793_v47, %v3825_v23 }
 0x509   :  { %v3878_v35 = vadd.f32 %v6353_v48, %v3858_v49 }
 0x50b   :  { %3895 = vst.msk [vmem:[%s6488_s17 + $0x8] sm:$0xff] %vm3893_vm2, %v3878_v35 }
 0x50c   :  { %3850 = vadd.xlane.f32.xlu0 %v3787_v42 }
 0x50f   :  { %v3795_v53 = vpop.xlane.xlu1 %3794  ;;  %v3827_v54 = vpop.xlane.xlu0 %3826 }
 0x510   :  { %v3859_v63 = vsel %vm3856_vm1, %v3795_v53, %v3827_v54 }
 0x511   :  { %v3879_v55 = vadd.f32 %v6353_v48, %v3859_v63 }
 0x513   :  { %3896 = vst.msk [vmem:[%s6488_s17 + $0x10] sm:$0xff] %vm3893_vm2, %v3879_v55 }
 0x517   :  { %v3829_v58 = vpop.xlane.xlu1 %3828 }
 0x51d   :  { %v3831_v25 = vpop.xlane.xlu2 %3830 }
 0x51f   :  { %v3797_v50 = vpop.xlane.xlu1 %3796 }
 0x520   :  { %v3860_v15 = vsel %vm3856_vm1, %v3797_v50, %v3829_v58 }
 0x521   :  { %v3880_v3 = vadd.f32 %v6353_v48, %v3860_v15 }
 0x523   :  { %3897 = vst.msk [vmem:[%s6488_s17 + $0x18] sm:$0xff] %vm3893_vm2, %v3880_v3 }
 0x525   :  { %v3799_v56 = vpop.xlane.xlu2 %3798  ;;  %v3833_v5 = vpop.xlane.xlu0 %3832 }
 0x526   :  { %v3861_v43 = vsel %vm3856_vm1, %v3799_v56, %v3831_v25 }
 0x527   :  { %v3881_v32 = vadd.f32 %v6353_v48, %v3861_v43 }
 0x529   :  { %3898 = vst.msk [vmem:[%s6488_s17 + $0x20] sm:$0xff] %vm3893_vm2, %v3881_v32 }
 0x52d   :  { %v3801_v62 = vpop.xlane.xlu2 %3800  ;;  %v3835_v1 = vpop.xlane.xlu1 %3834 }
 0x52e   :  { %v3862_v28 = vsel %vm3856_vm1, %v3801_v62, %v3833_v5 }
 0x52f   :  { %v3882_v27 = vadd.f32 %v6353_v48, %v3862_v28  ;;  %v3803_v24 = vpop.xlane.xlu0 %3802 }
 0x530   :  { %v3863_v10 = vsel %vm3856_vm1, %v3803_v24, %v3835_v1 }
 0x531   :  { %3899 = vst.msk [vmem:[%s6488_s17 + $0x28] sm:$0xff] %vm3893_vm2, %v3882_v27  ;;  %v3883_v2 = vadd.f32 %v6353_v48, %v3863_v10 }
 0x533   :  { %3900 = vst.msk [vmem:[%s6488_s17 + $0x30] sm:$0xff] %vm3893_vm2, %v3883_v2 }
 0x535   :  { %v3837_v19 = vpop.xlane.xlu2 %3836 }
 0x537   :  { %v3805_v14 = vpop.xlane.xlu1 %3804 }
 0x538   :  { %v3864_v26 = vsel %vm3856_vm1, %v3805_v14, %v3837_v19 }
 0x539   :  { %v3884_v6 = vadd.f32 %v6353_v48, %v3864_v26 }
 0x53b   :  { %3901 = vst.msk [vmem:[%s6488_s17 + $0x38] sm:$0xff] %vm3893_vm2, %v3884_v6 }
 0x53d   :  { %v3839_v36 = vpop.xlane.xlu0 %3838 }
 0x53f   :  { %v3807_v41 = vpop.xlane.xlu2 %3806 }
 0x540   :  { %v3865_v16 = vsel %vm3856_vm1, %v3807_v41, %v3839_v36 }
 0x541   :  { %v3885_v0 = vadd.f32 %v6353_v48, %v3865_v16 }
 0x543   :  { %3902 = vst.msk [vmem:[%s6488_s17 + $0x40] sm:$0xff] %vm3893_vm2, %v3885_v0 }
 0x545   :  { %v3841_v13 = vpop.xlane.xlu1 %3840 }
 0x547   :  { %v3809_v18 = vpop.xlane.xlu0 %3808 }
 0x548   :  { %v3866_v20 = vsel %vm3856_vm1, %v3809_v18, %v3841_v13 }
 0x549   :  { %v3886_v8 = vadd.f32 %v6353_v48, %v3866_v20 }
 0x54b   :  { %3903 = vst.msk [vmem:[%s6488_s17 + $0x48] sm:$0xff] %vm3893_vm2, %v3886_v8 }
 0x54d   :  { %v3843_v33 = vpop.xlane.xlu2 %3842 }
 0x54f   :  { %v3811_v11 = vpop.xlane.xlu1 %3810 }
 0x550   :  { %v3867_v38 = vsel %vm3856_vm1, %v3811_v11, %v3843_v33 }
 0x551   :  { %v3887_v22 = vadd.f32 %v6353_v48, %v3867_v38 }
 0x553   :  { %3904 = vst.msk [vmem:[%s6488_s17 + $0x50] sm:$0xff] %vm3893_vm2, %v3887_v22 }
 0x555   :  { %v3845_v40 = vpop.xlane.xlu0 %3844 }
 0x557   :  { %v3813_v29 = vpop.xlane.xlu2 %3812 }
 0x558   :  { %v3868_v17 = vsel %vm3856_vm1, %v3813_v29, %v3845_v40 }
 0x559   :  { %v3888_v9 = vadd.f32 %v6353_v48, %v3868_v17 }
 0x55b   :  { %3905 = vst.msk [vmem:[%s6488_s17 + $0x58] sm:$0xff] %vm3893_vm2, %v3888_v9 }
 0x55d   :  { %v3847_v21 = vpop.xlane.xlu1 %3846 }
 0x55f   :  { %v3815_v51 = vpop.xlane.xlu0 %3814 }
 0x560   :  { %v3869_v39 = vsel %vm3856_vm1, %v3815_v51, %v3847_v21 }
 0x561   :  { %v3889_v45 = vadd.f32 %v6353_v48, %v3869_v39 }
 0x563   :  { %3906 = vst.msk [vmem:[%s6488_s17 + $0x60] sm:$0xff] %vm3893_vm2, %v3889_v45 }
 0x567   :  { %v3817_v30 = vpop.xlane.xlu1 %3816 }
 0x56f   :  { %v3819_v52 = vpop.xlane.xlu2 %3818 }
 0x575   :  { %v3853_v57 = vpop.xlane.xlu1 %3852 }
 0x577   :  { %v3849_v37 = vpop.xlane.xlu2 %3848  ;;  %v3821_v4 = vpop.xlane.xlu0 %3820 }
 0x578   :  { %v3870_v44 = vsel %vm3856_vm1, %v3817_v30, %v3849_v37  ;;  %v3872_v61 = vsel %vm3856_vm1, %v3821_v4, %v3853_v57 }
 0x579   :  { %v3890_v7 = vadd.f32 %v6353_v48, %v3870_v44  ;;  %v3892_v59 = vadd.f32 %v6353_v48, %v3872_v61 }
 0x57b   :  { %3907 = vst.msk [vmem:[%s6488_s17 + $0x68] sm:$0xff] %vm3893_vm2, %v3890_v7 }
 0x57c   :  { %3909 = vst.msk [vmem:[%s6488_s17 + $0x78] sm:$0xff] %vm3893_vm2, %v3892_v59 }
 0x57f   :  { %v3851_v34 = vpop.xlane.xlu0 %3850 }
 0x580   :  { %v3871_v46 = vsel %vm3856_vm1, %v3819_v52, %v3851_v34 }
 0x581   :  { %v3891_v60 = vadd.f32 %v6353_v48, %v3871_v46 }
 0x583   :  { %3908 = vst.msk [vmem:[%s6488_s17 + $0x70] sm:$0xff] %vm3893_vm2, %v3891_v60 }
 0x584   :  { %3914 = vsyncpa [#allocation3], 1 }
 0x585   :  { %3915 = vsyncpa [#allocation5], 1 }
 0x586   :  { %3916 = vsyncpa [#allocation8], 1 }
 0x587   :  { %3917 = vsyncpa [#allocation11], 1 }

</bundles_post_ra>
